<compile_context>
chip_gen: v6e
topology: v6e:2x2x1
jax: 0.10.0
libtpu: 0.0.40
codegen_flags: <defaults>
</compile_context>

<pallas_src>
import functools
import numpy as np
import jax
import jax.numpy as jnp
from jax import lax
from jax.experimental import pallas as pl
from jax.experimental.pallas import tpu as pltpu

D = 128        # embedding dim (matches the 128-dim features in the module)
N_MELS = 40    # audio mel bins
AUD_STRIDE = 4 # audio frames per visual frame (100 Hz -> 25 Hz)
H = W = 16     # face-crop spatial size


@functools.lru_cache(maxsize=1)
def _vmem_limit():
    """Per-generation scoped-VMEM budget (<=48 MiB on v7x, 96 MiB on v5e/v6e)."""
    try:
        cap = int(pltpu.get_tpu_info().vmem_capacity_bytes)
    except Exception:
        cap = 64 * 1024 * 1024
    return max(16 * 1024 * 1024, min(cap * 3 // 4, 96 * 1024 * 1024))


# --------------------------------------------------------------------------
# Kernel 1: dense projection  y = x @ W + b   (synthetic frontends)
# bf16 MXU operands, f32 accumulation, bf16 output. Tiled over M with a
# resident weight block; M axis 'parallel' (2-TC sharding on v7x).
# --------------------------------------------------------------------------
def _linear_kernel(x_ref, w_ref, b_ref, o_ref):
    acc = jnp.dot(x_ref[...].astype(jnp.bfloat16),
                  w_ref[...].astype(jnp.bfloat16),
                  preferred_element_type=jnp.float32) + b_ref[...]
    o_ref[...] = acc.astype(o_ref.dtype)


def linear(x, w, b):
    M, K = x.shape
    N = w.shape[1]
    # Multiple-of-8 row tile, sized from M so the grid has >=2 steps when
    # possible (lets 'parallel' shard across the 2 TensorCores on v7x).
    tm = max(8, min(1024, ((M + 15) // 16) * 8))
    tm = min(tm, M)
    return pl.pallas_call(
        _linear_kernel,
        out_shape=jax.ShapeDtypeStruct((M, N), jnp.bfloat16),
        grid=(pl.cdiv(M, tm),),
        in_specs=[
            pl.BlockSpec((tm, K), lambda i: (i, 0)),
            pl.BlockSpec((K, N), lambda i: (0, 0)),   # weight resident
            pl.BlockSpec((1, N), lambda i: (0, 0)),   # bias resident
        ],
        out_specs=pl.BlockSpec((tm, N), lambda i: (i, 0)),
        compiler_params=pltpu.CompilerParams(
            dimension_semantics=("parallel",),
            vmem_limit_bytes=_vmem_limit(),
        ),
    )(x, w, b)


# --------------------------------------------------------------------------
# Kernel 2 (fused): TalkNCE + cross-attention + packed heads + masked-CE.
# --------------------------------------------------------------------------
def _softmax_lastdim(x):
    m = jnp.max(x, axis=-1, keepdims=True)
    e = jnp.exp(x - m)
    return e * pl.reciprocal(jnp.sum(e, axis=-1, keepdims=True), approx=True)


def _masked_ce_sums(logits, labels, masks):
    """(sum of masked CE terms, masked correct-prediction count) as (1,1)."""
    l0 = logits[:, 0:1]
    l1 = logits[:, 1:2]
    m = jnp.maximum(l0, l1)
    lse = m + jnp.log(jnp.exp(l0 - m) + jnp.exp(l1 - m))
    picked = labels * l1 + (1.0 - labels) * l0
    loss_sum = jnp.sum((lse - picked) * masks, keepdims=True)
    pred = (l1 > l0).astype(jnp.float32)           # argmax semantics, no exp/round
    correct = jnp.sum((pred == labels).astype(jnp.float32) * masks, keepdims=True)
    return loss_sum, correct


def _fused_kernel(a_ref, v_ref, lab_ref, msk_ref, actc_ref, actr_ref,
                  wa_ref, wv_ref, bias_ref, out_ref, acc_ref, *, rep, nb):
    # TODO(synk): the real locoencoder cross-attention block (multi-head + MLP)
    # and the transformer AV backend are not in the provided source; a
    # single-head residual attention + packed FC heads are used instead.
    step = pl.program_id(0)

    a_bf = a_ref[...]                                 # [nb, T, D] bf16 (resident)
    v_bf = v_ref[...]                                 # [rep*nb, T, D] bf16
    lab = lab_ref[...]                                # [rep*nb, T, 1] f32
    msk = msk_ref[...]                                # [rep*nb, T, 1] f32
    _, T, d = a_bf.shape
    scale = 1.0 / float(np.sqrt(d))
    inv_temp = 1.0 / 0.07

    wa_bf = wa_ref[...].astype(jnp.bfloat16)          # [D, 4] = [Wav[:D] | WaH]
    wv_bf = wv_ref[...].astype(jnp.bfloat16)          # [D, 4] = [Wav[D:] | WvH]
    bias = bias_ref[...]                              # [1, 8] = [bav | baH | bvH | 0]

    # ---- step 0: zero accumulators + TalkNCE on the resident pre-attention data
    @pl.when(step == 0)
    def _():
        for i in range(6):
            acc_ref[i] = 0.0
        vis = v_bf[0].astype(jnp.float32)             # visual seq 0   [T, D]
        aud = a_bf[0].astype(jnp.float32)             # audio batch 0  [T, D]
        act_c = actc_ref[...]                         # [T, 1] active-frame mask
        act_r = actr_ref[...]                         # [1, T]
        vn = vis * lax.rsqrt(
            jnp.maximum(jnp.sum(vis * vis, axis=1, keepdims=True), 1e-24))
        an = aud * lax.rsqrt(
            jnp.maximum(jnp.sum(aud * aud, axis=1, keepdims=True), 1e-24))
        sim = jnp.einsum("id,jd->ij",
                         vn.astype(jnp.bfloat16), an.astype(jnp.bfloat16),
                         preferred_element_type=jnp.float32) * inv_temp
        pos = jnp.sum(vn * an, axis=1, keepdims=True) * inv_temp       # diag(sim)
        sim_m = jnp.where(act_r > 0.0, sim, -1e30)                     # active cols
        mx = jnp.max(sim_m, axis=1, keepdims=True)
        lse = mx + jnp.log(jnp.sum(jnp.exp(sim_m - mx), axis=1, keepdims=True))
        num = jnp.sum((lse - pos) * act_c, keepdims=True)              # active rows
        n_act = jnp.sum(act_c, keepdims=True)
        nce = num * pl.reciprocal(jnp.maximum(n_act, 1.0), approx=True)
        acc_ref[5] = nce[0, 0]

    # ---- cross attention + heads + masked-CE partial sums for this block ----
    a_f32 = a_bf.astype(jnp.float32)
    zero = jnp.zeros((1, 1), jnp.float32)
    sum_av, sum_a, sum_v, n_correct, n_mask = zero, zero, zero, zero, zero
    for r in range(rep):                              # static unroll, audio reused
        vr_bf = v_bf[r * nb:(r + 1) * nb]             # [nb, T, D] bf16
        # one MXU score pass; reverse direction reuses its transpose
        s_av = jnp.einsum("bqd,bkd->bqk", a_bf, vr_bf,
                          preferred_element_type=jnp.float32) * scale
        p_av = _softmax_lastdim(s_av)
        ao = a_f32 + jnp.einsum("bqk,bkd->bqd", p_av.astype(jnp.bfloat16), vr_bf,
                                preferred_element_type=jnp.float32)
        p_va = _softmax_lastdim(jnp.swapaxes(s_av, 1, 2))
        vo = vr_bf.astype(jnp.float32) + jnp.einsum(
            "bqk,bkd->bqd", p_va.astype(jnp.bfloat16), a_bf,
            preferred_element_type=jnp.float32)

        # packed heads: 2 MXU pushes produce all three 2-way logit heads
        la = jnp.dot(ao.reshape(nb * T, d).astype(jnp.bfloat16), wa_bf,
                     preferred_element_type=jnp.float32)          # [nb*T, 4]
        lv = jnp.dot(vo.reshape(nb * T, d).astype(jnp.bfloat16), wv_bf,
                     preferred_element_type=jnp.float32)          # [nb*T, 4]
        logits_av = la[:, 0:2] + lv[:, 0:2] + bias[:, 0:2]
        logits_a = la[:, 2:4] + bias[:, 2:4]
        logits_v = lv[:, 2:4] + bias[:, 4:6]

        lab_r = lab[r * nb:(r + 1) * nb].reshape(nb * T, 1)
        msk_r = msk[r * nb:(r + 1) * nb].reshape(nb * T, 1)

        s0, c0 = _masked_ce_sums(logits_av, lab_r, msk_r)
        s1, _ = _masked_ce_sums(logits_a, lab_r, msk_r)
        s2, _ = _masked_ce_sums(logits_v, lab_r, msk_r)
        sum_av = sum_av + s0
        sum_a = sum_a + s1
        sum_v = sum_v + s2
        n_correct = n_correct + c0
        n_mask = n_mask + jnp.sum(msk_r, keepdims=True)

    acc_ref[0] = acc_ref[0] + sum_av[0, 0]
    acc_ref[1] = acc_ref[1] + sum_a[0, 0]
    acc_ref[2] = acc_ref[2] + sum_v[0, 0]
    acc_ref[3] = acc_ref[3] + n_correct[0, 0]
    acc_ref[4] = acc_ref[4] + n_mask[0, 0]
    # publish running totals (scratch persists across grid steps; the last
    # step's values are what the caller reads)
    for i in range(6):
        out_ref[i] = acc_ref[i]


def _choose_rep(s, nb, T, max_rep=None):
    """Visual-sequence groups per grid step: divisor of s, VMEM-budgeted."""
    per_seq = 2 * (T * D * 2) + 2 * 2 * (T * 4)   # dbl-buf bf16 visual + f32 lab/msk
    budget = _vmem_limit() // 4                   # headroom for f32 intermediates
    cap = max(1, budget // max(1, nb * per_seq))
    cap = min(cap, 16)                            # bound the static unroll over rep
    if max_rep is not None:
        cap = min(cap, max_rep)
    best = 1
    for r in range(1, s + 1):
        if s % r == 0 and r <= cap:
            best = r
    return best


def fused_xattn_heads_losses(audioEmbed, visualEmbed, labels3, masks3,
                             act_col, act_row, wa_pack, wv_pack, bias_pack,
                             *, rep):
    nb, T, d = audioEmbed.shape
    B = visualEmbed.shape[0]
    Bblk = rep * nb
    kernel = functools.partial(_fused_kernel, rep=rep, nb=nb)
    return pl.pallas_call(
        kernel,
        out_shape=jax.ShapeDtypeStruct((6,), jnp.float32),
        grid=(B // Bblk,),
        in_specs=[
            pl.BlockSpec((nb, T, d), lambda i: (0, 0, 0)),     # audio (resident)
            pl.BlockSpec((Bblk, T, d), lambda i: (i, 0, 0)),   # visual block
            pl.BlockSpec((Bblk, T, 1), lambda i: (i, 0, 0)),   # labels
            pl.BlockSpec((Bblk, T, 1), lambda i: (i, 0, 0)),   # masks
            pl.BlockSpec((T, 1), lambda i: (0, 0)),            # NCE row mask
            pl.BlockSpec((1, T), lambda i: (0, 0)),            # NCE col mask
            pl.BlockSpec((d, 4), lambda i: (0, 0)),            # packed audio heads
            pl.BlockSpec((d, 4), lambda i: (0, 0)),            # packed visual heads
            pl.BlockSpec((1, 8), lambda i: (0, 0)),            # packed biases
        ],
        out_specs=pl.BlockSpec(memory_space=pltpu.MemorySpace.SMEM),
        scratch_shapes=[pltpu.SMEM((6,), jnp.float32)],
        compiler_params=pltpu.CompilerParams(
            # loss sums accumulate across grid steps -> reduction axis
            dimension_semantics=("arbitrary",),
            vmem_limit_bytes=_vmem_limit(),
        ),
    )(audioEmbed, visualEmbed, labels3, masks3, act_col, act_row,
      wa_pack, wv_pack, bias_pack)


# --------------------------------------------------------------------------
# Deterministic synthetic parameters (shapes implied by the forward pass).
# --------------------------------------------------------------------------
def init_params(key):
    ks = jax.random.split(key, 5)
    s = 0.02
    return {
        "Wa": jax.random.normal(ks[0], (AUD_STRIDE * N_MELS, D), jnp.float32) * s,
        "ba": jnp.zeros((1, D), jnp.float32),
        "Wv": jax.random.normal(ks[1], (H * W, D), jnp.float32) * s,
        "bv": jnp.zeros((1, D), jnp.float32),
        "Wav": jax.random.normal(ks[2], (2 * D, 2), jnp.float32) * s,
        "bav": jnp.zeros((1, 2), jnp.float32),
        "WaH": jax.random.normal(ks[3], (D, 2), jnp.float32) * s,
        "baH": jnp.zeros((1, 2), jnp.float32),
        "WvH": jax.random.normal(ks[4], (D, 2), jnp.float32) * s,
        "bvH": jnp.zeros((1, 2), jnp.float32),
    }


def loconet_forward(params, audioFeature, visualFeature, labels, masks,
                    max_rep=None):
    b, s, t = visualFeature.shape[:3]
    B = b * s

    labels2 = labels.reshape(B, t).astype(jnp.float32)
    masks2 = masks.reshape(B, t).astype(jnp.float32)

    # --- frontends ---
    # TODO(synk): locoencoder's ResNet audio frontend / 3D-conv visual frontend
    # are not in the provided source; synthetic linear projections to 128-d.
    a_in = audioFeature.reshape(b, t, AUD_STRIDE * N_MELS).reshape(b * t, -1)
    audioEmbed = linear(a_in, params["Wa"], params["ba"]).reshape(b, t, D)
    v_in = visualFeature.reshape(B * t, H * W)
    visualEmbed = linear(v_in, params["Wv"], params["bv"]).reshape(B, t, D)

    # TalkNCE active-frame mask: sequence 0 pairs with audio batch 0
    # (== PyTorch's audioEmbed.repeat(s, 1, 1)[0]).
    act = (labels2[0] == 1.0).astype(jnp.float32)

    # packed head weights: [Wav[:D] | WaH], [Wav[D:] | WvH] -> 2 MXU pushes
    wa_pack = jnp.concatenate([params["Wav"][:D], params["WaH"]], axis=1)
    wv_pack = jnp.concatenate([params["Wav"][D:], params["WvH"]], axis=1)
    bias_pack = jnp.concatenate(
        [params["bav"], params["baH"], params["bvH"],
         jnp.zeros((1, 2), jnp.float32)], axis=1)

    rep = _choose_rep(s, b, t, max_rep)
    sums = fused_xattn_heads_losses(
        audioEmbed, visualEmbed,
        labels2.reshape(B, t, 1), masks2.reshape(B, t, 1),
        act.reshape(t, 1), act.reshape(1, t),
        wa_pack, wv_pack, bias_pack, rep=rep)

    denom = jnp.maximum(sums[4], 1.0)                 # all-zero-mask guard
    nlossAV = sums[0] / denom
    nlossA = sums[1] / denom
    nlossV = sums[2] / denom
    nce_loss = sums[5]
    nloss = nlossAV + 0.4 * nlossA + 0.4 * nlossV + 0.3 * nce_loss
    prec = sums[3]
    num_frames = sums[4]
    return nloss, prec, num_frames


if __name__ == "__main__":
    key = jax.random.PRNGKey(0)
    kp, ka, kv, kl = jax.random.split(key, 4)
    b, s, t = 2, 2, 8

    params = init_params(kp)
    audioFeature = jax.random.normal(ka, (b, AUD_STRIDE * t, N_MELS), jnp.float32)
    visualFeature = jax.random.normal(kv, (b, s, t, H, W), jnp.float32)
    labels = (jax.random.uniform(kl, (b, s, t)) > 0.5).astype(jnp.int32)
    labels = labels.at[0, 0, 0].set(1).at[0, 0, 3].set(1)  # ensure active frames
    masks = jnp.ones((b, s, t), jnp.float32)

    fwd = jax.jit(loconet_forward)
    nloss, prec, num_frames = fwd(params, audioFeature, visualFeature, labels, masks)
    jax.block_until_ready((nloss, prec, num_frames))

    # Exercise the multi-grid-step accumulation path (rep=1 -> grid of s steps);
    # it must match the single-step result up to f32 accumulation order.
    fwd_steps = jax.jit(functools.partial(loconet_forward, max_rep=1))
    nloss2, prec2, nf2 = fwd_steps(params, audioFeature, visualFeature, labels, masks)
    jax.block_until_ready((nloss2, prec2, nf2))

    assert np.isfinite(float(nloss)) and np.isfinite(float(nloss2))
    assert np.allclose(float(nloss), float(nloss2), rtol=1e-3, atol=1e-4), (nloss, nloss2)
    assert float(prec) == float(prec2)
    assert float(num_frames) == float(nf2) == float(b * s * t)
    print("KERNEL_OK")
</pallas_src>

<mosaic_0001>
module attributes {stable_mosaic.version = 11 : i64} {
  func.func @_linear_kernel(%arg0: i32, %arg1: memref<8x160xf32, #tpu.memory_space<vmem>>, %arg2: memref<160x128xf32, #tpu.memory_space<vmem>>, %arg3: memref<1x128xf32, #tpu.memory_space<vmem>>, %arg4: memref<8x128xbf16, #tpu.memory_space<vmem>>) attributes {dimension_semantics = [#tpu.dimension_semantics<parallel>], iteration_bounds = array<i64: 2>, scalar_prefetch = 0 : i64, scratch_operands = 0 : i64, tpu.core_type = #tpu.core_type<tc>, window_params = [{transform_indices = @transform_0, window_bounds = array<i64: 8, 160>}, {pipeline_mode = #tpu.pipeline_mode<synchronous>, transform_indices = @transform_1, window_bounds = array<i64: 160, 128>}, {pipeline_mode = #tpu.pipeline_mode<synchronous>, transform_indices = @transform_2, window_bounds = array<i64: 1, 128>}, {transform_indices = @transform_3, window_bounds = array<i64: 8, 128>}]} {
    %c0 = arith.constant 0 : index
    %c0_0 = arith.constant 0 : index
    %0 = vector.load %arg1[%c0, %c0_0] : memref<8x160xf32, #tpu.memory_space<vmem>>, vector<8x160xf32>
    %1 = arith.truncf %0 : vector<8x160xf32> to vector<8x160xbf16>
    %c0_1 = arith.constant 0 : index
    %c0_2 = arith.constant 0 : index
    %2 = vector.load %arg2[%c0_1, %c0_2] : memref<160x128xf32, #tpu.memory_space<vmem>>, vector<160x128xf32>
    %3 = arith.truncf %2 : vector<160x128xf32> to vector<160x128xbf16>
    %cst = arith.constant dense<0.000000e+00> : vector<8x128xf32>
    %4 = tpu.matmul %1, %3, %cst {dimension_numbers = #tpu.dot_dimension_numbers<[1], [0], [0], [1], [0, 0, 1, 1], [], []>} : vector<8x160xbf16>, vector<160x128xbf16>, vector<8x128xf32> -> vector<8x128xf32>
    %c0_3 = arith.constant 0 : index
    %c0_4 = arith.constant 0 : index
    %5 = vector.load %arg3[%c0_3, %c0_4] : memref<1x128xf32, #tpu.memory_space<vmem>>, vector<1x128xf32>
    %6 = vector.broadcast %5 : vector<1x128xf32> to vector<8x128xf32>
    %7 = arith.addf %4, %6 : vector<8x128xf32>
    %8 = arith.truncf %7 : vector<8x128xf32> to vector<8x128xbf16>
    %c0_5 = arith.constant 0 : index
    %c0_6 = arith.constant 0 : index
    %9 = vector.load %arg4[%c0_5, %c0_6] : memref<8x128xbf16, #tpu.memory_space<vmem>>, vector<8x128xbf16>
    tpu.vector_store %arg4[%c0_5, %c0_6], %8 {strides = array<i32>} : memref<8x128xbf16, #tpu.memory_space<vmem>>, vector<8x128xbf16>,
    return
  }
  func.func @transform_0(%arg0: i32) -> (i32, i32) {
    %c0_i32 = arith.constant 0 : i32
    %c0_i32_0 = arith.constant 0 : i32
    return %arg0, %c0_i32 : i32, i32
  }
  func.func @transform_1(%arg0: i32) -> (i32, i32) {
    %c0_i32 = arith.constant 0 : i32
    %c0_i32_0 = arith.constant 0 : i32
    %c0_i32_1 = arith.constant 0 : i32
    return %c0_i32, %c0_i32_0 : i32, i32
  }
  func.func @transform_2(%arg0: i32) -> (i32, i32) {
    %c0_i32 = arith.constant 0 : i32
    %c0_i32_0 = arith.constant 0 : i32
    %c0_i32_1 = arith.constant 0 : i32
    return %c0_i32, %c0_i32_0 : i32, i32
  }
  func.func @transform_3(%arg0: i32) -> (i32, i32) {
    %c0_i32 = arith.constant 0 : i32
    %c0_i32_0 = arith.constant 0 : i32
    return %arg0, %c0_i32 : i32, i32
  }
}

module attributes {stable_mosaic.version = 11 : i64} {
  func.func @_linear_kernel(%arg0: i32, %arg1: memref<16x256xf32, #tpu.memory_space<vmem>>, %arg2: memref<256x128xf32, #tpu.memory_space<vmem>>, %arg3: memref<1x128xf32, #tpu.memory_space<vmem>>, %arg4: memref<16x128xbf16, #tpu.memory_space<vmem>>) attributes {dimension_semantics = [#tpu.dimension_semantics<parallel>], iteration_bounds = array<i64: 2>, scalar_prefetch = 0 : i64, scratch_operands = 0 : i64, tpu.core_type = #tpu.core_type<tc>, window_params = [{transform_indices = @transform_0, window_bounds = array<i64: 16, 256>}, {pipeline_mode = #tpu.pipeline_mode<synchronous>, transform_indices = @transform_1, window_bounds = array<i64: 256, 128>}, {pipeline_mode = #tpu.pipeline_mode<synchronous>, transform_indices = @transform_2, window_bounds = array<i64: 1, 128>}, {transform_indices = @transform_3, window_bounds = array<i64: 16, 128>}]} {
    %c0 = arith.constant 0 : index
    %c0_0 = arith.constant 0 : index
    %0 = vector.load %arg1[%c0, %c0_0] : memref<16x256xf32, #tpu.memory_space<vmem>>, vector<16x256xf32>
    %1 = arith.truncf %0 : vector<16x256xf32> to vector<16x256xbf16>
    %c0_1 = arith.constant 0 : index
    %c0_2 = arith.constant 0 : index
    %2 = vector.load %arg2[%c0_1, %c0_2] : memref<256x128xf32, #tpu.memory_space<vmem>>, vector<256x128xf32>
    %3 = arith.truncf %2 : vector<256x128xf32> to vector<256x128xbf16>
    %cst = arith.constant dense<0.000000e+00> : vector<16x128xf32>
    %4 = tpu.matmul %1, %3, %cst {dimension_numbers = #tpu.dot_dimension_numbers<[1], [0], [0], [1], [0, 0, 1, 1], [], []>} : vector<16x256xbf16>, vector<256x128xbf16>, vector<16x128xf32> -> vector<16x128xf32>
    %c0_3 = arith.constant 0 : index
    %c0_4 = arith.constant 0 : index
    %5 = vector.load %arg3[%c0_3, %c0_4] : memref<1x128xf32, #tpu.memory_space<vmem>>, vector<1x128xf32>
    %6 = vector.broadcast %5 : vector<1x128xf32> to vector<16x128xf32>
    %7 = arith.addf %4, %6 : vector<16x128xf32>
    %8 = arith.truncf %7 : vector<16x128xf32> to vector<16x128xbf16>
    %c0_5 = arith.constant 0 : index
    %c0_6 = arith.constant 0 : index
    %9 = vector.load %arg4[%c0_5, %c0_6] : memref<16x128xbf16, #tpu.memory_space<vmem>>, vector<16x128xbf16>
    tpu.vector_store %arg4[%c0_5, %c0_6], %8 {strides = array<i32>} : memref<16x128xbf16, #tpu.memory_space<vmem>>, vector<16x128xbf16>,
    return
  }
  func.func @transform_0(%arg0: i32) -> (i32, i32) {
    %c0_i32 = arith.constant 0 : i32
    %c0_i32_0 = arith.constant 0 : i32
    return %arg0, %c0_i32 : i32, i32
  }
  func.func @transform_1(%arg0: i32) -> (i32, i32) {
    %c0_i32 = arith.constant 0 : i32
    %c0_i32_0 = arith.constant 0 : i32
    %c0_i32_1 = arith.constant 0 : i32
    return %c0_i32, %c0_i32_0 : i32, i32
  }
  func.func @transform_2(%arg0: i32) -> (i32, i32) {
    %c0_i32 = arith.constant 0 : i32
    %c0_i32_0 = arith.constant 0 : i32
    %c0_i32_1 = arith.constant 0 : i32
    return %c0_i32, %c0_i32_0 : i32, i32
  }
  func.func @transform_3(%arg0: i32) -> (i32, i32) {
    %c0_i32 = arith.constant 0 : i32
    %c0_i32_0 = arith.constant 0 : i32
    return %arg0, %c0_i32 : i32, i32
  }
}

module attributes {stable_mosaic.version = 11 : i64} {
  func.func @_fused_kernel(%arg0: i32, %arg1: memref<2x8x128xbf16, #tpu.memory_space<vmem>>, %arg2: memref<4x8x128xbf16, #tpu.memory_space<vmem>>, %arg3: memref<4x8x1xf32, #tpu.memory_space<vmem>>, %arg4: memref<4x8x1xf32, #tpu.memory_space<vmem>>, %arg5: memref<8x1xf32, #tpu.memory_space<vmem>>, %arg6: memref<1x8xf32, #tpu.memory_space<vmem>>, %arg7: memref<128x4xf32, #tpu.memory_space<vmem>>, %arg8: memref<128x4xf32, #tpu.memory_space<vmem>>, %arg9: memref<1x8xf32, #tpu.memory_space<vmem>>, %arg10: memref<6xf32, #tpu.memory_space<smem>>, %arg11: memref<6xf32, #tpu.memory_space<smem>>) attributes {dimension_semantics = [#tpu.dimension_semantics<arbitrary>], iteration_bounds = array<i64: 1>, scalar_prefetch = 0 : i64, scratch_operands = 1 : i64, tpu.core_type = #tpu.core_type<tc>, window_params = [{pipeline_mode = #tpu.pipeline_mode<synchronous>, transform_indices = @transform_0, window_bounds = array<i64: 2, 8, 128>}, {transform_indices = @transform_1, window_bounds = array<i64: 4, 8, 128>}, {transform_indices = @transform_2, window_bounds = array<i64: 4, 8, 1>}, {transform_indices = @transform_3, window_bounds = array<i64: 4, 8, 1>}, {pipeline_mode = #tpu.pipeline_mode<synchronous>, transform_indices = @transform_4, window_bounds = array<i64: 8, 1>}, {pipeline_mode = #tpu.pipeline_mode<synchronous>, transform_indices = @transform_5, window_bounds = array<i64: 1, 8>}, {pipeline_mode = #tpu.pipeline_mode<synchronous>, transform_indices = @transform_6, window_bounds = array<i64: 128, 4>}, {pipeline_mode = #tpu.pipeline_mode<synchronous>, transform_indices = @transform_7, window_bounds = array<i64: 128, 4>}, {pipeline_mode = #tpu.pipeline_mode<synchronous>, transform_indices = @transform_8, window_bounds = array<i64: 1, 8>}, {transform_indices = @transform_9, window_bounds = array<i64: 6>}]} {
    %c0 = arith.constant 0 : index
    %c0_0 = arith.constant 0 : index
    %c0_1 = arith.constant 0 : index
    %0 = vector.load %arg1[%c0, %c0_0, %c0_1] : memref<2x8x128xbf16, #tpu.memory_space<vmem>>, vector<2x8x128xbf16>
    %c0_2 = arith.constant 0 : index
    %c0_3 = arith.constant 0 : index
    %c0_4 = arith.constant 0 : index
    %1 = vector.load %arg2[%c0_2, %c0_3, %c0_4] : memref<4x8x128xbf16, #tpu.memory_space<vmem>>, vector<4x8x128xbf16>
    %c0_5 = arith.constant 0 : index
    %c0_6 = arith.constant 0 : index
    %c0_7 = arith.constant 0 : index
    %2 = vector.load %arg3[%c0_5, %c0_6, %c0_7] : memref<4x8x1xf32, #tpu.memory_space<vmem>>, vector<4x8x1xf32>
    %c0_8 = arith.constant 0 : index
    %c0_9 = arith.constant 0 : index
    %c0_10 = arith.constant 0 : index
    %3 = vector.load %arg4[%c0_8, %c0_9, %c0_10] : memref<4x8x1xf32, #tpu.memory_space<vmem>>, vector<4x8x1xf32>
    %c0_11 = arith.constant 0 : index
    %c0_12 = arith.constant 0 : index
    %4 = vector.load %arg7[%c0_11, %c0_12] : memref<128x4xf32, #tpu.memory_space<vmem>>, vector<128x4xf32>
    %5 = arith.truncf %4 : vector<128x4xf32> to vector<128x4xbf16>
    %c0_13 = arith.constant 0 : index
    %c0_14 = arith.constant 0 : index
    %6 = vector.load %arg8[%c0_13, %c0_14] : memref<128x4xf32, #tpu.memory_space<vmem>>, vector<128x4xf32>
    %7 = arith.truncf %6 : vector<128x4xf32> to vector<128x4xbf16>
    %c0_15 = arith.constant 0 : index
    %c0_16 = arith.constant 0 : index
    %8 = vector.load %arg9[%c0_15, %c0_16] : memref<1x8xf32, #tpu.memory_space<vmem>>, vector<1x8xf32>
    %c0_i32 = arith.constant 0 : i32
    %9 = arith.cmpi eq, %arg0, %c0_i32 : i32
    %10 = arith.extui %9 : i1 to i32
    %c0_i32_17 = arith.constant 0 : i32
    %11 = arith.cmpi ne, %10, %c0_i32_17 : i32
    scf.if %11 {
      %cst_71 = arith.constant 0.000000e+00 : f32
      %c0_72 = arith.constant 0 : index
      %334 = memref.load %arg11[%c0_72] : memref<6xf32, #tpu.memory_space<smem>>
      memref.store %cst_71, %arg11[%c0_72] : memref<6xf32, #tpu.memory_space<smem>>
      %cst_73 = arith.constant 0.000000e+00 : f32
      %c1_74 = arith.constant 1 : index
      %335 = memref.load %arg11[%c1_74] : memref<6xf32, #tpu.memory_space<smem>>
      memref.store %cst_73, %arg11[%c1_74] : memref<6xf32, #tpu.memory_space<smem>>
      %cst_75 = arith.constant 0.000000e+00 : f32
      %c2_76 = arith.constant 2 : index
      %336 = memref.load %arg11[%c2_76] : memref<6xf32, #tpu.memory_space<smem>>
      memref.store %cst_75, %arg11[%c2_76] : memref<6xf32, #tpu.memory_space<smem>>
      %cst_77 = arith.constant 0.000000e+00 : f32
      %c3_78 = arith.constant 3 : index
      %337 = memref.load %arg11[%c3_78] : memref<6xf32, #tpu.memory_space<smem>>
      memref.store %cst_77, %arg11[%c3_78] : memref<6xf32, #tpu.memory_space<smem>>
      %cst_79 = arith.constant 0.000000e+00 : f32
      %c4_80 = arith.constant 4 : index
      %338 = memref.load %arg11[%c4_80] : memref<6xf32, #tpu.memory_space<smem>>
      memref.store %cst_79, %arg11[%c4_80] : memref<6xf32, #tpu.memory_space<smem>>
      %cst_81 = arith.constant 0.000000e+00 : f32
      %c5_82 = arith.constant 5 : index
      %339 = memref.load %arg11[%c5_82] : memref<6xf32, #tpu.memory_space<smem>>
      memref.store %cst_81, %arg11[%c5_82] : memref<6xf32, #tpu.memory_space<smem>>
      %340 = vector.extract_strided_slice %1 {offsets = [0, 0, 0], sizes = [1, 8, 128], strides = [1, 1, 1]} : vector<4x8x128xbf16> to vector<1x8x128xbf16>
      %341 = vector.shape_cast %340 : vector<1x8x128xbf16> to vector<8x128xbf16>
      %342 = arith.extf %341 : vector<8x128xbf16> to vector<8x128xf32>
      %343 = vector.extract_strided_slice %0 {offsets = [0, 0, 0], sizes = [1, 8, 128], strides = [1, 1, 1]} : vector<2x8x128xbf16> to vector<1x8x128xbf16>
      %344 = vector.shape_cast %343 : vector<1x8x128xbf16> to vector<8x128xbf16>
      %345 = arith.extf %344 : vector<8x128xbf16> to vector<8x128xf32>
      %c0_83 = arith.constant 0 : index
      %c0_84 = arith.constant 0 : index
      %346 = vector.load %arg5[%c0_83, %c0_84] : memref<8x1xf32, #tpu.memory_space<vmem>>, vector<8x1xf32>
      %c0_85 = arith.constant 0 : index
      %c0_86 = arith.constant 0 : index
      %347 = vector.load %arg6[%c0_85, %c0_86] : memref<1x8xf32, #tpu.memory_space<vmem>>, vector<1x8xf32>
      %348 = arith.mulf %342, %342 : vector<8x128xf32>
      %cst_87 = arith.constant dense<0.000000e+00> : vector<8xf32>
      %349 = vector.multi_reduction <add>, %348, %cst_87 [1] : vector<8x128xf32> to vector<8xf32>
      %350 = vector.shape_cast %349 : vector<8xf32> to vector<8x1xf32>
      %cst_88 = arith.constant 1.000000e-24 : f32
      %351 = vector.broadcast %cst_88 : f32 to vector<8x1xf32>
      %352 = arith.maximumf %350, %351 : vector<8x1xf32>
      %353 = math.rsqrt %352 : vector<8x1xf32>
      %354 = vector.broadcast %353 : vector<8x1xf32> to vector<8x128xf32>
      %355 = arith.mulf %342, %354 : vector<8x128xf32>
      %356 = arith.mulf %345, %345 : vector<8x128xf32>
      %cst_89 = arith.constant dense<0.000000e+00> : vector<8xf32>
      %357 = vector.multi_reduction <add>, %356, %cst_89 [1] : vector<8x128xf32> to vector<8xf32>
      %358 = vector.shape_cast %357 : vector<8xf32> to vector<8x1xf32>
      %cst_90 = arith.constant 1.000000e-24 : f32
      %359 = vector.broadcast %cst_90 : f32 to vector<8x1xf32>
      %360 = arith.maximumf %358, %359 : vector<8x1xf32>
      %361 = math.rsqrt %360 : vector<8x1xf32>
      %362 = vector.broadcast %361 : vector<8x1xf32> to vector<8x128xf32>
      %363 = arith.mulf %345, %362 : vector<8x128xf32>
      %364 = arith.truncf %355 : vector<8x128xf32> to vector<8x128xbf16>
      %365 = arith.truncf %363 : vector<8x128xf32> to vector<8x128xbf16>
      "tpu.trace_start"() <{level = 10 : i32, message = "id,jd->ij"}> : () -> ()
      %cst_91 = arith.constant dense<0.000000e+00> : vector<8x8xf32>
      %366 = tpu.matmul %364, %365, %cst_91 {dimension_numbers = #tpu.dot_dimension_numbers<[1], [1], [0], [0], [0, 0, 1, 0], [], []>} : vector<8x128xbf16>, vector<8x128xbf16>, vector<8x8xf32> -> vector<8x8xf32>
      "tpu.trace_stop"() : () -> ()
      %cst_92 = arith.constant 14.2857141 : f32
      %367 = vector.broadcast %cst_92 : f32 to vector<8x8xf32>
      %368 = arith.mulf %366, %367 : vector<8x8xf32>
      %369 = arith.mulf %355, %363 : vector<8x128xf32>
      %cst_93 = arith.constant dense<0.000000e+00> : vector<8xf32>
      %370 = vector.multi_reduction <add>, %369, %cst_93 [1] : vector<8x128xf32> to vector<8xf32>
      %371 = vector.shape_cast %370 : vector<8xf32> to vector<8x1xf32>
      %cst_94 = arith.constant 14.2857141 : f32
      %372 = vector.broadcast %cst_94 : f32 to vector<8x1xf32>
      %373 = arith.mulf %371, %372 : vector<8x1xf32>
      %cst_95 = arith.constant 0.000000e+00 : f32
      %374 = vector.broadcast %cst_95 : f32 to vector<1x8xf32>
      %375 = arith.cmpf ogt, %347, %374 : vector<1x8xf32>
      %cst_96 = arith.constant -1.000000e+30 : f32
      %376 = vector.shape_cast %375 : vector<1x8xi1> to vector<1x8xi1>
      %377 = vector.broadcast %376 : vector<1x8xi1> to vector<8x8xi1>
      %378 = vector.broadcast %cst_96 : f32 to vector<8x8xf32>
      %379 = arith.select %377, %368, %378 : vector<8x8xi1>, vector<8x8xf32>
      %cst_97 = arith.constant dense<0xFF800000> : vector<8xf32>
      %380 = vector.multi_reduction <maximumf>, %379, %cst_97 [1] : vector<8x8xf32> to vector<8xf32>
      %381 = vector.shape_cast %380 : vector<8xf32> to vector<8x1xf32>
      %382 = vector.broadcast %381 : vector<8x1xf32> to vector<8x8xf32>
      %383 = arith.subf %379, %382 : vector<8x8xf32>
      %384 = math.exp %383 : vector<8x8xf32>
      %cst_98 = arith.constant dense<0.000000e+00> : vector<8xf32>
      %385 = vector.multi_reduction <add>, %384, %cst_98 [1] : vector<8x8xf32> to vector<8xf32>
      %386 = vector.shape_cast %385 : vector<8xf32> to vector<8x1xf32>
      %387 = math.log %386 : vector<8x1xf32>
      %388 = arith.addf %381, %387 : vector<8x1xf32>
      %389 = arith.subf %388, %373 : vector<8x1xf32>
      %390 = arith.mulf %389, %346 : vector<8x1xf32>
      %391 = vector.shape_cast %390 : vector<8x1xf32> to vector<1x8x1xf32>
      %cst_99 = arith.constant dense<0.000000e+00> : vector<1xf32>
      %392 = vector.multi_reduction <add>, %391, %cst_99 [1, 2] : vector<1x8x1xf32> to vector<1xf32>
      %393 = vector.shape_cast %392 : vector<1xf32> to vector<1x1x1xf32>
      %394 = vector.extract %393[0, 0, 0] : f32 from vector<1x1x1xf32>
      %395 = vector.broadcast %394 : f32 to vector<1x1xf32>
      %396 = vector.shape_cast %346 : vector<8x1xf32> to vector<1x8x1xf32>
      %cst_100 = arith.constant dense<0.000000e+00> : vector<1xf32>
      %397 = vector.multi_reduction <add>, %396, %cst_100 [1, 2] : vector<1x8x1xf32> to vector<1xf32>
      %398 = vector.shape_cast %397 : vector<1xf32> to vector<1x1x1xf32>
      %399 = vector.extract %398[0, 0, 0] : f32 from vector<1x1x1xf32>
      %400 = vector.broadcast %399 : f32 to vector<1x1xf32>
      %cst_101 = arith.constant 1.000000e+00 : f32
      %401 = vector.broadcast %cst_101 : f32 to vector<1x1xf32>
      %402 = arith.maximumf %400, %401 : vector<1x1xf32>
      %403 = tpu.reciprocal %402 {approx = true} : vector<1x1xf32> -> vector<1x1xf32>
      %404 = arith.mulf %395, %403 : vector<1x1xf32>
      %405 = vector.extract %404[0, 0] : f32 from vector<1x1xf32>
      %c5_102 = arith.constant 5 : index
      %406 = memref.load %arg11[%c5_102] : memref<6xf32, #tpu.memory_space<smem>>
      memref.store %405, %arg11[%c5_102] : memref<6xf32, #tpu.memory_space<smem>>
    } else {
    }
    %12 = arith.extf %0 : vector<2x8x128xbf16> to vector<2x8x128xf32>
    %cst = arith.constant 0.000000e+00 : f32
    %13 = vector.broadcast %cst : f32 to vector<1x1xf32>
    %14 = vector.extract_strided_slice %1 {offsets = [0, 0, 0], sizes = [2, 8, 128], strides = [1, 1, 1]} : vector<4x8x128xbf16> to vector<2x8x128xbf16>
    "tpu.trace_start"() <{level = 10 : i32, message = "bqd,bkd->bqk"}> : () -> ()
    %cst_18 = arith.constant dense<0.000000e+00> : vector<2x8x8xf32>
    %15 = tpu.matmul %0, %14, %cst_18 {dimension_numbers = #tpu.dot_dimension_numbers<[2], [2], [1], [1], [0, 0, 0, 1, 1, 1], [0], [0]>} : vector<2x8x128xbf16>, vector<2x8x128xbf16>, vector<2x8x8xf32> -> vector<2x8x8xf32>
    "tpu.trace_stop"() : () -> ()
    %cst_19 = arith.constant 0.0883883461 : f32
    %16 = vector.broadcast %cst_19 : f32 to vector<2x8x8xf32>
    %17 = arith.mulf %15, %16 : vector<2x8x8xf32>
    %cst_20 = arith.constant dense<0xFF800000> : vector<2x8xf32>
    %18 = vector.multi_reduction <maximumf>, %17, %cst_20 [2] : vector<2x8x8xf32> to vector<2x8xf32>
    %19 = vector.shape_cast %18 : vector<2x8xf32> to vector<2x8x1xf32>
    %20 = vector.broadcast %19 : vector<2x8x1xf32> to vector<2x8x8xf32>
    %21 = arith.subf %17, %20 : vector<2x8x8xf32>
    %22 = math.exp %21 : vector<2x8x8xf32>
    %cst_21 = arith.constant dense<0.000000e+00> : vector<2x8xf32>
    %23 = vector.multi_reduction <add>, %22, %cst_21 [2] : vector<2x8x8xf32> to vector<2x8xf32>
    %24 = vector.shape_cast %23 : vector<2x8xf32> to vector<2x8x1xf32>
    %25 = tpu.reciprocal %24 {approx = true} : vector<2x8x1xf32> -> vector<2x8x1xf32>
    %26 = vector.broadcast %25 : vector<2x8x1xf32> to vector<2x8x8xf32>
    %27 = arith.mulf %22, %26 : vector<2x8x8xf32>
    %28 = arith.truncf %27 : vector<2x8x8xf32> to vector<2x8x8xbf16>
    "tpu.trace_start"() <{level = 10 : i32, message = "bqk,bkd->bqd"}> : () -> ()
    %cst_22 = arith.constant dense<0.000000e+00> : vector<2x8x128xf32>
    %29 = tpu.matmul %28, %14, %cst_22 {dimension_numbers = #tpu.dot_dimension_numbers<[2], [1], [1], [2], [0, 0, 0, 1, 1, 2], [0], [0]>} : vector<2x8x8xbf16>, vector<2x8x128xbf16>, vector<2x8x128xf32> -> vector<2x8x128xf32>
    "tpu.trace_stop"() : () -> ()
    %30 = arith.addf %12, %29 : vector<2x8x128xf32>
    %31 = tpu.transpose %17, [0, 2, 1] : vector<2x8x8xf32> -> vector<2x8x8xf32>
    %cst_23 = arith.constant dense<0xFF800000> : vector<2x8xf32>
    %32 = vector.multi_reduction <maximumf>, %31, %cst_23 [2] : vector<2x8x8xf32> to vector<2x8xf32>
    %33 = vector.shape_cast %32 : vector<2x8xf32> to vector<2x8x1xf32>
    %34 = vector.broadcast %33 : vector<2x8x1xf32> to vector<2x8x8xf32>
    %35 = arith.subf %31, %34 : vector<2x8x8xf32>
    %36 = math.exp %35 : vector<2x8x8xf32>
    %cst_24 = arith.constant dense<0.000000e+00> : vector<2x8xf32>
    %37 = vector.multi_reduction <add>, %36, %cst_24 [2] : vector<2x8x8xf32> to vector<2x8xf32>
    %38 = vector.shape_cast %37 : vector<2x8xf32> to vector<2x8x1xf32>
    %39 = tpu.reciprocal %38 {approx = true} : vector<2x8x1xf32> -> vector<2x8x1xf32>
    %40 = vector.broadcast %39 : vector<2x8x1xf32> to vector<2x8x8xf32>
    %41 = arith.mulf %36, %40 : vector<2x8x8xf32>
    %42 = arith.extf %14 : vector<2x8x128xbf16> to vector<2x8x128xf32>
    %43 = arith.truncf %41 : vector<2x8x8xf32> to vector<2x8x8xbf16>
    "tpu.trace_start"() <{level = 10 : i32, message = "bqk,bkd->bqd"}> : () -> ()
    %cst_25 = arith.constant dense<0.000000e+00> : vector<2x8x128xf32>
    %44 = tpu.matmul %43, %0, %cst_25 {dimension_numbers = #tpu.dot_dimension_numbers<[2], [1], [1], [2], [0, 0, 0, 1, 1, 2], [0], [0]>} : vector<2x8x8xbf16>, vector<2x8x128xbf16>, vector<2x8x128xf32> -> vector<2x8x128xf32>
    "tpu.trace_stop"() : () -> ()
    %45 = arith.addf %42, %44 : vector<2x8x128xf32>
    %46 = vector.shape_cast %30 : vector<2x8x128xf32> to vector<16x128xf32>
    %47 = arith.truncf %46 : vector<16x128xf32> to vector<16x128xbf16>
    %cst_26 = arith.constant dense<0.000000e+00> : vector<16x4xf32>
    %48 = tpu.matmul %47, %5, %cst_26 {dimension_numbers = #tpu.dot_dimension_numbers<[1], [0], [0], [1], [0, 0, 1, 1], [], []>} : vector<16x128xbf16>, vector<128x4xbf16>, vector<16x4xf32> -> vector<16x4xf32>
    %49 = vector.shape_cast %45 : vector<2x8x128xf32> to vector<16x128xf32>
    %50 = arith.truncf %49 : vector<16x128xf32> to vector<16x128xbf16>
    %cst_27 = arith.constant dense<0.000000e+00> : vector<16x4xf32>
    %51 = tpu.matmul %50, %7, %cst_27 {dimension_numbers = #tpu.dot_dimension_numbers<[1], [0], [0], [1], [0, 0, 1, 1], [], []>} : vector<16x128xbf16>, vector<128x4xbf16>, vector<16x4xf32> -> vector<16x4xf32>
    %52 = vector.extract_strided_slice %48 {offsets = [0, 0], sizes = [16, 2], strides = [1, 1]} : vector<16x4xf32> to vector<16x2xf32>
    %53 = vector.extract_strided_slice %51 {offsets = [0, 0], sizes = [16, 2], strides = [1, 1]} : vector<16x4xf32> to vector<16x2xf32>
    %54 = arith.addf %52, %53 : vector<16x2xf32>
    %55 = vector.extract_strided_slice %8 {offsets = [0, 0], sizes = [1, 2], strides = [1, 1]} : vector<1x8xf32> to vector<1x2xf32>
    %56 = vector.broadcast %55 : vector<1x2xf32> to vector<16x2xf32>
    %57 = arith.addf %54, %56 : vector<16x2xf32>
    %58 = vector.extract_strided_slice %48 {offsets = [0, 2], sizes = [16, 2], strides = [1, 1]} : vector<16x4xf32> to vector<16x2xf32>
    %59 = vector.extract_strided_slice %8 {offsets = [0, 2], sizes = [1, 2], strides = [1, 1]} : vector<1x8xf32> to vector<1x2xf32>
    %60 = vector.broadcast %59 : vector<1x2xf32> to vector<16x2xf32>
    %61 = arith.addf %58, %60 : vector<16x2xf32>
    %62 = vector.extract_strided_slice %51 {offsets = [0, 2], sizes = [16, 2], strides = [1, 1]} : vector<16x4xf32> to vector<16x2xf32>
    %63 = vector.extract_strided_slice %8 {offsets = [0, 4], sizes = [1, 2], strides = [1, 1]} : vector<1x8xf32> to vector<1x2xf32>
    %64 = vector.broadcast %63 : vector<1x2xf32> to vector<16x2xf32>
    %65 = arith.addf %62, %64 : vector<16x2xf32>
    %66 = vector.extract_strided_slice %2 {offsets = [0, 0, 0], sizes = [2, 8, 1], strides = [1, 1, 1]} : vector<4x8x1xf32> to vector<2x8x1xf32>
    %67 = vector.shape_cast %66 : vector<2x8x1xf32> to vector<16x1xf32>
    %68 = vector.extract_strided_slice %3 {offsets = [0, 0, 0], sizes = [2, 8, 1], strides = [1, 1, 1]} : vector<4x8x1xf32> to vector<2x8x1xf32>
    %69 = vector.shape_cast %68 : vector<2x8x1xf32> to vector<16x1xf32>
    %70 = vector.extract_strided_slice %57 {offsets = [0, 0], sizes = [16, 1], strides = [1, 1]} : vector<16x2xf32> to vector<16x1xf32>
    %71 = vector.extract_strided_slice %57 {offsets = [0, 1], sizes = [16, 1], strides = [1, 1]} : vector<16x2xf32> to vector<16x1xf32>
    %72 = arith.maximumf %70, %71 : vector<16x1xf32>
    %73 = arith.subf %70, %72 : vector<16x1xf32>
    %74 = math.exp %73 : vector<16x1xf32>
    %75 = arith.subf %71, %72 : vector<16x1xf32>
    %76 = math.exp %75 : vector<16x1xf32>
    %77 = arith.addf %74, %76 : vector<16x1xf32>
    %78 = math.log %77 : vector<16x1xf32>
    %79 = arith.addf %72, %78 : vector<16x1xf32>
    %80 = arith.mulf %67, %71 : vector<16x1xf32>
    %cst_28 = arith.constant 1.000000e+00 : f32
    %81 = vector.broadcast %cst_28 : f32 to vector<16x1xf32>
    %82 = arith.subf %81, %67 : vector<16x1xf32>
    %83 = arith.mulf %82, %70 : vector<16x1xf32>
    %84 = arith.addf %80, %83 : vector<16x1xf32>
    %85 = arith.subf %79, %84 : vector<16x1xf32>
    %86 = arith.mulf %85, %69 : vector<16x1xf32>
    %87 = vector.shape_cast %86 : vector<16x1xf32> to vector<1x16x1xf32>
    %cst_29 = arith.constant dense<0.000000e+00> : vector<1xf32>
    %88 = vector.multi_reduction <add>, %87, %cst_29 [1, 2] : vector<1x16x1xf32> to vector<1xf32>
    %89 = vector.shape_cast %88 : vector<1xf32> to vector<1x1x1xf32>
    %90 = vector.extract %89[0, 0, 0] : f32 from vector<1x1x1xf32>
    %91 = vector.broadcast %90 : f32 to vector<1x1xf32>
    %92 = arith.cmpf ogt, %71, %70 : vector<16x1xf32>
    %93 = arith.extui %92 : vector<16x1xi1> to vector<16x1xi32>
    %94 = arith.sitofp %93 : vector<16x1xi32> to vector<16x1xf32>
    %95 = arith.cmpf oeq, %94, %67 : vector<16x1xf32>
    %96 = arith.extui %95 : vector<16x1xi1> to vector<16x1xi32>
    %97 = arith.sitofp %96 : vector<16x1xi32> to vector<16x1xf32>
    %98 = arith.mulf %97, %69 : vector<16x1xf32>
    %99 = vector.shape_cast %98 : vector<16x1xf32> to vector<1x16x1xf32>
    %cst_30 = arith.constant dense<0.000000e+00> : vector<1xf32>
    %100 = vector.multi_reduction <add>, %99, %cst_30 [1, 2] : vector<1x16x1xf32> to vector<1xf32>
    %101 = vector.shape_cast %100 : vector<1xf32> to vector<1x1x1xf32>
    %102 = vector.extract %101[0, 0, 0] : f32 from vector<1x1x1xf32>
    %103 = vector.broadcast %102 : f32 to vector<1x1xf32>
    %104 = vector.extract_strided_slice %61 {offsets = [0, 0], sizes = [16, 1], strides = [1, 1]} : vector<16x2xf32> to vector<16x1xf32>
    %105 = vector.extract_strided_slice %61 {offsets = [0, 1], sizes = [16, 1], strides = [1, 1]} : vector<16x2xf32> to vector<16x1xf32>
    %106 = arith.maximumf %104, %105 : vector<16x1xf32>
    %107 = arith.subf %104, %106 : vector<16x1xf32>
    %108 = math.exp %107 : vector<16x1xf32>
    %109 = arith.subf %105, %106 : vector<16x1xf32>
    %110 = math.exp %109 : vector<16x1xf32>
    %111 = arith.addf %108, %110 : vector<16x1xf32>
    %112 = math.log %111 : vector<16x1xf32>
    %113 = arith.addf %106, %112 : vector<16x1xf32>
    %114 = arith.mulf %67, %105 : vector<16x1xf32>
    %cst_31 = arith.constant 1.000000e+00 : f32
    %115 = vector.broadcast %cst_31 : f32 to vector<16x1xf32>
    %116 = arith.subf %115, %67 : vector<16x1xf32>
    %117 = arith.mulf %116, %104 : vector<16x1xf32>
    %118 = arith.addf %114, %117 : vector<16x1xf32>
    %119 = arith.subf %113, %118 : vector<16x1xf32>
    %120 = arith.mulf %119, %69 : vector<16x1xf32>
    %121 = vector.shape_cast %120 : vector<16x1xf32> to vector<1x16x1xf32>
    %cst_32 = arith.constant dense<0.000000e+00> : vector<1xf32>
    %122 = vector.multi_reduction <add>, %121, %cst_32 [1, 2] : vector<1x16x1xf32> to vector<1xf32>
    %123 = vector.shape_cast %122 : vector<1xf32> to vector<1x1x1xf32>
    %124 = vector.extract %123[0, 0, 0] : f32 from vector<1x1x1xf32>
    %125 = vector.broadcast %124 : f32 to vector<1x1xf32>
    %126 = vector.extract_strided_slice %65 {offsets = [0, 0], sizes = [16, 1], strides = [1, 1]} : vector<16x2xf32> to vector<16x1xf32>
    %127 = vector.extract_strided_slice %65 {offsets = [0, 1], sizes = [16, 1], strides = [1, 1]} : vector<16x2xf32> to vector<16x1xf32>
    %128 = arith.maximumf %126, %127 : vector<16x1xf32>
    %129 = arith.subf %126, %128 : vector<16x1xf32>
    %130 = math.exp %129 : vector<16x1xf32>
    %131 = arith.subf %127, %128 : vector<16x1xf32>
    %132 = math.exp %131 : vector<16x1xf32>
    %133 = arith.addf %130, %132 : vector<16x1xf32>
    %134 = math.log %133 : vector<16x1xf32>
    %135 = arith.addf %128, %134 : vector<16x1xf32>
    %136 = arith.mulf %67, %127 : vector<16x1xf32>
    %cst_33 = arith.constant 1.000000e+00 : f32
    %137 = vector.broadcast %cst_33 : f32 to vector<16x1xf32>
    %138 = arith.subf %137, %67 : vector<16x1xf32>
    %139 = arith.mulf %138, %126 : vector<16x1xf32>
    %140 = arith.addf %136, %139 : vector<16x1xf32>
    %141 = arith.subf %135, %140 : vector<16x1xf32>
    %142 = arith.mulf %141, %69 : vector<16x1xf32>
    %143 = vector.shape_cast %142 : vector<16x1xf32> to vector<1x16x1xf32>
    %cst_34 = arith.constant dense<0.000000e+00> : vector<1xf32>
    %144 = vector.multi_reduction <add>, %143, %cst_34 [1, 2] : vector<1x16x1xf32> to vector<1xf32>
    %145 = vector.shape_cast %144 : vector<1xf32> to vector<1x1x1xf32>
    %146 = vector.extract %145[0, 0, 0] : f32 from vector<1x1x1xf32>
    %147 = vector.broadcast %146 : f32 to vector<1x1xf32>
    %148 = arith.addf %13, %91 : vector<1x1xf32>
    %149 = arith.addf %13, %125 : vector<1x1xf32>
    %150 = arith.addf %13, %147 : vector<1x1xf32>
    %151 = arith.addf %13, %103 : vector<1x1xf32>
    %152 = vector.shape_cast %69 : vector<16x1xf32> to vector<1x16x1xf32>
    %cst_35 = arith.constant dense<0.000000e+00> : vector<1xf32>
    %153 = vector.multi_reduction <add>, %152, %cst_35 [1, 2] : vector<1x16x1xf32> to vector<1xf32>
    %154 = vector.shape_cast %153 : vector<1xf32> to vector<1x1x1xf32>
    %155 = vector.extract %154[0, 0, 0] : f32 from vector<1x1x1xf32>
    %156 = vector.broadcast %155 : f32 to vector<1x1xf32>
    %157 = arith.addf %13, %156 : vector<1x1xf32>
    %158 = vector.extract_strided_slice %1 {offsets = [2, 0, 0], sizes = [2, 8, 128], strides = [1, 1, 1]} : vector<4x8x128xbf16> to vector<2x8x128xbf16>
    "tpu.trace_start"() <{level = 10 : i32, message = "bqd,bkd->bqk"}> : () -> ()
    %cst_36 = arith.constant dense<0.000000e+00> : vector<2x8x8xf32>
    %159 = tpu.matmul %0, %158, %cst_36 {dimension_numbers = #tpu.dot_dimension_numbers<[2], [2], [1], [1], [0, 0, 0, 1, 1, 1], [0], [0]>} : vector<2x8x128xbf16>, vector<2x8x128xbf16>, vector<2x8x8xf32> -> vector<2x8x8xf32>
    "tpu.trace_stop"() : () -> ()
    %cst_37 = arith.constant 0.0883883461 : f32
    %160 = vector.broadcast %cst_37 : f32 to vector<2x8x8xf32>
    %161 = arith.mulf %159, %160 : vector<2x8x8xf32>
    %cst_38 = arith.constant dense<0xFF800000> : vector<2x8xf32>
    %162 = vector.multi_reduction <maximumf>, %161, %cst_38 [2] : vector<2x8x8xf32> to vector<2x8xf32>
    %163 = vector.shape_cast %162 : vector<2x8xf32> to vector<2x8x1xf32>
    %164 = vector.broadcast %163 : vector<2x8x1xf32> to vector<2x8x8xf32>
    %165 = arith.subf %161, %164 : vector<2x8x8xf32>
    %166 = math.exp %165 : vector<2x8x8xf32>
    %cst_39 = arith.constant dense<0.000000e+00> : vector<2x8xf32>
    %167 = vector.multi_reduction <add>, %166, %cst_39 [2] : vector<2x8x8xf32> to vector<2x8xf32>
    %168 = vector.shape_cast %167 : vector<2x8xf32> to vector<2x8x1xf32>
    %169 = tpu.reciprocal %168 {approx = true} : vector<2x8x1xf32> -> vector<2x8x1xf32>
    %170 = vector.broadcast %169 : vector<2x8x1xf32> to vector<2x8x8xf32>
    %171 = arith.mulf %166, %170 : vector<2x8x8xf32>
    %172 = arith.truncf %171 : vector<2x8x8xf32> to vector<2x8x8xbf16>
    "tpu.trace_start"() <{level = 10 : i32, message = "bqk,bkd->bqd"}> : () -> ()
    %cst_40 = arith.constant dense<0.000000e+00> : vector<2x8x128xf32>
    %173 = tpu.matmul %172, %158, %cst_40 {dimension_numbers = #tpu.dot_dimension_numbers<[2], [1], [1], [2], [0, 0, 0, 1, 1, 2], [0], [0]>} : vector<2x8x8xbf16>, vector<2x8x128xbf16>, vector<2x8x128xf32> -> vector<2x8x128xf32>
    "tpu.trace_stop"() : () -> ()
    %174 = arith.addf %12, %173 : vector<2x8x128xf32>
    %175 = tpu.transpose %161, [0, 2, 1] : vector<2x8x8xf32> -> vector<2x8x8xf32>
    %cst_41 = arith.constant dense<0xFF800000> : vector<2x8xf32>
    %176 = vector.multi_reduction <maximumf>, %175, %cst_41 [2] : vector<2x8x8xf32> to vector<2x8xf32>
    %177 = vector.shape_cast %176 : vector<2x8xf32> to vector<2x8x1xf32>
    %178 = vector.broadcast %177 : vector<2x8x1xf32> to vector<2x8x8xf32>
    %179 = arith.subf %175, %178 : vector<2x8x8xf32>
    %180 = math.exp %179 : vector<2x8x8xf32>
    %cst_42 = arith.constant dense<0.000000e+00> : vector<2x8xf32>
    %181 = vector.multi_reduction <add>, %180, %cst_42 [2] : vector<2x8x8xf32> to vector<2x8xf32>
    %182 = vector.shape_cast %181 : vector<2x8xf32> to vector<2x8x1xf32>
    %183 = tpu.reciprocal %182 {approx = true} : vector<2x8x1xf32> -> vector<2x8x1xf32>
    %184 = vector.broadcast %183 : vector<2x8x1xf32> to vector<2x8x8xf32>
    %185 = arith.mulf %180, %184 : vector<2x8x8xf32>
    %186 = arith.extf %158 : vector<2x8x128xbf16> to vector<2x8x128xf32>
    %187 = arith.truncf %185 : vector<2x8x8xf32> to vector<2x8x8xbf16>
    "tpu.trace_start"() <{level = 10 : i32, message = "bqk,bkd->bqd"}> : () -> ()
    %cst_43 = arith.constant dense<0.000000e+00> : vector<2x8x128xf32>
    %188 = tpu.matmul %187, %0, %cst_43 {dimension_numbers = #tpu.dot_dimension_numbers<[2], [1], [1], [2], [0, 0, 0, 1, 1, 2], [0], [0]>} : vector<2x8x8xbf16>, vector<2x8x128xbf16>, vector<2x8x128xf32> -> vector<2x8x128xf32>
    "tpu.trace_stop"() : () -> ()
    %189 = arith.addf %186, %188 : vector<2x8x128xf32>
    %190 = vector.shape_cast %174 : vector<2x8x128xf32> to vector<16x128xf32>
    %191 = arith.truncf %190 : vector<16x128xf32> to vector<16x128xbf16>
    %cst_44 = arith.constant dense<0.000000e+00> : vector<16x4xf32>
    %192 = tpu.matmul %191, %5, %cst_44 {dimension_numbers = #tpu.dot_dimension_numbers<[1], [0], [0], [1], [0, 0, 1, 1], [], []>} : vector<16x128xbf16>, vector<128x4xbf16>, vector<16x4xf32> -> vector<16x4xf32>
    %193 = vector.shape_cast %189 : vector<2x8x128xf32> to vector<16x128xf32>
    %194 = arith.truncf %193 : vector<16x128xf32> to vector<16x128xbf16>
    %cst_45 = arith.constant dense<0.000000e+00> : vector<16x4xf32>
    %195 = tpu.matmul %194, %7, %cst_45 {dimension_numbers = #tpu.dot_dimension_numbers<[1], [0], [0], [1], [0, 0, 1, 1], [], []>} : vector<16x128xbf16>, vector<128x4xbf16>, vector<16x4xf32> -> vector<16x4xf32>
    %196 = vector.extract_strided_slice %192 {offsets = [0, 0], sizes = [16, 2], strides = [1, 1]} : vector<16x4xf32> to vector<16x2xf32>
    %197 = vector.extract_strided_slice %195 {offsets = [0, 0], sizes = [16, 2], strides = [1, 1]} : vector<16x4xf32> to vector<16x2xf32>
    %198 = arith.addf %196, %197 : vector<16x2xf32>
    %199 = vector.extract_strided_slice %8 {offsets = [0, 0], sizes = [1, 2], strides = [1, 1]} : vector<1x8xf32> to vector<1x2xf32>
    %200 = vector.broadcast %199 : vector<1x2xf32> to vector<16x2xf32>
    %201 = arith.addf %198, %200 : vector<16x2xf32>
    %202 = vector.extract_strided_slice %192 {offsets = [0, 2], sizes = [16, 2], strides = [1, 1]} : vector<16x4xf32> to vector<16x2xf32>
    %203 = vector.extract_strided_slice %8 {offsets = [0, 2], sizes = [1, 2], strides = [1, 1]} : vector<1x8xf32> to vector<1x2xf32>
    %204 = vector.broadcast %203 : vector<1x2xf32> to vector<16x2xf32>
    %205 = arith.addf %202, %204 : vector<16x2xf32>
    %206 = vector.extract_strided_slice %195 {offsets = [0, 2], sizes = [16, 2], strides = [1, 1]} : vector<16x4xf32> to vector<16x2xf32>
    %207 = vector.extract_strided_slice %8 {offsets = [0, 4], sizes = [1, 2], strides = [1, 1]} : vector<1x8xf32> to vector<1x2xf32>
    %208 = vector.broadcast %207 : vector<1x2xf32> to vector<16x2xf32>
    %209 = arith.addf %206, %208 : vector<16x2xf32>
    %210 = vector.extract_strided_slice %2 {offsets = [2, 0, 0], sizes = [2, 8, 1], strides = [1, 1, 1]} : vector<4x8x1xf32> to vector<2x8x1xf32>
    %211 = vector.shape_cast %210 : vector<2x8x1xf32> to vector<16x1xf32>
    %212 = vector.extract_strided_slice %3 {offsets = [2, 0, 0], sizes = [2, 8, 1], strides = [1, 1, 1]} : vector<4x8x1xf32> to vector<2x8x1xf32>
    %213 = vector.shape_cast %212 : vector<2x8x1xf32> to vector<16x1xf32>
    %214 = vector.extract_strided_slice %201 {offsets = [0, 0], sizes = [16, 1], strides = [1, 1]} : vector<16x2xf32> to vector<16x1xf32>
    %215 = vector.extract_strided_slice %201 {offsets = [0, 1], sizes = [16, 1], strides = [1, 1]} : vector<16x2xf32> to vector<16x1xf32>
    %216 = arith.maximumf %214, %215 : vector<16x1xf32>
    %217 = arith.subf %214, %216 : vector<16x1xf32>
    %218 = math.exp %217 : vector<16x1xf32>
    %219 = arith.subf %215, %216 : vector<16x1xf32>
    %220 = math.exp %219 : vector<16x1xf32>
    %221 = arith.addf %218, %220 : vector<16x1xf32>
    %222 = math.log %221 : vector<16x1xf32>
    %223 = arith.addf %216, %222 : vector<16x1xf32>
    %224 = arith.mulf %211, %215 : vector<16x1xf32>
    %cst_46 = arith.constant 1.000000e+00 : f32
    %225 = vector.broadcast %cst_46 : f32 to vector<16x1xf32>
    %226 = arith.subf %225, %211 : vector<16x1xf32>
    %227 = arith.mulf %226, %214 : vector<16x1xf32>
    %228 = arith.addf %224, %227 : vector<16x1xf32>
    %229 = arith.subf %223, %228 : vector<16x1xf32>
    %230 = arith.mulf %229, %213 : vector<16x1xf32>
    %231 = vector.shape_cast %230 : vector<16x1xf32> to vector<1x16x1xf32>
    %cst_47 = arith.constant dense<0.000000e+00> : vector<1xf32>
    %232 = vector.multi_reduction <add>, %231, %cst_47 [1, 2] : vector<1x16x1xf32> to vector<1xf32>
    %233 = vector.shape_cast %232 : vector<1xf32> to vector<1x1x1xf32>
    %234 = vector.extract %233[0, 0, 0] : f32 from vector<1x1x1xf32>
    %235 = vector.broadcast %234 : f32 to vector<1x1xf32>
    %236 = arith.cmpf ogt, %215, %214 : vector<16x1xf32>
    %237 = arith.extui %236 : vector<16x1xi1> to vector<16x1xi32>
    %238 = arith.sitofp %237 : vector<16x1xi32> to vector<16x1xf32>
    %239 = arith.cmpf oeq, %238, %211 : vector<16x1xf32>
    %240 = arith.extui %239 : vector<16x1xi1> to vector<16x1xi32>
    %241 = arith.sitofp %240 : vector<16x1xi32> to vector<16x1xf32>
    %242 = arith.mulf %241, %213 : vector<16x1xf32>
    %243 = vector.shape_cast %242 : vector<16x1xf32> to vector<1x16x1xf32>
    %cst_48 = arith.constant dense<0.000000e+00> : vector<1xf32>
    %244 = vector.multi_reduction <add>, %243, %cst_48 [1, 2] : vector<1x16x1xf32> to vector<1xf32>
    %245 = vector.shape_cast %244 : vector<1xf32> to vector<1x1x1xf32>
    %246 = vector.extract %245[0, 0, 0] : f32 from vector<1x1x1xf32>
    %247 = vector.broadcast %246 : f32 to vector<1x1xf32>
    %248 = vector.extract_strided_slice %205 {offsets = [0, 0], sizes = [16, 1], strides = [1, 1]} : vector<16x2xf32> to vector<16x1xf32>
    %249 = vector.extract_strided_slice %205 {offsets = [0, 1], sizes = [16, 1], strides = [1, 1]} : vector<16x2xf32> to vector<16x1xf32>
    %250 = arith.maximumf %248, %249 : vector<16x1xf32>
    %251 = arith.subf %248, %250 : vector<16x1xf32>
    %252 = math.exp %251 : vector<16x1xf32>
    %253 = arith.subf %249, %250 : vector<16x1xf32>
    %254 = math.exp %253 : vector<16x1xf32>
    %255 = arith.addf %252, %254 : vector<16x1xf32>
    %256 = math.log %255 : vector<16x1xf32>
    %257 = arith.addf %250, %256 : vector<16x1xf32>
    %258 = arith.mulf %211, %249 : vector<16x1xf32>
    %cst_49 = arith.constant 1.000000e+00 : f32
    %259 = vector.broadcast %cst_49 : f32 to vector<16x1xf32>
    %260 = arith.subf %259, %211 : vector<16x1xf32>
    %261 = arith.mulf %260, %248 : vector<16x1xf32>
    %262 = arith.addf %258, %261 : vector<16x1xf32>
    %263 = arith.subf %257, %262 : vector<16x1xf32>
    %264 = arith.mulf %263, %213 : vector<16x1xf32>
    %265 = vector.shape_cast %264 : vector<16x1xf32> to vector<1x16x1xf32>
    %cst_50 = arith.constant dense<0.000000e+00> : vector<1xf32>
    %266 = vector.multi_reduction <add>, %265, %cst_50 [1, 2] : vector<1x16x1xf32> to vector<1xf32>
    %267 = vector.shape_cast %266 : vector<1xf32> to vector<1x1x1xf32>
    %268 = vector.extract %267[0, 0, 0] : f32 from vector<1x1x1xf32>
    %269 = vector.broadcast %268 : f32 to vector<1x1xf32>
    %270 = vector.extract_strided_slice %209 {offsets = [0, 0], sizes = [16, 1], strides = [1, 1]} : vector<16x2xf32> to vector<16x1xf32>
    %271 = vector.extract_strided_slice %209 {offsets = [0, 1], sizes = [16, 1], strides = [1, 1]} : vector<16x2xf32> to vector<16x1xf32>
    %272 = arith.maximumf %270, %271 : vector<16x1xf32>
    %273 = arith.subf %270, %272 : vector<16x1xf32>
    %274 = math.exp %273 : vector<16x1xf32>
    %275 = arith.subf %271, %272 : vector<16x1xf32>
    %276 = math.exp %275 : vector<16x1xf32>
    %277 = arith.addf %274, %276 : vector<16x1xf32>
    %278 = math.log %277 : vector<16x1xf32>
    %279 = arith.addf %272, %278 : vector<16x1xf32>
    %280 = arith.mulf %211, %271 : vector<16x1xf32>
    %cst_51 = arith.constant 1.000000e+00 : f32
    %281 = vector.broadcast %cst_51 : f32 to vector<16x1xf32>
    %282 = arith.subf %281, %211 : vector<16x1xf32>
    %283 = arith.mulf %282, %270 : vector<16x1xf32>
    %284 = arith.addf %280, %283 : vector<16x1xf32>
    %285 = arith.subf %279, %284 : vector<16x1xf32>
    %286 = arith.mulf %285, %213 : vector<16x1xf32>
    %287 = vector.shape_cast %286 : vector<16x1xf32> to vector<1x16x1xf32>
    %cst_52 = arith.constant dense<0.000000e+00> : vector<1xf32>
    %288 = vector.multi_reduction <add>, %287, %cst_52 [1, 2] : vector<1x16x1xf32> to vector<1xf32>
    %289 = vector.shape_cast %288 : vector<1xf32> to vector<1x1x1xf32>
    %290 = vector.extract %289[0, 0, 0] : f32 from vector<1x1x1xf32>
    %291 = vector.broadcast %290 : f32 to vector<1x1xf32>
    %292 = arith.addf %148, %235 : vector<1x1xf32>
    %293 = arith.addf %149, %269 : vector<1x1xf32>
    %294 = arith.addf %150, %291 : vector<1x1xf32>
    %295 = arith.addf %151, %247 : vector<1x1xf32>
    %296 = vector.shape_cast %213 : vector<16x1xf32> to vector<1x16x1xf32>
    %cst_53 = arith.constant dense<0.000000e+00> : vector<1xf32>
    %297 = vector.multi_reduction <add>, %296, %cst_53 [1, 2] : vector<1x16x1xf32> to vector<1xf32>
    %298 = vector.shape_cast %297 : vector<1xf32> to vector<1x1x1xf32>
    %299 = vector.extract %298[0, 0, 0] : f32 from vector<1x1x1xf32>
    %300 = vector.broadcast %299 : f32 to vector<1x1xf32>
    %301 = arith.addf %157, %300 : vector<1x1xf32>
    %c0_54 = arith.constant 0 : index
    %302 = memref.load %arg11[%c0_54] : memref<6xf32, #tpu.memory_space<smem>>
    %303 = vector.extract %292[0, 0] : f32 from vector<1x1xf32>
    %304 = arith.addf %302, %303 : f32
    %c0_55 = arith.constant 0 : index
    %305 = memref.load %arg11[%c0_55] : memref<6xf32, #tpu.memory_space<smem>>
    memref.store %304, %arg11[%c0_55] : memref<6xf32, #tpu.memory_space<smem>>
    %c1 = arith.constant 1 : index
    %306 = memref.load %arg11[%c1] : memref<6xf32, #tpu.memory_space<smem>>
    %307 = vector.extract %293[0, 0] : f32 from vector<1x1xf32>
    %308 = arith.addf %306, %307 : f32
    %c1_56 = arith.constant 1 : index
    %309 = memref.load %arg11[%c1_56] : memref<6xf32, #tpu.memory_space<smem>>
    memref.store %308, %arg11[%c1_56] : memref<6xf32, #tpu.memory_space<smem>>
    %c2 = arith.constant 2 : index
    %310 = memref.load %arg11[%c2] : memref<6xf32, #tpu.memory_space<smem>>
    %311 = vector.extract %294[0, 0] : f32 from vector<1x1xf32>
    %312 = arith.addf %310, %311 : f32
    %c2_57 = arith.constant 2 : index
    %313 = memref.load %arg11[%c2_57] : memref<6xf32, #tpu.memory_space<smem>>
    memref.store %312, %arg11[%c2_57] : memref<6xf32, #tpu.memory_space<smem>>
    %c3 = arith.constant 3 : index
    %314 = memref.load %arg11[%c3] : memref<6xf32, #tpu.memory_space<smem>>
    %315 = vector.extract %295[0, 0] : f32 from vector<1x1xf32>
    %316 = arith.addf %314, %315 : f32
    %c3_58 = arith.constant 3 : index
    %317 = memref.load %arg11[%c3_58] : memref<6xf32, #tpu.memory_space<smem>>
    memref.store %316, %arg11[%c3_58] : memref<6xf32, #tpu.memory_space<smem>>
    %c4 = arith.constant 4 : index
    %318 = memref.load %arg11[%c4] : memref<6xf32, #tpu.memory_space<smem>>
    %319 = vector.extract %301[0, 0] : f32 from vector<1x1xf32>
    %320 = arith.addf %318, %319 : f32
    %c4_59 = arith.constant 4 : index
    %321 = memref.load %arg11[%c4_59] : memref<6xf32, #tpu.memory_space<smem>>
    memref.store %320, %arg11[%c4_59] : memref<6xf32, #tpu.memory_space<smem>>
    %c0_60 = arith.constant 0 : index
    %322 = memref.load %arg11[%c0_60] : memref<6xf32, #tpu.memory_space<smem>>
    %c0_61 = arith.constant 0 : index
    %323 = memref.load %arg10[%c0_61] : memref<6xf32, #tpu.memory_space<smem>>
    memref.store %322, %arg10[%c0_61] : memref<6xf32, #tpu.memory_space<smem>>
    %c1_62 = arith.constant 1 : index
    %324 = memref.load %arg11[%c1_62] : memref<6xf32, #tpu.memory_space<smem>>
    %c1_63 = arith.constant 1 : index
    %325 = memref.load %arg10[%c1_63] : memref<6xf32, #tpu.memory_space<smem>>
    memref.store %324, %arg10[%c1_63] : memref<6xf32, #tpu.memory_space<smem>>
    %c2_64 = arith.constant 2 : index
    %326 = memref.load %arg11[%c2_64] : memref<6xf32, #tpu.memory_space<smem>>
    %c2_65 = arith.constant 2 : index
    %327 = memref.load %arg10[%c2_65] : memref<6xf32, #tpu.memory_space<smem>>
    memref.store %326, %arg10[%c2_65] : memref<6xf32, #tpu.memory_space<smem>>
    %c3_66 = arith.constant 3 : index
    %328 = memref.load %arg11[%c3_66] : memref<6xf32, #tpu.memory_space<smem>>
    %c3_67 = arith.constant 3 : index
    %329 = memref.load %arg10[%c3_67] : memref<6xf32, #tpu.memory_space<smem>>
    memref.store %328, %arg10[%c3_67] : memref<6xf32, #tpu.memory_space<smem>>
    %c4_68 = arith.constant 4 : index
    %330 = memref.load %arg11[%c4_68] : memref<6xf32, #tpu.memory_space<smem>>
    %c4_69 = arith.constant 4 : index
    %331 = memref.load %arg10[%c4_69] : memref<6xf32, #tpu.memory_space<smem>>
    memref.store %330, %arg10[%c4_69] : memref<6xf32, #tpu.memory_space<smem>>
    %c5 = arith.constant 5 : index
    %332 = memref.load %arg11[%c5] : memref<6xf32, #tpu.memory_space<smem>>
    %c5_70 = arith.constant 5 : index
    %333 = memref.load %arg10[%c5_70] : memref<6xf32, #tpu.memory_space<smem>>
    memref.store %332, %arg10[%c5_70] : memref<6xf32, #tpu.memory_space<smem>>
    return
  }
  func.func @transform_0(%arg0: i32) -> (i32, i32, i32) {
    %c0_i32 = arith.constant 0 : i32
    %c0_i32_0 = arith.constant 0 : i32
    %c0_i32_1 = arith.constant 0 : i32
    %c0_i32_2 = arith.constant 0 : i32
    return %c0_i32, %c0_i32_0, %c0_i32_1 : i32, i32, i32
  }
  func.func @transform_1(%arg0: i32) -> (i32, i32, i32) {
    %c0_i32 = arith.constant 0 : i32
    %c0_i32_0 = arith.constant 0 : i32
    %c0_i32_1 = arith.constant 0 : i32
    return %arg0, %c0_i32, %c0_i32_0 : i32, i32, i32
  }
  func.func @transform_2(%arg0: i32) -> (i32, i32, i32) {
    %c0_i32 = arith.constant 0 : i32
    %c0_i32_0 = arith.constant 0 : i32
    %c0_i32_1 = arith.constant 0 : i32
    return %arg0, %c0_i32, %c0_i32_0 : i32, i32, i32
  }
  func.func @transform_3(%arg0: i32) -> (i32, i32, i32) {
    %c0_i32 = arith.constant 0 : i32
    %c0_i32_0 = arith.constant 0 : i32
    %c0_i32_1 = arith.constant 0 : i32
    return %arg0, %c0_i32, %c0_i32_0 : i32, i32, i32
  }
  func.func @transform_4(%arg0: i32) -> (i32, i32) {
    %c0_i32 = arith.constant 0 : i32
    %c0_i32_0 = arith.constant 0 : i32
    %c0_i32_1 = arith.constant 0 : i32
    return %c0_i32, %c0_i32_0 : i32, i32
  }
  func.func @transform_5(%arg0: i32) -> (i32, i32) {
    %c0_i32 = arith.constant 0 : i32
    %c0_i32_0 = arith.constant 0 : i32
    %c0_i32_1 = arith.constant 0 : i32
    return %c0_i32, %c0_i32_0 : i32, i32
  }
  func.func @transform_6(%arg0: i32) -> (i32, i32) {
    %c0_i32 = arith.constant 0 : i32
    %c0_i32_0 = arith.constant 0 : i32
    %c0_i32_1 = arith.constant 0 : i32
    return %c0_i32, %c0_i32_0 : i32, i32
  }
  func.func @transform_7(%arg0: i32) -> (i32, i32) {
    %c0_i32 = arith.constant 0 : i32
    %c0_i32_0 = arith.constant 0 : i32
    %c0_i32_1 = arith.constant 0 : i32
    return %c0_i32, %c0_i32_0 : i32, i32
  }
  func.func @transform_8(%arg0: i32) -> (i32, i32) {
    %c0_i32 = arith.constant 0 : i32
    %c0_i32_0 = arith.constant 0 : i32
    %c0_i32_1 = arith.constant 0 : i32
    return %c0_i32, %c0_i32_0 : i32, i32
  }
  func.func @transform_9(%arg0: i32) -> i32 {
    %c0_i32 = arith.constant 0 : i32
    %c0_i32_0 = arith.constant 0 : i32
    return %c0_i32 : i32
  }
}

</mosaic_0001>

<bundles_post_ra>
// kernel: loconet_forward.3
= control target key start
LH: loop header
LB: loop body
LE: loop exit
PB: predicated region body
PF: predicated region fallthrough
CT: control target
= control target key end

     0   :  { %8 = vsyncpa [#allocation3], 0  ;;  %s436_s12 = smov 0   ;;  %s478_s0 = inlined_call_operand.vmem [shape: f32[16,160], index: 0, kind: input, shape index: {}]   ;;  %s479_s1 = inlined_call_operand.hbm [shape: f32[160,128], index: 1, kind: input, shape index: {}]   ;;  %s480_s2 = inlined_call_operand.vmem [shape: f32[1,128], index: 2, kind: input, shape index: {}]   ;;  %s481_s3 = inlined_call_operand.vmem [shape: bf16[16,128], index: 3, kind: output, shape index: {}]  }
   0x1 LB: > { %s337_s13 = sadd.s32 4294967295, %s410_s12   ;;  %p339_p0 = scmp.ge.s32.totalorder %s410_s12, 1  ;;  %s410_s12 = sphi %s436_s12, %s14_s12  }
   0x2   : > { %p113_p1 = scmp.lt.s32.totalorder %s410_s12, 3  ;;  %s412_s14 = smov [#allocation2]  }
   0x3   : > { %s125_s15 = sshll.u32 %s412_s14, 4  ;;  %p360_p3 = scmp.eq.s32.totalorder %s337_s13, 0  ;;  %s126_s15 = int_to_ptr.vmem [resolvable:$true] %s125_s15 }
   0x4   : > { %p444_p2 = pnand %p339_p0, %p113_p1  ;;  %s385_s17 = scalar_lea.vmem %s126_s15, 2560 }
   0x5   : > { %p386_p7 = scmp.ne.s32.totalorder %s126_s15, %s385_s17  ;;  %p393_p10 = scmp.lt.s32.totalorder %s126_s15, %s126_s15 }
   0x6   : > { %p356_p4 = pneg %p444_p2  ;;  %p394_p11 = scmp.lt.s32.totalorder %s385_s17, %s385_s17 }
   0x8   : > { %p357_p5 = pnand %p360_p3, %p356_p4  ;;  %p395_p12 = por %p394_p11, %p393_p10 }
   0xa   : > { %p376_p6 = pneg %p357_p5 }
   0xc   : > { %p388_p8 = pnand %p386_p7, %p376_p6 }
   0xe   : > { %p389_p9 = pneg %p388_p8 }
  0x10   : > { %p396_p13 = pnand %p395_p12, %p389_p9 }
  0x12   : > { %399 = shalt.err (!%p396_p13)
}
  0x13   : > { %s413_s18 = smov 128   ;;  %s414_s19 = smov 8  }
  0x14   : > { %359 = dma.hbm_to_vmem [thread:$0]  (!%p357_p5), %s479_s1, 2560, %s126_s15, [#allocation3], %s413_s18, %s413_s18, %s414_s19  }
  0x15   : > { %152 = sbr.rel (%p444_p2) target bundleno = 268 (0x10c), region = 32 }
  0x1a   : > { %405 = dma.done.wait (%p360_p3), [#allocation3], 2560  }
  0x1b   : > { %407 = vsyncadd (%p360_p3), [#allocation3], 4294964736  ;;  %p175_p0 = scmp.lt.s32.totalorder %s337_s13, 1  ;;  %v415_v0 = vmov 0   ;;  %v203_v1 = vld [vmem:[#allocation2 + $0x70] sm:$0xff]  ;;  %v204_v2 = vld [vmem:[#allocation2 + $0x78] sm:$0xff] }
  0x1c   : > { %230 = vmatprep.subr.bf16.mxu0 %v415_v0  ;;  %v201_v3 = vld [vmem:[#allocation2 + $0x60] sm:$0xff]  ;;  %v216_v4 = vpack.c.bf16 %v204_v2, %v203_v1  ;;  %v202_v5 = vld [vmem:[#allocation2 + $0x68] sm:$0xff]  ;;  %v199_v7 = vld [vmem:[#allocation2 + $0x50] sm:$0xff]  ;;  %vm226_vm0 = vcmask 261120  }
  0x1d   : > { %s484_s13 = smov (!%p175_p0, %s337_s13), 1  ;;  %v215_v6 = vpack.c.bf16 %v202_v5, %v201_v3  ;;  %v200_v8 = vld [vmem:[#allocation2 + $0x58] sm:$0xff]  ;;  %v197_v11 = vld [vmem:[#allocation2 + $0x40] sm:$0xff]  ;;  %v198_v12 = vld [vmem:[#allocation2 + $0x48] sm:$0xff] }
  0x1e   : > { %s351_s22 = sshll.u32 %s484_s13, 4  ;;  %231 = vmatpush1.bf16.msra.mxu0 %v216_v4  ;;  %v214_v9 = vpack.c.bf16 %v200_v8, %v199_v7  ;;  %v213_v14 = vpack.c.bf16 %v198_v12, %v197_v11  ;;  %v195_v15 = vld [vmem:[#allocation2 + $0x30] sm:$0xff]  ;;  %v196_v16 = vld [vmem:[#allocation2 + $0x38] sm:$0xff]  ;;  %v193_v18 = vld [vmem:[#allocation2 + $0x20] sm:$0xff]  ;;  %s346_s28 = sshll.u32 %s484_s13, 2 }
  0x1f   : > { %232 = vmatprep.subr.bf16.mxu0 %v415_v0  ;;  %s464_s25 = scalar_lea.vmem %s478_s0, %s351_s22  ;;  %v212_v17 = vpack.c.bf16 %v196_v16, %v195_v15  ;;  %v194_v19 = vld [vmem:[#allocation2 + $0x28] sm:$0xff]  ;;  %v191_v21 = vld [vmem:[#allocation2 + $0x10] sm:$0xff]  ;;  %v192_v22 = vld [vmem:[#allocation2 + $0x18] sm:$0xff]  ;;  %s183_s4 = scalar_lea.vmem %s481_s3, %s346_s28 }
  0x20   : > { %v186_v10 = vld [vmem:[%s464_s25 + $0x8] sm:$0xff]  ;;  %v211_v20 = vpack.c.bf16 %v194_v19, %v193_v18  ;;  %v210_v23 = vpack.c.bf16 %v192_v22, %v191_v21  ;;  %v189_v24 = vld [vmem:[#allocation2] sm:$0xff]  ;;  %v207_v27 = vld [vmem:[#allocation2 + $0x90] sm:$0xff] }
  0x21   : > { %v188_v13 = vpack.c.bf16 %v186_v10, %v186_v10  ;;  %v190_v25 = vld [vmem:[#allocation2 + $0x8] sm:$0xff]  ;;  %v208_v28 = vld [vmem:[#allocation2 + $0x98] sm:$0xff]  ;;  %v205_v30 = vld [vmem:[#allocation2 + $0x80] sm:$0xff] }
  0x22   : > { %233 = vmatpush1.bf16.msra.mxu0 %v215_v6  ;;  %v209_v26 = vpack.c.bf16 %v190_v25, %v189_v24  ;;  %v218_v29 = vpack.c.bf16 %v208_v28, %v207_v27  ;;  %v206_v31 = vld [vmem:[#allocation2 + $0x88] sm:$0xff]  ;;  %v185_v33 = vld [vmem:[%s464_s25] sm:$0xff] }
  0x23   : > { %234 = vmatprep.subr.bf16.mxu0 %v415_v0  ;;  %348 = vmatprep.mubr.msk.bf16.mxu0 %vm226_vm0, %v188_v13  ;;  %v217_v32 = vpack.c.bf16 %v206_v31, %v205_v30  ;;  %v187_v34 = vpack.c.bf16 %v185_v33, %v185_v33  ;;  %v347_v35 = vld [vmem:[%s480_s2] ss:$0 sm:$0xff] }
  0x26   : > { %235 = vmatpush1.bf16.msra.mxu0 %v214_v9 }
  0x27   : > { %236 = vmatprep.subr.bf16.mxu0 %v415_v0 }
  0x2a   : > { %237 = vmatpush1.bf16.msra.mxu0 %v213_v14 }
  0x2b   : > { %238 = vmatprep.subr.bf16.mxu0 %v415_v0 }
  0x2e   : > { %239 = vmatpush1.bf16.msra.mxu0 %v212_v17 }
  0x2f   : > { %240 = vmatprep.subr.bf16.mxu0 %v415_v0 }
  0x32   : > { %241 = vmatpush1.bf16.msra.mxu0 %v211_v20 }
  0x33   : > { %242 = vmatprep.subr.bf16.mxu0 %v415_v0 }
  0x36   : > { %243 = vmatpush1.bf16.msra.mxu0 %v210_v23 }
  0x37   : > { %244 = vmatprep.subr.bf16.mxu0 %v415_v0 }
  0x3a   : > { %245 = vmatpush1.bf16.msra.mxu0 %v209_v26 }
  0x3b   : > { %258 = vmatprep.subr.bf16.mxu0 %v415_v0 }
  0x3e   : > { %259 = vmatpush2.bf16.msra.mxu0 %v218_v29 }
  0x3f   : > { %260 = vmatprep.subr.bf16.mxu0 %v415_v0 }
  0x42   : > { %261 = vmatpush2.bf16.msra.mxu0 %v217_v32 }
  0x45   : > { %263 = vmatmul.mubr.bf16.vlgmr.msra.gmra.mxu0 %v187_v34 }
 0x105   : > { %v264_v36 = vpop.f32.mrf.mxu0 }
 0x106   : > { %v265_v37 = vadd.f32 %v347_v35, %v264_v36 }
 0x107   : > { %v266_v38 = vpop.f32.mrf.mxu0 }
 0x108   : > { %v270_v39 = vpack.c.bf16 %v265_v37, %v265_v37 }
 0x109   : > { %v267_v40 = vpop.f32.mrf.mxu0 }
 0x10a   : > { %271 = vst [vmem:[%s183_s4] sm:$0xf] %v270_v39 }
 0x10b   : > { %v268_v41 = vpop.f32.mrf.mxu0 }
 0x10c PF: > { %s14_s12 = sadd.s32 1, %s410_s12  }
 0x10d   : > { %p11_p1 = scmp.ge.s32.totalorder %s14_s12, 4  }
 0x10f   :  { %13 = sbr.rel (!%p11_p1) target bundleno = 1 (0x1), region = 67 }
 0x114   :  { %291 = vsyncpa [#allocation3], 1 }
 0x115   :  { %293 = vsyncpa [#allocation3 + $0x1], 1 }

// kernel: loconet_forward.4
= control target key start
LH: loop header
LB: loop body
LE: loop exit
PB: predicated region body
PF: predicated region fallthrough
CT: control target
= control target key end

     0   :  { %s427_s12 = smov 0   ;;  %s553_s0 = inlined_call_operand.vmem [shape: f32[32,256], index: 0, kind: input, shape index: {}]   ;;  %s554_s1 = inlined_call_operand.vmem [shape: f32[256,128], index: 1, kind: input, shape index: {}]   ;;  %s555_s2 = inlined_call_operand.vmem [shape: f32[1,128], index: 2, kind: input, shape index: {}]   ;;  %s556_s3 = inlined_call_operand.vmem [shape: bf16[32,128], index: 3, kind: output, shape index: {}]  }
   0x1 LB: > { %s346_s13 = sadd.s32 4294967295, %s405_s12   ;;  %p350_p0 = scmp.ge.s32.totalorder %s405_s12, 1  ;;  %s405_s12 = sphi %s427_s12, %s13_s12  }
   0x2   : > { %p139_p1 = scmp.lt.s32.totalorder %s405_s12, 3 }
   0x4   : > { %p140_p2 = pnand %p350_p0, %p139_p1 }
   0x5   : > { %s351_s20 = sshll.u32 (!%p140_p2), %s346_s13, 1 }
   0x6   : > { %143 = sbr.rel (%p140_p2) target bundleno = 252 (0xfc), region = 32  ;;  %p165_p3 = scmp.lt.s32.totalorder (!%p140_p2), %s351_s20, 3 }
   0xb   : > { %v214_v0 = vld [vmem:[%s554_s1 + $0xf0] sm:$0xff]  ;;  %v215_v1 = vld [vmem:[%s554_s1 + $0xf8] sm:$0xff]  ;;  %v212_v5 = vld [vmem:[%s554_s1 + $0xe0] sm:$0xff]  ;;  %s558_s20 = smov (!%p165_p3, %s351_s20), 3 }
   0xc   : > { %v198_v2 = vld [vmem:[%s554_s1 + $0x70] sm:$0xff]  ;;  %v231_v3 = vpack.c.bf16 %v215_v1, %v214_v0  ;;  %v199_v4 = vld [vmem:[%s554_s1 + $0x78] sm:$0xff]  ;;  %v213_v6 = vld [vmem:[%s554_s1 + $0xe8] sm:$0xff]  ;;  %s361_s13 = sshll.u32 %s558_s20, 4  ;;  %s355_s9 = sshll.u32 %s558_s20, 2 }
   0xd   : > { %v223_v7 = vpack.c.bf16 %v199_v4, %v198_v2  ;;  %v230_v8 = vpack.c.bf16 %v213_v6, %v212_v5  ;;  %v196_v9 = vld [vmem:[%s554_s1 + $0x60] sm:$0xff]  ;;  %v197_v10 = vld [vmem:[%s554_s1 + $0x68] sm:$0xff]  ;;  %v210_v11 = vld [vmem:[%s554_s1 + $0xd0] sm:$0xff]  ;;  %s483_s21 = scalar_lea.vmem %s553_s0, %s361_s13 }
   0xe   : > { %369 = vmatprep.subr.bf16.mxu0 %v231_v3  ;;  %v211_v12 = vld [vmem:[%s554_s1 + $0xd8] sm:$0xff]  ;;  %v222_v13 = vpack.c.bf16 %v197_v10, %v196_v9  ;;  %v194_v15 = vld [vmem:[%s554_s1 + $0x50] sm:$0xff]  ;;  %v208_v17 = vld [vmem:[%s554_s1 + $0xc0] sm:$0xff] }
   0xf   : > { %370 = vmatpush3.bf16.msra.mxu0 %v223_v7  ;;  %v229_v14 = vpack.c.bf16 %v211_v12, %v210_v11  ;;  %v195_v16 = vld [vmem:[%s554_s1 + $0x58] sm:$0xff]  ;;  %v209_v18 = vld [vmem:[%s554_s1 + $0xc8] sm:$0xff]  ;;  %v192_v21 = vld [vmem:[%s554_s1 + $0x40] sm:$0xff] }
  0x10   : > { %371 = vmatprep.subr.bf16.mxu0 %v230_v8  ;;  %v221_v19 = vpack.c.bf16 %v195_v16, %v194_v15  ;;  %v228_v20 = vpack.c.bf16 %v209_v18, %v208_v17  ;;  %v193_v22 = vld [vmem:[%s554_s1 + $0x48] sm:$0xff]  ;;  %v206_v23 = vld [vmem:[%s554_s1 + $0xb0] sm:$0xff]  ;;  %v207_v24 = vld [vmem:[%s554_s1 + $0xb8] sm:$0xff] }
  0x11   : > { %v179_v25 = vld [vmem:[%s483_s21 + $0x8] sm:$0xff]  ;;  %v181_v26 = vld [vmem:[%s483_s21 + $0x18] sm:$0xff]  ;;  %v220_v27 = vpack.c.bf16 %v193_v22, %v192_v21  ;;  %v227_v29 = vpack.c.bf16 %v207_v24, %v206_v23  ;;  %v190_v30 = vld [vmem:[%s554_s1 + $0x30] sm:$0xff] }
  0x12   : > { %v183_v28 = vpack.c.bf16 %v181_v26, %v179_v25  ;;  %v191_v31 = vld [vmem:[%s554_s1 + $0x38] sm:$0xff]  ;;  %v204_v32 = vld [vmem:[%s554_s1 + $0xa0] sm:$0xff]  ;;  %v205_v33 = vld [vmem:[%s554_s1 + $0xa8] sm:$0xff] }
  0x13   : > { %372 = vmatpush3.bf16.msra.mxu0 %v222_v13  ;;  %v219_v34 = vpack.c.bf16 %v191_v31, %v190_v30  ;;  %v226_v35 = vpack.c.bf16 %v205_v33, %v204_v32  ;;  %v188_v36 = vld [vmem:[%s554_s1 + $0x20] sm:$0xff]  ;;  %v189_v37 = vld [vmem:[%s554_s1 + $0x28] sm:$0xff]  ;;  %v202_v38 = vld [vmem:[%s554_s1 + $0x90] sm:$0xff] }
  0x14   : > { %373 = vmatprep.subr.bf16.mxu0 %v229_v14  ;;  %271 = vmatprep.mubr.bf16.mxu0 %v183_v28  ;;  %v203_v39 = vld [vmem:[%s554_s1 + $0x98] sm:$0xff]  ;;  %v218_v40 = vpack.c.bf16 %v189_v37, %v188_v36  ;;  %v186_v42 = vld [vmem:[%s554_s1 + $0x10] sm:$0xff]  ;;  %v200_v44 = vld [vmem:[%s554_s1 + $0x80] sm:$0xff] }
  0x15   : > { %v225_v41 = vpack.c.bf16 %v203_v39, %v202_v38  ;;  %v187_v43 = vld [vmem:[%s554_s1 + $0x18] sm:$0xff]  ;;  %v201_v45 = vld [vmem:[%s554_s1 + $0x88] sm:$0xff]  ;;  %v184_v48 = vld [vmem:[%s554_s1] sm:$0xff] }
  0x16   : > { %v217_v46 = vpack.c.bf16 %v187_v43, %v186_v42  ;;  %v224_v47 = vpack.c.bf16 %v201_v45, %v200_v44  ;;  %v185_v49 = vld [vmem:[%s554_s1 + $0x8] sm:$0xff]  ;;  %v178_v51 = vld [vmem:[%s483_s21] sm:$0xff]  ;;  %v180_v52 = vld [vmem:[%s483_s21 + $0x10] sm:$0xff]  ;;  %s175_s21 = scalar_lea.vmem %s556_s3, %s355_s9 }
  0x17   : > { %374 = vmatpush3.bf16.msra.mxu0 %v221_v19  ;;  %v216_v50 = vpack.c.bf16 %v185_v49, %v184_v48  ;;  %v182_v53 = vpack.c.bf16 %v180_v52, %v178_v51  ;;  %v356_v58 = vld [vmem:[%s555_s2] ss:$0 sm:$0xff] }
  0x18   : > { %375 = vmatprep.subr.bf16.mxu0 %v228_v20 }
  0x1b   : > { %376 = vmatpush3.bf16.msra.mxu0 %v220_v27 }
  0x1c   : > { %377 = vmatprep.subr.bf16.mxu0 %v227_v29 }
  0x1f   : > { %378 = vmatpush3.bf16.msra.mxu0 %v219_v34 }
  0x20   : > { %379 = vmatprep.subr.bf16.mxu0 %v226_v35 }
  0x23   : > { %380 = vmatpush3.bf16.msra.mxu0 %v218_v40 }
  0x24   : > { %381 = vmatprep.subr.bf16.mxu0 %v225_v41 }
  0x27   : > { %382 = vmatpush3.bf16.msra.mxu0 %v217_v46 }
  0x28   : > { %383 = vmatprep.subr.bf16.mxu0 %v224_v47 }
  0x2b   : > { %384 = vmatpush3.bf16.msra.mxu0 %v216_v50 }
  0x2e   : > { %272 = vmatmul.mubr.bf16.vlgmr.msra.gmra.mxu0 %v182_v53 }
  0xee   : > { %v385_v54 = vpop.f32.mrf.mxu0 }
  0xf0   : > { %v386_v55 = vpop.f32.mrf.mxu0 }
  0xf1   : > { %v387_v57 = vadd.f32 %v386_v55, %v385_v54 }
  0xf2   : > { %v388_v56 = vpop.f32.mrf.mxu0 }
  0xf3   : > { %v274_v61 = vadd.f32 %v387_v57, %v356_v58 }
  0xf4   : > { %v389_v59 = vpop.f32.mrf.mxu0 }
  0xf5   : > { %v390_v60 = vadd.f32 %v389_v59, %v388_v56 }
  0xf7   : > { %v277_v62 = vadd.f32 %v390_v60, %v356_v58 }
  0xf9   : > { %v367_v63 = vpack.c.bf16 %v277_v62, %v274_v61 }
  0xfb   : > { %368 = vst [vmem:[%s175_s21] sm:$0xff] %v367_v63  }
  0xfc PF: > { %s13_s12 = sadd.s32 1, %s405_s12  }
  0xfd   : > { %p10_p4 = scmp.ge.s32.totalorder %s13_s12, 4  }
  0xff   :  { %12 = sbr.rel (!%p10_p4) target bundleno = 1 (0x1), region = 62 }

// kernel: loconet_forward.5
= control target key start
LH: loop header
LB: loop body
LE: loop exit
PB: predicated region body
PF: predicated region fallthrough
CT: control target
= control target key end

     0   :  { %v2356_v4 = vmov 0.0   ;;  %vm2357_vm0 = vmmov 0   ;;  %s3288_s0 = inlined_call_operand.vmem [shape: bf16[2,8,128], index: 0, kind: input, shape index: {}]   ;;  %s3289_s1 = inlined_call_operand.vmem [shape: bf16[4,8,128], index: 1, kind: input, shape index: {}]   ;;  %s3290_s2 = inlined_call_operand.vmem [shape: f32[4,8,1], index: 2, kind: input, shape index: {}]   ;;  %s3291_s3 = inlined_call_operand.vmem [shape: f32[4,8,1], index: 3, kind: input, shape index: {}]   ;;  %s3292_s4 = inlined_call_operand.vmem [shape: f32[8,1], index: 4, kind: input, shape index: {}]   ;;  %s3293_s5 = inlined_call_operand.vmem [shape: f32[1,8], index: 5, kind: input, shape index: {}]   ;;  %s3294_s6 = inlined_call_operand.vmem [shape: f32[128,4], index: 6, kind: input, shape index: {}]   ;;  %s3295_s7 = inlined_call_operand.vmem [shape: f32[128,4], index: 7, kind: input, shape index: {}]   ;;  %s3296_s8 = inlined_call_operand.vmem [shape: f32[1,8], index: 8, kind: input, shape index: {}]   ;;  %s3297_s9 = inlined_call_operand.vmem [shape: f32[6], index: 9, kind: output, shape index: {}]  }
   0x1   :  { %v2418_v0 = vld [vmem:[%s3288_s0] sm:$0xf]  ;;  %2031 = vmatprep.subr.bf16.mxu1 %v2356_v4  ;;  %2033 = vmatprep.mubr.msk.bf16.mxu1 %vm2357_vm0, %v2356_v4 }
   0x2   :  { %v2423_v1 = vld [vmem:[%s3289_s1] sm:$0xf]  ;;  %v2426_v2 = vunpack.c.l.bf16 %v2418_v0 }
   0x3   :  { %v2429_v3 = vunpack.c.l.bf16 %v2423_v1 }
   0x4   :  { %14 = vsyncpa [#allocation4], 0  ;;  %2032 = vmatpush3.bf16.xpose.msra.mxu1 %v2423_v1  ;;  %2025 = vmatprep.subr.bf16.mxu0 %v2356_v4  ;;  %v123_v5 = vmul.f32 %v2426_v2, %v2426_v2  ;;  %v2454_v18 = vld [vmem:[%s3289_s1 + $0x4] sm:$0xf]  ;;  %vm184_vm1 = vcmask 64512   ;;  %vm339_vm2 = vcmask 1043456  }
   0x5   :  { %2027 = vmatprep.mubr.msk.bf16.mxu0 %vm2357_vm0, %v2356_v4  ;;  %2043 = vmatprep.subr.bf16.mxu1 %v2356_v4  ;;  %v117_v6 = vmul.f32 %v2429_v3, %v2429_v3  ;;  %v2463_v19 = vld [vmem:[%s3288_s0 + $0x4] sm:$0xf]  ;;  %v341_v45 = vsel %vm339_vm2, %v2423_v1, 0  ;;  %v387_v56 = vsel %vm339_vm2, %v2454_v18, 0  ;;  %s2358_s0 = smov 126   ;;  %s2362_s19 = smov 1  }
   0x6   :  { %124 = vadd.xlane.f32.xlu0 %v123_v5  ;;  %s2363_s24 = smov 2   ;;  %vm199_vm5 = vcmask 7168   ;;  %s1928_s26 = sshll.u32 %s3297_s9, 4  ;;  %s1929_s26 = int_to_ptr.vmem [resolvable:$true] %s1928_s26 }
   0x7   :  { %s2342_s29 = scalar_lea.vmem %s1929_s26, 16  ;;  %p2347_p1 = scmp.lt.s32.totalorder %s1929_s26, %s1929_s26 }
   0x8   :  { %p2343_p0 = scmp.ne.s32.totalorder %s1929_s26, %s2342_s29  ;;  %p2348_p2 = scmp.lt.s32.totalorder %s2342_s29, %s2342_s29 }
   0xa   :  { %118 = vadd.xlane.f32.xlu0 %v117_v6  ;;  %v2489_v6 = vsel %vm339_vm2, %v2418_v0, 0  ;;  %p2349_p3 = por %p2348_p2, %p2347_p1 }
   0xb   :  { %2034 = vmatmul.mubr.bf16.vlgmr.msra.gmra.mxu1 %v2418_v0 }
   0xc   :  { %2045 = vmatprep.mubr.msk.bf16.mxu1 %vm2357_vm0, %v2356_v4  ;;  %2044 = vmatpush3.bf16.msra.mxu1 %v341_v45  ;;  %v86_v45 = vld [vmem:[%s3295_s7 + $0x70] sm:$0xff]  ;;  %p2350_p4 = pnand %p2349_p3, %p2343_p0 }
   0xd   :  { %2055 = vmatprep.subr.bf16.mxu1 %v2356_v4 }
  0x8f   :  { %v125_v7 = vpop.xlane.xlu0 %124 }
  0x90   :  { %v126_v8 = vmax.f32 %v125_v7, 1e-24 }
  0x92   :  { %2228 = vrsqrt.f32 %v126_v8 }
  0x93   :  { %v119_v9 = vpop.xlane.xlu0 %118 }
  0x94   :  { %v120_v10 = vmax.f32 %v119_v9, 1e-24 }
  0x96   :  { %2230 = vrsqrt.f32 %v120_v10 }
  0x9f   :  { %v2229_v11 = vpop.eup %2228 }
  0xa0   :  { %v128_v12 = vmul.f32 %v2229_v11, %v2426_v2 }
  0xa2   :  { %v130_v13 = vpack.c.bf16 %v128_v12, %v128_v12 }
  0xa3   :  { %v2231_v14 = vpop.eup %2230 }
  0xa4   :  { %2026 = vmatpush3.bf16.xpose.msra.mxu0 %v130_v13  ;;  %v122_v15 = vmul.f32 %v2231_v14, %v2429_v3 }
  0xa5   :  { %2037 = vmatprep.subr.bf16.mxu0 %v2356_v4 }
  0xa6   :  { %v2449_v16 = vmul.f32 %v128_v12, %v122_v15  ;;  %v129_v17 = vpack.c.bf16 %v122_v15, %v122_v15  ;;  %v2498_v12 = vsel %vm339_vm2, %v2463_v19, 0 }
  0xab   :  { %2028 = vmatmul.mubr.bf16.vlgmr.msra.gmra.mxu0 %v129_v17  ;;  %v62_v17 = vld [vmem:[%s3294_s6 + $0x70] sm:$0xff] }
  0xac   :  { %2038 = vmatpush3.bf16.xpose.msra.mxu0 %v2454_v18  ;;  %2039 = vmatprep.mubr.msk.bf16.mxu0 %vm2357_vm0, %v2356_v4 }
  0xad   :  { %2049 = vmatprep.subr.bf16.mxu0 %v2356_v4 }
  0xb3   :  { %2040 = vmatmul.mubr.bf16.vlgmr.msra.gmra.mxu0 %v2463_v19 }
  0xb4   :  { %2051 = vmatprep.mubr.msk.bf16.mxu0 %vm2357_vm0, %v2356_v4  ;;  %2050 = vmatpush3.bf16.msra.mxu0 %v387_v56 }
  0xb5   :  { %2061 = vmatprep.subr.bf16.mxu0 %v2356_v4 }
  0xcb   :  { %v263_v20 = vpop.f32.mrf.mxu1 }
  0xcc   :  { %v309_v21 = vmul.f32 0.088388346, %v263_v20  ;;  %v63_v20 = vld [vmem:[%s3294_s6 + $0x78] sm:$0xff] }
  0xcd   :  { %v2035_v22 = vpop.f32.mrf.mxu1 }
  0xce   :  { %431 = vxpose.xlu1.b32.start.end [1/1] (short) (narrow) %v309_v21, 8  ;;  %v312_v23 = vsel %vm184_vm1, %v309_v21, -inf  ;;  %v2517_v22 = vpack.c.bf16 %v63_v20, %v62_v17  ;;  %v73_v17 = vld [vmem:[%s3295_s7 + $0x8] sm:$0xff] }
  0xcf   :  { %313 = vmax.xlane.f32.xlu0 %v312_v23  ;;  %v266_v24 = vpop.f32.mrf.mxu1  ;;  %v61_v23 = vld [vmem:[%s3294_s6 + $0x68] sm:$0xff] }
  0xd1   :  { %v2036_v25 = vpop.f32.mrf.mxu1 }
  0xd2   :  { %v58_v25 = vld [vmem:[%s3294_s6 + $0x50] sm:$0xff] }
 0x14a   :  { %v447_v26 = vpop.trf.xlu1 }
 0x14b   :  { %v495_v27 = vsel %vm184_vm1, %v447_v26, -inf }
 0x14c   :  { %496 = vmax.xlane.f32.xlu0 %v495_v27 }
 0x158   :  { %v314_v38 = vpop.xlane.xlu0 %313 }
 0x159   :  { %v318_v39 = vsub.f32 %v309_v21, %v314_v38  ;;  %v60_v21 = vld [vmem:[%s3294_s6 + $0x60] sm:$0xff]  ;;  %v50_v38 = vld [vmem:[%s3294_s6 + $0x10] sm:$0xff] }
 0x15a   :  { %v2523_v24 = vpack.c.bf16 %v61_v23, %v60_v21  ;;  %v228_v21 = vunpack.c.l.bf16 %v2463_v19 }
 0x15b   :  { %v320_v40 = vmul.f32 1.442695, %v318_v39  ;;  %v51_v39 = vld [vmem:[%s3294_s6 + $0x18] sm:$0xff] }
 0x15d   :  { %2232 = vpow2.f32 %v320_v40  ;;  %v2573_v40 = vpack.c.bf16 %v51_v39, %v50_v38 }
 0x16a   :  { %v2233_v43 = vpop.eup %2232 }
 0x16b   :  { %v2470_v28 = vpop.f32.mrf.mxu0  ;;  %v324_v44 = vsel %vm184_vm1, %v2233_v43, 0.0 }
 0x16d   :  { %v2029_v29 = vpop.f32.mrf.mxu0 }
 0x16e   :  { %v56_v29 = vld [vmem:[%s3294_s6 + $0x40] sm:$0xff] }
 0x16f   :  { %v168_v30 = vpop.f32.mrf.mxu0 }
 0x170   :  { %v57_v30 = vld [vmem:[%s3294_s6 + $0x48] sm:$0xff] }
 0x171   :  { %v2030_v31 = vpop.f32.mrf.mxu0 }
 0x172   :  { %v2543_v31 = vpack.c.bf16 %v57_v30, %v56_v29 }
 0x173   :  { %v303_v32 = vpop.f32.mrf.mxu0 }
 0x174   :  { %v310_v33 = vmul.f32 0.088388346, %v303_v32  ;;  %v54_v32 = vld [vmem:[%s3294_s6 + $0x30] sm:$0xff] }
 0x175   :  { %v2041_v34 = vpop.f32.mrf.mxu0 }
 0x176   :  { %463 = vxpose.xlu1.b32.start.end [1/1] (short) (narrow) %v310_v33, 8  ;;  %v315_v37 = vsel %vm184_vm1, %v310_v33, -inf }
 0x177   :  { %v306_v35 = vpop.f32.mrf.mxu0 }
 0x178   :  { %v52_v35 = vld [vmem:[%s3294_s6 + $0x20] sm:$0xff] }
 0x179   :  { %v2042_v36 = vpop.f32.mrf.mxu0 }
 0x17a   :  { %v53_v36 = vld [vmem:[%s3294_s6 + $0x28] sm:$0xff] }
 0x19d   :  { %316 = vmax.xlane.f32.xlu1 %v315_v37  ;;  %v2563_v37 = vpack.c.bf16 %v53_v36, %v52_v35 }
 0x1d5   :  { %v497_v46 = vpop.xlane.xlu0 %496 }
 0x1d6   :  { %v501_v47 = vsub.f32 %v447_v26, %v497_v46  ;;  %v59_v26 = vld [vmem:[%s3294_s6 + $0x58] sm:$0xff] }
 0x1d7   :  { %v2533_v27 = vpack.c.bf16 %v59_v26, %v58_v25  ;;  %v87_v46 = vld [vmem:[%s3295_s7 + $0x78] sm:$0xff] }
 0x1d8   :  { %v503_v50 = vmul.f32 1.442695, %v501_v47 }
 0x1f2   :  { %v479_v41 = vpop.trf.xlu1 }
 0x1f3   :  { %v498_v42 = vsel %vm184_vm1, %v479_v41, -inf }
 0x1f4   :  { %499 = vmax.xlane.f32.xlu0 %v498_v42  ;;  %v49_v42 = vld [vmem:[%s3294_s6 + $0x8] sm:$0xff] }
 0x1f8   :  { %325 = vadd.xlane.f32.xlu0 %v324_v44 }
 0x226   :  { %v317_v48 = vpop.xlane.xlu1 %316 }
 0x227   :  { %v319_v49 = vsub.f32 %v310_v33, %v317_v48  ;;  %v55_v33 = vld [vmem:[%s3294_s6 + $0x38] sm:$0xff] }
 0x228   :  { %v2553_v34 = vpack.c.bf16 %v55_v33, %v54_v32  ;;  %v2679_v32 = vld [vmem:[%s3289_s1 + $0x8] sm:$0xf] }
 0x229   :  { %v322_v51 = vmul.f32 1.442695, %v319_v49  ;;  %v2595_v49 = vpack.c.bf16 %v87_v46, %v86_v45 }
 0x22b   :  { %2234 = vpow2.f32 %v322_v51  ;;  %v84_v51 = vld [vmem:[%s3295_s7 + $0x60] sm:$0xff] }
 0x22c   :  { %2236 = vpow2.f32 %v503_v50 }
 0x238   :  { %v2235_v52 = vpop.eup %2234 }
 0x239   :  { %v327_v53 = vsel %vm184_vm1, %v2235_v52, 0.0  ;;  %v2237_v54 = vpop.eup %2236 }
 0x23a   :  { %328 = vadd.xlane.f32.xlu0 %v327_v53  ;;  %v507_v55 = vsel %vm184_vm1, %v2237_v54, 0.0 }
 0x23e   :  { %508 = vadd.xlane.f32.xlu0 %v507_v55  ;;  %v83_v55 = vld [vmem:[%s3295_s7 + $0x58] sm:$0xff] }
 0x27d   :  { %v500_v57 = vpop.xlane.xlu0 %499 }
 0x27e   :  { %v502_v58 = vsub.f32 %v479_v41, %v500_v57  ;;  %v48_v41 = vld [vmem:[%s3294_s6] sm:$0xff] }
 0x27f   :  { %v80_v57 = vld [vmem:[%s3295_s7 + $0x40] sm:$0xff] }
 0x280   :  { %v505_v59 = vmul.f32 1.442695, %v502_v58  ;;  %v81_v58 = vld [vmem:[%s3295_s7 + $0x48] sm:$0xff] }
 0x281   :  { %v326_v60 = vpop.xlane.xlu0 %325 }
 0x282   :  { %2238 = vpow2.f32 %v505_v59  ;;  %v2627_v59 = vpack.c.bf16 %v81_v58, %v80_v57 }
 0x283   :  { %2240 = vrcp.f32 %v326_v60  ;;  %v78_v60 = vld [vmem:[%s3295_s7 + $0x30] sm:$0xff] }
 0x28f   :  { %v2483_v61 = vpop.eup %2238 }
 0x290   :  { %v2241_v62 = vpop.eup %2240  ;;  %v510_v63 = vsel %vm184_vm1, %v2483_v61, 0.0 }
 0x291   :  { %511 = vadd.xlane.f32.xlu0 %v510_v63  ;;  %v332_v1 = vmul.f32 %v2241_v62, %v2233_v43  ;;  %v2584_v43 = vpack.c.bf16 %v49_v42, %v48_v41  ;;  %v76_v63 = vld [vmem:[%s3295_s7 + $0x20] sm:$0xff]  ;;  %v518_v42 = vunpack.c.l.bf16 %v2454_v18 }
 0x293   :  { %v334_v5 = vpack.c.bf16 %v332_v1, %v332_v1  ;;  %v77_v1 = vld [vmem:[%s3295_s7 + $0x28] sm:$0xff] }
 0x295   :  { %2046 = vmatmul.mubr.msk.bf16.vlgmr.msra.gmra.mxu1 %vm184_vm1, %v334_v5  ;;  %v2647_v5 = vpack.c.bf16 %v77_v1, %v76_v63 }
 0x296   :  { %2056 = vmatpush3.bf16.msra.mxu1 %v2489_v6  ;;  %2057 = vmatprep.mubr.msk.bf16.mxu1 %vm2357_vm0, %v2356_v4 }
 0x297   :  { %2067 = vmatprep.subr.bf16.mxu1 %v2356_v4 }
 0x2c3   :  { %v329_v7 = vpop.xlane.xlu0 %328 }
 0x2c4   :  { %2242 = vrcp.f32 %v329_v7  ;;  %v74_v7 = vld [vmem:[%s3295_s7 + $0x10] sm:$0xff] }
 0x2c7   :  { %v509_v8 = vpop.xlane.xlu0 %508 }
 0x2c8   :  { %2244 = vrcp.f32 %v509_v8  ;;  %v75_v8 = vld [vmem:[%s3295_s7 + $0x18] sm:$0xff] }
 0x2d1   :  { %v2243_v9 = vpop.eup %2242 }
 0x2d2   :  { %v333_v10 = vmul.f32 %v2243_v9, %v2235_v52  ;;  %v85_v52 = vld [vmem:[%s3295_s7 + $0x68] sm:$0xff]  ;;  %v2657_v9 = vpack.c.bf16 %v75_v8, %v74_v7 }
 0x2d3   :  { %v2605_v53 = vpack.c.bf16 %v85_v52, %v84_v51 }
 0x2d4   :  { %v335_v11 = vpack.c.bf16 %v333_v10, %v333_v10 }
 0x2d5   :  { %v2245_v13 = vpop.eup %2244 }
 0x2d6   :  { %2052 = vmatmul.mubr.msk.bf16.vlgmr.msra.gmra.mxu0 %vm184_vm1, %v335_v11  ;;  %v515_v14 = vmul.f32 %v2245_v13, %v2237_v54  ;;  %v82_v54 = vld [vmem:[%s3295_s7 + $0x50] sm:$0xff] }
 0x2d7   :  { %2062 = vmatpush3.bf16.msra.mxu0 %v2498_v12  ;;  %2063 = vmatprep.mubr.msk.bf16.mxu0 %vm2357_vm0, %v2356_v4  ;;  %v2617_v56 = vpack.c.bf16 %v83_v55, %v82_v54 }
 0x2d8   :  { %v519_v15 = vpack.c.bf16 %v515_v14, %v515_v14  ;;  %2087 = vmatprep.subr.bf16.mxu0 %v2356_v4 }
 0x2da   :  { %2058 = vmatmul.mubr.msk.bf16.vlgmr.msra.gmra.mxu1 %vm184_vm1, %v519_v15  ;;  %v72_v15 = vld [vmem:[%s3295_s7] sm:$0xff] }
 0x2db   :  { %2083 = vmatprep.mubr.msk.bf16.mxu1 %vm2357_vm0, %v2356_v4  ;;  %2068 = vmatpush3.bf16.msra.mxu1 %v2517_v22  ;;  %v2668_v20 = vpack.c.bf16 %v73_v17, %v72_v15 }
 0x2dc   :  { %2069 = vmatprep.subr.bf16.mxu1 %v2356_v4 }
 0x2df   :  { %2070 = vmatpush3.bf16.msra.mxu1 %v2523_v24 }
 0x2e0   :  { %2071 = vmatprep.subr.bf16.mxu1 %v2356_v4 }
 0x2e3   :  { %2072 = vmatpush3.bf16.msra.mxu1 %v2533_v27 }
 0x2e4   :  { %2073 = vmatprep.subr.bf16.mxu1 %v2356_v4 }
 0x2e7   :  { %2074 = vmatpush3.bf16.msra.mxu1 %v2543_v31 }
 0x2e8   :  { %2075 = vmatprep.subr.bf16.mxu1 %v2356_v4 }
 0x2eb   :  { %2076 = vmatpush3.bf16.msra.mxu1 %v2553_v34 }
 0x2ec   :  { %2077 = vmatprep.subr.bf16.mxu1 %v2356_v4 }
 0x2ef   :  { %2078 = vmatpush3.bf16.msra.mxu1 %v2563_v37 }
 0x2f0   :  { %2079 = vmatprep.subr.bf16.mxu1 %v2356_v4 }
 0x2f3   :  { %2080 = vmatpush3.bf16.msra.mxu1 %v2573_v40 }
 0x2f4   :  { %2081 = vmatprep.subr.bf16.mxu1 %v2356_v4 }
 0x2f7   :  { %2082 = vmatpush3.bf16.msra.mxu1 %v2584_v43 }
 0x2f8   :  { %2107 = vmatprep.subr.bf16.mxu1 %v2356_v4 }
 0x31a   :  { %v512_v44 = vpop.xlane.xlu0 %511 }
 0x31b   :  { %2246 = vrcp.f32 %v512_v44 }
 0x328   :  { %v2247_v47 = vpop.eup %2246 }
 0x329   :  { %v516_v48 = vmul.f32 %v2247_v47, %v2483_v61  ;;  %v79_v61 = vld [vmem:[%s3295_s7 + $0x38] sm:$0xff] }
 0x32a   :  { %v2637_v62 = vpack.c.bf16 %v79_v61, %v78_v60 }
 0x32b   :  { %v520_v50 = vpack.c.bf16 %v516_v48, %v516_v48 }
 0x32d   :  { %2064 = vmatmul.mubr.msk.bf16.vlgmr.msra.gmra.mxu0 %vm184_vm1, %v520_v50  ;;  %v2693_v50 = vld [vmem:[%s3289_s1 + $0xc] sm:$0xf] }
 0x32e   :  { %2088 = vmatpush3.bf16.msra.mxu0 %v2595_v49  ;;  %2103 = vmatprep.mubr.msk.bf16.mxu0 %vm2357_vm0, %v2356_v4 }
 0x32f   :  { %2089 = vmatprep.subr.bf16.mxu0 %v2356_v4 }
 0x332   :  { %2090 = vmatpush3.bf16.msra.mxu0 %v2605_v53 }
 0x333   :  { %2091 = vmatprep.subr.bf16.mxu0 %v2356_v4 }
 0x336   :  { %2092 = vmatpush3.bf16.msra.mxu0 %v2617_v56 }
 0x337   :  { %2093 = vmatprep.subr.bf16.mxu0 %v2356_v4 }
 0x33a   :  { %2094 = vmatpush3.bf16.msra.mxu0 %v2627_v59 }
 0x33b   :  { %2095 = vmatprep.subr.bf16.mxu0 %v2356_v4 }
 0x33e   :  { %2096 = vmatpush3.bf16.msra.mxu0 %v2637_v62 }
 0x33f   :  { %2097 = vmatprep.subr.bf16.mxu0 %v2356_v4 }
 0x342   :  { %2098 = vmatpush3.bf16.msra.mxu0 %v2647_v5 }
 0x343   :  { %2099 = vmatprep.subr.bf16.mxu0 %v2356_v4 }
 0x346   :  { %2100 = vmatpush3.bf16.msra.mxu0 %v2657_v9 }
 0x347   :  { %2101 = vmatprep.subr.bf16.mxu0 %v2356_v4 }
 0x34a   :  { %2102 = vmatpush3.bf16.msra.mxu0 %v2668_v20 }
 0x34b   :  { %2113 = vmatprep.subr.bf16.mxu0 %v2356_v4 }
 0x355   :  { %v377_v10 = vpop.f32.mrf.mxu1 }
 0x356   :  { %v429_v25 = vadd.f32 %v377_v10, %v2426_v2 }
 0x357   :  { %v2047_v11 = vpop.f32.mrf.mxu1 }
 0x359   :  { %v380_v13 = vpop.f32.mrf.mxu1 }
 0x35b   :  { %v2048_v14 = vpop.f32.mrf.mxu1 }
 0x396   :  { %v423_v23 = vpop.f32.mrf.mxu0 }
 0x397   :  { %v430_v26 = vadd.f32 %v423_v23, %v228_v21 }
 0x398   :  { %v2053_v29 = vpop.f32.mrf.mxu0 }
 0x399   :  { %v615_v30 = vpack.c.bf16 %v430_v26, %v429_v25 }
 0x39a   :  { %v426_v33 = vpop.f32.mrf.mxu0  ;;  %v561_v35 = vpop.f32.mrf.mxu1 }
 0x39b   :  { %2084 = vmatmul.mubr.bf16.vlgmr.msra.gmra.mxu1 %v615_v30  ;;  %v613_v45 = vadd.f32 %v561_v35, %v2429_v3 }
 0x39c   :  { %v2054_v36 = vpop.f32.mrf.mxu0  ;;  %v2059_v38 = vpop.f32.mrf.mxu1  ;;  %2108 = vmatpush3.bf16.xpose.msra.mxu1 %v2679_v32  ;;  %2109 = vmatprep.mubr.msk.bf16.mxu1 %vm2357_vm0, %v2356_v4 }
 0x39d   :  { %2119 = vmatprep.subr.bf16.mxu1 %v2356_v4 }
 0x39e   :  { %v564_v39 = vpop.f32.mrf.mxu1 }
 0x3a0   :  { %v2060_v41 = vpop.f32.mrf.mxu1 }
 0x3a1   :  { %v1173_v41 = vsel %vm339_vm2, %v2679_v32, 0 }
 0x3a3   :  { %2110 = vmatmul.mubr.bf16.vlgmr.msra.gmra.mxu1 %v2418_v0 }
 0x3a4   :  { %2121 = vmatprep.mubr.msk.bf16.mxu1 %vm2357_vm0, %v2356_v4  ;;  %2120 = vmatpush3.bf16.msra.mxu1 %v1173_v41  ;;  %v178_v41 = vlaneseq }
 0x3a5   :  { %2131 = vmatprep.subr.bf16.mxu1 %v2356_v4 }
 0x3ed   :  { %v607_v44 = vpop.f32.mrf.mxu0 }
 0x3ee   :  { %v614_v46 = vadd.f32 %v607_v44, %v518_v42 }
 0x3ef   :  { %v2065_v47 = vpop.f32.mrf.mxu0 }
 0x3f0   :  { %v657_v48 = vpack.c.bf16 %v614_v46, %v613_v45 }
 0x3f1   :  { %v610_v51 = vpop.f32.mrf.mxu0 }
 0x3f2   :  { %2104 = vmatmul.mubr.bf16.vlgmr.msra.gmra.mxu0 %v657_v48 }
 0x3f3   :  { %v2066_v52 = vpop.f32.mrf.mxu0  ;;  %2114 = vmatpush3.bf16.xpose.msra.mxu0 %v2693_v50  ;;  %2115 = vmatprep.mubr.msk.bf16.mxu0 %vm2357_vm0, %v2356_v4 }
 0x3f4   :  { %2125 = vmatprep.subr.bf16.mxu0 %v2356_v4 }
 0x3fa   :  { %2116 = vmatmul.mubr.bf16.vlgmr.msra.gmra.mxu0 %v2463_v19 }
 0x3fb   :  { %2127 = vmatprep.mubr.msk.bf16.mxu0 %vm2357_vm0, %v2356_v4 }
 0x45b   :  { %v2702_v0 = vpop.f32.mrf.mxu1 }
 0x45d   :  { %v2085_v3 = vpop.f32.mrf.mxu1 }
 0x45f   :  { %v2704_v18 = vpop.f32.mrf.mxu1 }
 0x461   :  { %v2086_v54 = vpop.f32.mrf.mxu1 }
 0x463   :  { %v1097_v55 = vpop.f32.mrf.mxu1 }
 0x464   :  { %v1143_v57 = vmul.f32 0.088388346, %v1097_v55  ;;  %v2723_v55 = vld [vmem:[%s3296_s8] ss:$0 sm:$0xff]  ;;  %s2359_s8 = smov 127  }
 0x465   :  { %v2111_v58 = vpop.f32.mrf.mxu1 }
 0x466   :  { %1263 = vxpose.xlu0.b32.start.end [1/1] (short) (narrow) %v1143_v57, 8  ;;  %v1145_v63 = vsel %vm184_vm1, %v1143_v57, -inf }
 0x467   :  { %v1100_v60 = vpop.f32.mrf.mxu1 }
 0x469   :  { %v2112_v61 = vpop.f32.mrf.mxu1 }
 0x493   :  { %1146 = vmax.xlane.f32.xlu0 %v1145_v63 }
 0x4b2   :  { %v2707_v1 = vpop.f32.mrf.mxu0 }
 0x4b4   :  { %v2105_v7 = vpop.f32.mrf.mxu0 }
 0x4b6   :  { %v2709_v8 = vpop.f32.mrf.mxu0 }
 0x4b8   :  { %v2106_v10 = vpop.f32.mrf.mxu0 }
 0x4ba   :  { %v1137_v11 = vpop.f32.mrf.mxu0 }
 0x4bb   :  { %v1144_v13 = vmul.f32 0.088388346, %v1137_v11 }
 0x4bc   :  { %v2117_v14 = vpop.f32.mrf.mxu0 }
 0x4bd   :  { %1295 = vxpose.xlu1.b32.start.end [1/1] (short) (narrow) %v1144_v13, 8  ;;  %v1148_v25 = vsel %vm184_vm1, %v1144_v13, -inf }
 0x4be   :  { %v1140_v15 = vpop.f32.mrf.mxu0 }
 0x4bf   :  { %v2741_v15 = vadd.f32 %v2723_v55, %v2702_v0 }
 0x4c0   :  { %v2118_v17 = vpop.f32.mrf.mxu0 }
 0x4c1   :  { %v2747_v17 = vadd.f32 %v2723_v55, %v2704_v18 }
 0x4e2   :  { %v1279_v23 = vpop.trf.xlu0 }
 0x4e3   :  { %v1327_v26 = vsel %vm184_vm1, %v1279_v23, -inf }
 0x4e4   :  { %1149 = vmax.xlane.f32.xlu1 %v1148_v25  ;;  %1328 = vmax.xlane.f32.xlu0 %v1327_v26  ;;  %v699_v26 = vadd.f32 %v2707_v1, %v2702_v0  ;;  %v700_v0 = vadd.f32 %v2709_v8, %v2704_v18  ;;  %v116_v18 = vld [vmem:[%s3293_s5] sm:$0x1]  ;;  %s2361_s5 = smov 125  }
 0x4e5   :  { %vm176_vm3 = vcmp.gt.f32.partialorder %v116_v18, 0.0 }
 0x51c   :  { %v1147_v29 = vpop.xlane.xlu0 %1146 }
 0x51d   :  { %v1151_v30 = vsub.f32 %v1143_v57, %v1147_v29  ;;  %v1219_v57 = vsel %vm339_vm2, %v2693_v50, 0 }
 0x51e   :  { %2126 = vmatpush3.bf16.msra.mxu0 %v1219_v57 }
 0x51f   :  { %v1153_v33 = vmul.f32 1.442695, %v1151_v30  ;;  %2137 = vmatprep.subr.bf16.mxu0 %v2356_v4 }
 0x521   :  { %2248 = vpow2.f32 %v1153_v33  ;;  %v2768_v33 = vadd.f32 %v2723_v55, %v699_v26 }
 0x52e   :  { %v2249_v38 = vpop.eup %2248 }
 0x52f   :  { %v1157_v39 = vsel %vm184_vm1, %v2249_v38, 0.0 }
 0x539   :  { %v1311_v35 = vpop.trf.xlu1 }
 0x53a   :  { %v1330_v36 = vsel %vm184_vm1, %v1311_v35, -inf }
 0x53b   :  { %1331 = vmax.xlane.f32.xlu0 %v1330_v36 }
 0x53f   :  { %1158 = vadd.xlane.f32.xlu0 %v1157_v39 }
 0x56d   :  { %v1150_v42 = vpop.xlane.xlu1 %1149  ;;  %v1329_v44 = vpop.xlane.xlu0 %1328 }
 0x56e   :  { %v1152_v45 = vsub.f32 %v1144_v13, %v1150_v42  ;;  %v1333_v46 = vsub.f32 %v1279_v23, %v1329_v44 }
 0x570   :  { %v1155_v47 = vmul.f32 1.442695, %v1152_v45  ;;  %v1335_v48 = vmul.f32 1.442695, %v1333_v46  ;;  %v2360_v46 = vmov 0  }
 0x572   :  { %2250 = vpow2.f32 %v1155_v47  ;;  %v177_v47 = vsel %vm176_vm3, 1, %v2360_v46 }
 0x573   :  { %2252 = vpow2.f32 %v1335_v48 }
 0x57f   :  { %v2251_v51 = vpop.eup %2250 }
 0x580   :  { %v2253_v52 = vpop.eup %2252  ;;  %v1160_v3 = vsel %vm184_vm1, %v2251_v51, 0.0 }
 0x581   :  { %1161 = vadd.xlane.f32.xlu1 %v1160_v3  ;;  %v1339_v54 = vsel %vm184_vm1, %v2253_v52, 0.0 }
 0x582   :  { %1340 = vadd.xlane.f32.xlu0 %v1339_v54 }
 0x598   :  { %711 = vrot.lane.b32.xlu0 %v2723_v55, %s2358_s0 }
 0x5c4   :  { %v1332_v58 = vpop.xlane.xlu0 %1331 }
 0x5c5   :  { %v1334_v60 = vsub.f32 %v1311_v35, %v1332_v58  ;;  %v2775_v35 = vadd.f32 %v2723_v55, %v700_v0 }
 0x5c7   :  { %v1337_v61 = vmul.f32 1.442695, %v1334_v60 }
 0x5c8   :  { %v1159_v63 = vpop.xlane.xlu0 %1158 }
 0x5c9   :  { %2254 = vpow2.f32 %v1337_v61 }
 0x5ca   :  { %2256 = vrcp.f32 %v1159_v63 }
 0x5d6   :  { %v2730_v7 = vpop.eup %2254 }
 0x5d7   :  { %v2257_v10 = vpop.eup %2256  ;;  %v1342_v11 = vsel %vm184_vm1, %v2730_v7, 0.0 }
 0x5d8   :  { %1343 = vadd.xlane.f32.xlu1 %v1342_v11  ;;  %v1165_v13 = vmul.f32 %v2257_v10, %v2249_v38 }
 0x5da   :  { %v1167_v14 = vpack.c.bf16 %v1165_v13, %v1165_v13 }
 0x5dc   :  { %2122 = vmatmul.mubr.msk.bf16.vlgmr.msra.gmra.mxu1 %vm184_vm1, %v1167_v14 }
 0x5dd   :  { %2132 = vmatpush3.bf16.msra.mxu1 %v2489_v6  ;;  %2133 = vmatprep.mubr.msk.bf16.mxu1 %vm2357_vm0, %v2356_v4 }
 0x5de   :  { %2143 = vmatprep.subr.bf16.mxu1 %v2356_v4 }
 0x5e9   :  { %847 = vrot.lane.b32.xlu1 %v2741_v15, %s2359_s8 }
 0x5ed   :  { %849 = vrot.lane.b32.xlu1 %v2747_v17, %s2359_s8 }
 0x60a   :  { %v1162_v6 = vpop.xlane.xlu1 %1161 }
 0x60b   :  { %2258 = vrcp.f32 %v1162_v6  ;;  %v1341_v23 = vpop.xlane.xlu0 %1340 }
 0x60c   :  { %2260 = vrcp.f32 %v1341_v23 }
 0x60f   :  { %v2751_v25 = vpop.permute.xlu0 %711 }
 0x610   :  { %v2757_v29 = vadd.f32 %v2751_v25, %v2707_v1  ;;  %v2761_v30 = vadd.f32 %v2751_v25, %v2709_v8  ;;  %v179_v8 = vshrl.u32 %v178_v41, 7 }
 0x612   :  { %952 = vrot.lane.b32.xlu1 %v2761_v30, %s2359_s8  ;;  %950 = vrot.lane.b32.xlu0 %v2757_v29, %s2359_s8  ;;  %v180_v45 = vsub.s32 0, %v179_v8 }
 0x616   :  { %718 = vrot.lane.b32.xlu1 %v2768_v33, %s2359_s8 }
 0x618   :  { %v2259_v1 = vpop.eup %2258 }
 0x619   :  { %v2261_v36 = vpop.eup %2260  ;;  %v1166_v38 = vmul.f32 %v2259_v1, %v2251_v51 }
 0x61a   :  { %720 = vrot.lane.b32.xlu1 %v2775_v35, %s2359_s8  ;;  %v1347_v39 = vmul.f32 %v2261_v36, %v2253_v52 }
 0x61b   :  { %v1168_v42 = vpack.c.bf16 %v1166_v38, %v1166_v38 }
 0x61c   :  { %v1351_v44 = vpack.c.bf16 %v1347_v39, %v1347_v39 }
 0x61d   :  { %2128 = vmatmul.mubr.msk.bf16.vlgmr.msra.gmra.mxu0 %vm184_vm1, %v1168_v42  ;;  %v2897_v42 = vld [vmem:[%s3290_s2 + $0x8] sm:$0xff] }
 0x61e   :  { %2134 = vmatmul.mubr.msk.bf16.vlgmr.msra.gmra.mxu1 %vm184_vm1, %v1351_v44  ;;  %2138 = vmatpush3.bf16.msra.mxu0 %v2498_v12  ;;  %v181_v12 = vrot.slane %v177_v47, %v180_v45  ;;  %v2900_v18 = vsub.f32 1.0, %v2897_v42 }
 0x61f   :  { %2139 = vmatprep.mubr.msk.bf16.mxu0 %vm2357_vm0, %v2356_v4  ;;  %2144 = vmatpush3.bf16.msra.mxu1 %v2517_v22  ;;  %v171_v22 = vmul.f32 14.285714, %v2470_v28 }
 0x620   :  { %2145 = vmatprep.subr.bf16.mxu1 %v2356_v4  ;;  %2159 = vmatprep.mubr.msk.bf16.mxu1 %vm2357_vm0, %v2356_v4  ;;  %vm182_vm4 = vcmp.eq.s32.totalorder %v181_v12, 1  ;;  %v1349_v12 = vunpack.c.l.bf16 %v2679_v32 }
 0x621   :  { %2163 = vmatprep.subr.bf16.mxu0 %v2356_v4  ;;  %v2799_v48 = vsel %vm182_vm4, %v171_v22, -1e+30  ;;  %v1350_v22 = vunpack.c.l.bf16 %v2693_v50 }
 0x623   :  { %2146 = vmatpush3.bf16.msra.mxu1 %v2523_v24  ;;  %v185_v24 = vsel %vm184_vm1, %v2799_v48, -inf }
 0x624   :  { %2147 = vmatprep.subr.bf16.mxu1 %v2356_v4 }
 0x627   :  { %2148 = vmatpush3.bf16.msra.mxu1 %v2533_v27 }
 0x628   :  { %2149 = vmatprep.subr.bf16.mxu1 %v2356_v4 }
 0x62b   :  { %2150 = vmatpush3.bf16.msra.mxu1 %v2543_v31 }
 0x62c   :  { %2151 = vmatprep.subr.bf16.mxu1 %v2356_v4 }
 0x62f   :  { %2152 = vmatpush3.bf16.msra.mxu1 %v2553_v34 }
 0x630   :  { %2153 = vmatprep.subr.bf16.mxu1 %v2356_v4 }
 0x631   :  { %186 = vmax.xlane.f32.xlu0 %v185_v24 }
 0x633   :  { %2154 = vmatpush3.bf16.msra.mxu1 %v2563_v37 }
 0x634   :  { %2155 = vmatprep.subr.bf16.mxu1 %v2356_v4 }
 0x637   :  { %2156 = vmatpush3.bf16.msra.mxu1 %v2573_v40 }
 0x638   :  { %2157 = vmatprep.subr.bf16.mxu1 %v2356_v4 }
 0x63b   :  { %2158 = vmatpush3.bf16.msra.mxu1 %v2584_v43 }
 0x647   :  { %899 = vrot.lane.b32.xlu0 %v2741_v15, %s2358_s0 }
 0x64b   :  { %994 = vrot.lane.b32.xlu0 %v2757_v29, %s2361_s5 }
 0x64f   :  { %1002 = vrot.lane.b32.xlu0 %v2757_v29, %s2358_s0 }
 0x661   :  { %v1344_v28 = vpop.xlane.xlu1 %1343 }
 0x662   :  { %2262 = vrcp.f32 %v1344_v28 }
 0x665   :  { %v848_v27 = vpop.permute.xlu1 %847 }
 0x666   :  { %v2817_v31 = vmax.f32 %v2741_v15, %v848_v27 }
 0x668   :  { %863 = vrot.lane.b32.xlu1 %v2817_v31, %s2362_s19 }
 0x669   :  { %v850_v34 = vpop.permute.xlu1 %849 }
 0x66a   :  { %v2822_v37 = vmax.f32 %v2747_v17, %v850_v34 }
 0x66c   :  { %865 = vrot.lane.b32.xlu1 %v2822_v37, %s2362_s19 }
 0x66f   :  { %v2263_v40 = vpop.eup %2262 }
 0x670   :  { %v1348_v43 = vmul.f32 %v2263_v40, %v2730_v7 }
 0x672   :  { %v1352_v51 = vpack.c.bf16 %v1348_v43, %v1348_v43 }
 0x674   :  { %2140 = vmatmul.mubr.msk.bf16.vlgmr.msra.gmra.mxu0 %vm184_vm1, %v1352_v51 }
 0x675   :  { %2164 = vmatpush3.bf16.msra.mxu0 %v2595_v49  ;;  %2179 = vmatprep.mubr.msk.bf16.mxu0 %vm2357_vm0, %v2356_v4 }
 0x676   :  { %2165 = vmatprep.subr.bf16.mxu0 %v2356_v4 }
 0x679   :  { %2166 = vmatpush3.bf16.msra.mxu0 %v2605_v53 }
 0x67a   :  { %2167 = vmatprep.subr.bf16.mxu0 %v2356_v4 }
 0x67d   :  { %2168 = vmatpush3.bf16.msra.mxu0 %v2617_v56 }
 0x67e   :  { %2169 = vmatprep.subr.bf16.mxu0 %v2356_v4 }
 0x681   :  { %2170 = vmatpush3.bf16.msra.mxu0 %v2627_v59 }
 0x682   :  { %2171 = vmatprep.subr.bf16.mxu0 %v2356_v4 }
 0x684   :  { %v951_v52 = vpop.permute.xlu0 %950  ;;  %v953_v3 = vpop.permute.xlu1 %952 }
 0x685   :  { %v2839_v49 = vmax.f32 %v2757_v29, %v951_v52  ;;  %2172 = vmatpush3.bf16.msra.mxu0 %v2637_v62  ;;  %v2846_v53 = vmax.f32 %v2761_v30, %v953_v3 }
 0x686   :  { %2173 = vmatprep.subr.bf16.mxu0 %v2356_v4 }
 0x687   :  { %966 = vrot.lane.b32.xlu1 %v2839_v49, %s2362_s19 }
 0x688   :  { %v2868_v13 = vpop.permute.xlu1 %718 }
 0x689   :  { %2174 = vmatpush3.bf16.msra.mxu0 %v2647_v5 }
 0x68a   :  { %2175 = vmatprep.subr.bf16.mxu0 %v2356_v4 }
 0x68b   :  { %968 = vrot.lane.b32.xlu1 %v2846_v53, %s2362_s19 }
 0x68c   :  { %v2870_v14 = vpop.permute.xlu1 %720 }
 0x68d   :  { %2176 = vmatpush3.bf16.msra.mxu0 %v2657_v9 }
 0x68e   :  { %2177 = vmatprep.subr.bf16.mxu0 %v2356_v4 }
 0x68f   :  { %891 = vrot.lane.b32.xlu1 %v2741_v15, %s2361_s5 }
 0x691   :  { %2178 = vmatpush3.bf16.msra.mxu0 %v2668_v20 }
 0x693   :  { %893 = vrot.lane.b32.xlu1 %v2747_v17, %s2361_s5 }
 0x697   :  { %901 = vrot.lane.b32.xlu1 %v2747_v17, %s2358_s0 }
 0x69b   :  { %996 = vrot.lane.b32.xlu1 %v2761_v30, %s2361_s5 }
 0x69c   :  { %v1209_v56 = vpop.f32.mrf.mxu1 }
 0x69d   :  { %v1261_v54 = vadd.f32 %v1209_v56, %v2426_v2 }
 0x69e   :  { %v2123_v59 = vpop.f32.mrf.mxu1 }
 0x69f   :  { %1004 = vrot.lane.b32.xlu1 %v2761_v30, %s2358_s0 }
 0x6a0   :  { %v1212_v62 = vpop.f32.mrf.mxu1 }
 0x6a2   :  { %v2124_v5 = vpop.f32.mrf.mxu1 }
 0x6ba   :  { %v2876_v2 = vpop.xlane.xlu0 %186 }
 0x6be   :  { %v900_v0 = vpop.permute.xlu0 %899 }
 0x6da   :  { %v2872_v6 = vpop.permute.xlu1 %863 }
 0x6dd   :  { %v1255_v9 = vpop.f32.mrf.mxu0 }
 0x6de   :  { %v1262_v20 = vadd.f32 %v1255_v9, %v228_v21  ;;  %v1390_v57 = vpop.f32.mrf.mxu1  ;;  %v2874_v23 = vpop.permute.xlu1 %865  ;;  %v2883_v21 = vld [vmem:[%s3290_s2] sm:$0xff] }
 0x6df   :  { %v2129_v58 = vpop.f32.mrf.mxu0  ;;  %v2888_v1 = vsub.f32 1.0, %v2883_v21  ;;  %v1439_v28 = vadd.f32 %v1390_v57, %v1349_v12 }
 0x6e0   :  { %v1441_v60 = vpack.c.bf16 %v1262_v20, %v1261_v54  ;;  %v2135_v61 = vpop.f32.mrf.mxu1 }
 0x6e1   :  { %v1258_v63 = vpop.f32.mrf.mxu0  ;;  %v905_v38 = vmul.f32 %v900_v0, %v2888_v1  ;;  %v2964_v0 = vmax.f32 %v2775_v35, %v2870_v14 }
 0x6e2   :  { %v1393_v7 = vpop.f32.mrf.mxu1  ;;  %2160 = vmatmul.mubr.bf16.vlgmr.msra.gmra.mxu1 %v1441_v60  ;;  %v995_v63 = vpop.permute.xlu0 %994 }
 0x6e3   :  { %v2130_v10 = vpop.f32.mrf.mxu0  ;;  %v2956_v7 = vmax.f32 %v2768_v33, %v2868_v13 }
 0x6e4   :  { %v2136_v11 = vpop.f32.mrf.mxu1 }
 0x6e6   :  { %v1003_v11 = vpop.permute.xlu0 %1002 }
 0x6f9   :  { %v2878_v19 = vpop.permute.xlu1 %966 }
 0x6fd   :  { %v2885_v26 = vpop.permute.xlu1 %968 }
 0x701   :  { %v892_v36 = vpop.permute.xlu1 %891 }
 0x702   :  { %v897_v39 = vmul.f32 %v892_v36, %v2883_v21 }
 0x704   :  { %v2892_v41 = vadd.f32 %v905_v38, %v897_v39 }
 0x705   :  { %v894_v44 = vpop.permute.xlu1 %893 }
 0x706   :  { %v898_v45 = vmul.f32 %v894_v44, %v2897_v42 }
 0x709   :  { %v902_v8 = vpop.permute.xlu1 %901 }
 0x70a   :  { %v906_v46 = vmul.f32 %v902_v8, %v2900_v18  ;;  %v188_v8 = vsub.f32 %v2799_v48, %v2876_v2 }
 0x70c   :  { %v2904_v47 = vadd.f32 %v906_v46, %v898_v45  ;;  %v189_v45 = vmul.f32 1.442695, %v188_v8 }
 0x70d   :  { %v2958_v10 = vpop.permute.xlu1 %996 }
 0x70e   :  { %2264 = vpow2.f32 %v189_v45  ;;  %v3039_v45 = vld [vmem:[%s3290_s2 + $0x18] sm:$0xff] }
 0x71b   :  { %v2265_v46 = vpop.eup %2264 }
 0x71c   :  { %v191_v12 = vsel %vm184_vm1, %v2265_v46, 0.0 }
 0x734   :  { %v1433_v24 = vpop.f32.mrf.mxu0 }
 0x735   :  { %v1440_v27 = vadd.f32 %v1433_v24, %v1350_v22  ;;  %v869_v22 = vsub.f32 %v2741_v15, %v2872_v6 }
 0x736   :  { %v2141_v34 = vpop.f32.mrf.mxu0 }
 0x737   :  { %v1483_v40 = vpack.c.bf16 %v1440_v27, %v1439_v28  ;;  %v871_v24 = vmul.f32 1.442695, %v869_v22  ;;  %v870_v28 = vsub.f32 %v2747_v17, %v2874_v23  ;;  %v973_v34 = vsub.f32 %v2761_v30, %v2885_v26 }
 0x738   :  { %v1436_v43 = vpop.f32.mrf.mxu0  ;;  %v1008_v23 = vmul.f32 %v1003_v11, %v2888_v1  ;;  %v3044_v22 = vsub.f32 1.0, %v3039_v45 }
 0x739   :  { %2180 = vmatmul.mubr.bf16.vlgmr.msra.gmra.mxu0 %v1483_v40  ;;  %2266 = vpow2.f32 %v871_v24  ;;  %v873_v27 = vmul.f32 1.442695, %v870_v28  ;;  %v976_v48 = vmul.f32 1.442695, %v973_v34 }
 0x73a   :  { %v2142_v51 = vpop.f32.mrf.mxu0 }
 0x73b   :  { %2268 = vpow2.f32 %v873_v27  ;;  %v1000_v51 = vmul.f32 %v995_v63, %v2883_v21 }
 0x73c   :  { %2270 = vpow2.f32 %v976_v48 }
 0x746   :  { %v2267_v40 = vpop.eup %2266 }
 0x748   :  { %v2269_v43 = vpop.eup %2268 }
 0x749   :  { %v2271_v6 = vpop.eup %2270 }
 0x7a2   :  { %v1476_v52 = vpop.f32.mrf.mxu1 }
 0x7a3   :  { %v2909_v3 = vadd.f32 %v2723_v55, %v1476_v52 }
 0x7a4   :  { %v2161_v56 = vpop.f32.mrf.mxu1 }
 0x7a5   :  { %1663 = vrot.lane.b32.xlu0 %v2909_v3, %s2359_s8 }
 0x7a6   :  { %v1479_v59 = vpop.f32.mrf.mxu1 }
 0x7a7   :  { %v2914_v32 = vadd.f32 %v2723_v55, %v1479_v59 }
 0x7a8   :  { %v2162_v50 = vpop.f32.mrf.mxu1 }
 0x7a9   :  { %1707 = vrot.lane.b32.xlu0 %v2909_v3, %s2361_s5  ;;  %1665 = vrot.lane.b32.xlu1 %v2914_v32, %s2359_s8  ;;  %v3010_v50 = vld [vmem:[%s3290_s2 + $0x10] sm:$0xff] }
 0x7ad   :  { %1709 = vrot.lane.b32.xlu1 %v2914_v32, %s2361_s5 }
 0x7b1   :  { %1717 = vrot.lane.b32.xlu1 %v2914_v32, %s2358_s0 }
 0x7f9   :  { %v1518_v62 = vpop.f32.mrf.mxu0 }
 0x7fa   :  { %v1525_v5 = vadd.f32 %v1518_v62, %v1476_v52  ;;  %v2925_v9 = vadd.f32 %v1518_v62, %v2751_v25  ;;  %v1010_v52 = vadd.f32 %v1008_v23, %v1000_v51  ;;  %v3056_v23 = vld [vmem:[%s3291_s3] sm:$0xff] }
 0x7fb   :  { %v2181_v54 = vpop.f32.mrf.mxu0 }
 0x7fc   :  { %v2928_v20 = vadd.f32 %v2723_v55, %v1525_v5  ;;  %1766 = vrot.lane.b32.xlu0 %v2925_v9, %s2359_s8 }
 0x7fd   :  { %v1521_v57 = vpop.f32.mrf.mxu0 }
 0x7fe   :  { %1535 = vrot.lane.b32.xlu1 %v2928_v20, %s2359_s8  ;;  %v2935_v60 = vadd.f32 %v1521_v57, %v2751_v25  ;;  %v1526_v61 = vadd.f32 %v1521_v57, %v1479_v59 }
 0x7ff   :  { %v2182_v58 = vpop.f32.mrf.mxu0 }
 0x800   :  { %1715 = vrot.lane.b32.xlu0 %v2909_v3, %s2358_s0  ;;  %v2950_v25 = vadd.f32 %v2723_v55, %v1526_v61  ;;  %v2968_v55 = vpop.permute.xlu1 %1004 }
 0x802   :  { %1768 = vrot.lane.b32.xlu1 %v2935_v60, %s2359_s8 }
 0x804   :  { %1810 = vrot.lane.b32.xlu0 %v2925_v9, %s2361_s5 }
 0x806   :  { %1812 = vrot.lane.b32.xlu1 %v2935_v60, %s2361_s5 }
 0x808   :  { %1818 = vrot.lane.b32.xlu0 %v2925_v9, %s2358_s0 }
 0x80a   :  { %1820 = vrot.lane.b32.xlu1 %v2935_v60, %s2358_s0 }
 0x80e   :  { %1537 = vrot.lane.b32.xlu1 %v2950_v25, %s2359_s8 }
 0x812   :  { %734 = vrot.lane.b32.xlu1 %v2956_v7, %s2362_s19 }
 0x816   :  { %736 = vrot.lane.b32.xlu1 %v2964_v0, %s2362_s19 }
 0x817   :  { %v1664_v36 = vpop.permute.xlu0 %1663 }
 0x818   :  { %v2971_v38 = vmax.f32 %v2909_v3, %v1664_v36 }
 0x81a   :  { %1679 = vrot.lane.b32.xlu0 %v2971_v38, %s2362_s19 }
 0x81b   :  { %v1666_v39 = vpop.permute.xlu1 %1665  ;;  %v1708_v56 = vpop.permute.xlu0 %1707 }
 0x81c   :  { %v2976_v44 = vmax.f32 %v2914_v32, %v1666_v39  ;;  %v1713_v58 = vmul.f32 %v1708_v56, %v3010_v50 }
 0x81e   :  { %1681 = vrot.lane.b32.xlu1 %v2976_v44, %s2362_s19 }
 0x81f   :  { %v2999_v26 = vpop.permute.xlu1 %1709 }
 0x823   :  { %v3005_v59 = vpop.permute.xlu1 %1717 }
 0x839   :  { %192 = vadd.xlane.f32.xlu0 %v191_v12 }
 0x84f   :  { %877 = vrot.lane.b32.xlu0 %v2267_v40, %s2359_s8 }
 0x853   :  { %879 = vrot.lane.b32.xlu0 %v2269_v43, %s2359_s8 }
 0x857   :  { %982 = vrot.lane.b32.xlu0 %v2271_v6, %s2359_s8 }
 0x85b   :  { %788 = vrot.lane.b32.xlu0 %v2768_v33, %s2362_s19 }
 0x85f   :  { %1604 = vrot.lane.b32.xlu0 %v2928_v20, %s2362_s19 }
 0x863   :  { %802 = vrot.lane.b32.xlu0 %v2883_v21, %s2362_s19 }
 0x867   :  { %911 = vrot.lane.b32.xlu0 %v2892_v41, %s2363_s24  ;;  %v3020_v41 = vsub.f32 1.0, %v3010_v50 }
 0x86b   :  { %1014 = vrot.lane.b32.xlu0 %v1010_v52, %s2363_s24  ;;  %v3065_v52 = vld [vmem:[%s3291_s3 + $0x10] sm:$0xff] }
 0x86c   :  { %3302 = vst [vmem:[#allocation6_spill] sm:$0xff] %v3065_v52 }
 0x86e   :  { %v1767_v62 = vpop.permute.xlu0 %1766 }
 0x86f   :  { %v3013_v5 = vmax.f32 %v2925_v9, %v1767_v62  ;;  %1618 = vrot.lane.b32.xlu0 %v3010_v50, %s2362_s19 }
 0x870   :  { %v3017_v54 = vpop.permute.xlu1 %1535 }
 0x871   :  { %1782 = vrot.lane.b32.xlu1 %v3013_v5, %s2362_s19  ;;  %v3027_v61 = vmax.f32 %v2928_v20, %v3017_v54 }
 0x872   :  { %v1716_v57 = vpop.permute.xlu0 %1715 }
 0x873   :  { %v1721_v63 = vmul.f32 %v1716_v57, %v3020_v41 }
 0x874   :  { %v1769_v11 = vpop.permute.xlu1 %1768 }
 0x875   :  { %v1723_v36 = vadd.f32 %v1721_v63, %v1713_v58  ;;  %1551 = vrot.lane.b32.xlu1 %v3027_v61, %s2362_s19  ;;  %v3033_v8 = vmax.f32 %v2935_v60, %v1769_v11 }
 0x876   :  { %v1811_v39 = vpop.permute.xlu0 %1810 }
 0x877   :  { %1727 = vrot.lane.b32.xlu0 %v1723_v36, %s2363_s24  ;;  %v1816_v24 = vmul.f32 %v1811_v39, %v3010_v50  ;;  %v972_v39 = vsub.f32 %v2757_v29, %v2878_v19  ;;  %v1001_v19 = vmul.f32 %v2958_v10, %v2897_v42  ;;  %v3100_v10 = vld [vmem:[%s3291_s3 + $0x8] sm:$0xff] }
 0x878   :  { %v1813_v46 = vpop.permute.xlu1 %1812 }
 0x879   :  { %1784 = vrot.lane.b32.xlu1 %v3033_v8, %s2362_s19  ;;  %v1817_v34 = vmul.f32 %v1813_v46, %v3039_v45  ;;  %v974_v46 = vmul.f32 1.442695, %v972_v39 }
 0x87a   :  { %v1819_v12 = vpop.permute.xlu0 %1818 }
 0x87b   :  { %v1824_v28 = vmul.f32 %v1819_v12, %v3020_v41 }
 0x87c   :  { %v1821_v27 = vpop.permute.xlu1 %1820 }
 0x87d   :  { %v1826_v48 = vadd.f32 %v1824_v28, %v1816_v24  ;;  %v1825_v40 = vmul.f32 %v1821_v27, %v3044_v22 }
 0x87f   :  { %v1827_v43 = vadd.f32 %v1825_v40, %v1817_v34  ;;  %1830 = vrot.lane.b32.xlu0 %v1826_v48, %s2363_s24  ;;  %v1722_v34 = vmul.f32 %v3005_v59, %v3044_v22  ;;  %v1714_v48 = vmul.f32 %v2999_v26, %v3039_v45 }
 0x880   :  { %v3051_v6 = vpop.permute.xlu1 %1537 }
 0x881   :  { %v1724_v40 = vadd.f32 %v1722_v34, %v1714_v48 }
 0x883   :  { %816 = vrot.lane.b32.xlu0 %v3056_v23, %s2362_s19 }
 0x884   :  { %v735_v51 = vpop.permute.xlu1 %734 }
 0x887   :  { %919 = vrot.lane.b32.xlu0 %v3056_v23, %s2363_s24 }
 0x888   :  { %v737_v56 = vpop.permute.xlu1 %736 }
 0x88b   :  { %1632 = vrot.lane.b32.xlu0 %v3065_v52, %s2362_s19 }
 0x88c   :  { %v1680_v62 = vpop.permute.xlu0 %1679 }
 0x88d   :  { %v1685_v57 = vsub.f32 %v2909_v3, %v1680_v62 }
 0x88f   :  { %v1687_v58 = vmul.f32 1.442695, %v1685_v57  ;;  %v740_v57 = vsub.f32 %v2768_v33, %v735_v51 }
 0x890   :  { %v1682_v63 = vpop.permute.xlu1 %1681 }
 0x891   :  { %2272 = vpow2.f32 %v1687_v58  ;;  %v1686_v11 = vsub.f32 %v2914_v32, %v1682_v63  ;;  %v742_v63 = vmul.f32 1.442695, %v740_v57  ;;  %v958_v57 = vsub.f32 %v2757_v29, %v2839_v49 }
 0x893   :  { %v1689_v36 = vmul.f32 1.442695, %v1686_v11 }
 0x895   :  { %2274 = vpow2.f32 %v1689_v36 }
 0x896   :  { %2276 = vpow2.f32 %v974_v46 }
 0x89d   :  { %173 = vadd.xlane.f32.xlu1 %v2449_v16  ;;  %v1009_v16 = vmul.f32 %v2968_v55, %v2900_v18  ;;  %v3115_v55 = vld [vmem:[%s3291_s3 + $0x18] sm:$0xff] }
 0x89e   :  { %v2273_v12 = vpop.eup %2272  ;;  %3303 = vst [vmem:[#allocation7_spill] sm:$0xff] %v3115_v55 }
 0x89f   :  { %1693 = vrot.lane.b32.xlu0 %v2273_v12, %s2359_s8  ;;  %v1011_v27 = vadd.f32 %v1009_v16, %v1001_v19  ;;  %v741_v12 = vsub.f32 %v2775_v35, %v737_v56 }
 0x8a2   :  { %v2275_v24 = vpop.eup %2274 }
 0x8a3   :  { %1695 = vrot.lane.b32.xlu0 %v2275_v24, %s2359_s8  ;;  %v2277_v28 = vpop.eup %2276 }
 0x8ae   :  { %980 = vrot.lane.b32.xlu1 %v2277_v28, %s2359_s8 }
 0x8b2   :  { %790 = vrot.lane.b32.xlu1 %v2775_v35, %s2362_s19 }
 0x8b6   :  { %1606 = vrot.lane.b32.xlu1 %v2950_v25, %s2362_s19 }
 0x8ba   :  { %804 = vrot.lane.b32.xlu1 %v2897_v42, %s2362_s19 }
 0x8be   :  { %913 = vrot.lane.b32.xlu1 %v2904_v47, %s2363_s24  ;;  %v3106_v47 = vmax.f32 %v2950_v25, %v3051_v6 }
 0x8c2   :  { %1016 = vrot.lane.b32.xlu1 %v1011_v27, %s2363_s24  ;;  %v193_v16 = vpop.xlane.xlu0 %192 }
 0x8c6   :  { %1620 = vrot.lane.b32.xlu1 %v3039_v45, %s2362_s19  ;;  %v878_v51 = vpop.permute.xlu0 %877 }
 0x8ca   :  { %1729 = vrot.lane.b32.xlu1 %v1724_v40, %s2363_s24  ;;  %v3130_v34 = vpop.permute.xlu0 %879 }
 0x8ce   :  { %818 = vrot.lane.b32.xlu1 %v3100_v10, %s2362_s19  ;;  %v3136_v40 = vpop.permute.xlu0 %982 }
 0x8d2   :  { %1553 = vrot.lane.b32.xlu1 %v3106_v47, %s2362_s19 }
 0x8d6   :  { %921 = vrot.lane.b32.xlu1 %v3100_v10, %s2363_s24 }
 0x8da   :  { %1634 = vrot.lane.b32.xlu1 %v3115_v55, %s2362_s19 }
 0x8de   :  { %1832 = vrot.lane.b32.xlu1 %v1827_v43, %s2363_s24  ;;  %v744_v43 = vmul.f32 1.442695, %v741_v12 }
 0x8e3   :  { %v1783_v26 = vpop.permute.xlu1 %1782 }
 0x8e4   :  { %v1788_v59 = vsub.f32 %v2925_v9, %v1783_v26  ;;  %v789_v26 = vpop.permute.xlu0 %788 }
 0x8e5   :  { %vm794_vm6 = vcmp.gt.f32.partialorder %v2768_v33, %v789_v26 }
 0x8e6   :  { %v1790_v62 = vmul.f32 1.442695, %v1788_v59  ;;  %v855_v59 = vsub.f32 %v2741_v15, %v2817_v31  ;;  %v115_v15 = vld [vmem:[%s3292_s4] sm:$0xff] }
 0x8e7   :  { %v1552_v58 = vpop.permute.xlu1 %1551  ;;  %v211_v29 = vsel %vm199_vm5, %v115_v15, 0.0 }
 0x8e8   :  { %2278 = vpow2.f32 %v1790_v62  ;;  %v1557_v36 = vsub.f32 %v2928_v20, %v1552_v58  ;;  %v3140_v62 = vpop.permute.xlu0 %1604  ;;  %v857_v58 = vmul.f32 1.442695, %v855_v59 }
 0x8e9   :  { %2280 = vpow2.f32 %v742_v63  ;;  %v960_v63 = vmul.f32 1.442695, %v958_v57  ;;  %vm1610_vm8 = vcmp.gt.f32.partialorder %v2928_v20, %v3140_v62 }
 0x8ea   :  { %v1559_v24 = vmul.f32 1.442695, %v1557_v36 }
 0x8eb   :  { %v1785_v11 = vpop.permute.xlu1 %1784 }
 0x8ec   :  { %v1789_v39 = vsub.f32 %v2935_v60, %v1785_v11  ;;  %v803_v11 = vpop.permute.xlu0 %802 }
 0x8ee   :  { %v1792_v46 = vmul.f32 1.442695, %v1789_v39 }
 0x8f0   :  { %2282 = vpow2.f32 %v1792_v46  ;;  %v912_v36 = vpop.permute.xlu0 %911 }
 0x8f1   :  { %2284 = vpow2.f32 %v1559_v24 }
 0x8f2   :  { %2286 = vpow2.f32 %v744_v43 }
 0x8f3   :  { %2288 = vlog2.f32 %v193_v16 }
 0x8f4   :  { %2290 = vpow2.f32 %v857_v58  ;;  %v3144_v12 = vpop.permute.xlu0 %1014 }
 0x8f5   :  { %v2279_v28 = vpop.eup %2278  ;;  %2292 = vpow2.f32 %v960_v63 }
 0x8f6   :  { %1796 = vrot.lane.b32.xlu0 %v2279_v28, %s2359_s8  ;;  %v2281_v19 = vpop.eup %2280 }
 0x8f8   :  { %v1619_v59 = vpop.permute.xlu0 %1618 }
 0x8fa   :  { %1735 = vrot.lane.b32.xlu0 %v3065_v52, %s2363_s24 }
 0x8fd   :  { %v2283_v27 = vpop.eup %2282 }
 0x8fe   :  { %1798 = vrot.lane.b32.xlu1 %v2283_v27, %s2359_s8  ;;  %748 = vrot.lane.b32.xlu0 %v2281_v19, %s2359_s8  ;;  %v2285_v56 = vpop.eup %2284 }
 0x8ff   :  { %v2287_v48 = vpop.eup %2286 }
 0x900   :  { %v2289_v39 = vpop.eup %2288 }
 0x901   :  { %v195_v46 = vmul.f32 0.6931472, %v2289_v39  ;;  %v2291_v16 = vpop.eup %2290 }
 0x902   :  { %1737 = vrot.lane.b32.xlu1 %v3115_v55, %s2363_s24  ;;  %1565 = vrot.lane.b32.xlu0 %v2285_v56, %s2359_s8  ;;  %v883_v19 = vadd.f32 %v2291_v16, %v878_v51  ;;  %v2293_v56 = vpop.eup %2292  ;;  %v856_v51 = vsub.f32 %v2747_v17, %v2822_v37 }
 0x903   :  { %v196_v28 = vadd.f32 %v195_v46, %v2876_v2 }
 0x904   :  { %2294 = vlog2.f32 %v883_v19 }
 0x906   :  { %750 = vrot.lane.b32.xlu1 %v2287_v48, %s2359_s8 }
 0x911   :  { %v2295_v16 = vpop.eup %2294 }
 0x926   :  { %v174_v24 = vpop.xlane.xlu1 %173 }
 0x927   :  { %v175_v43 = vmul.f32 14.285714, %v174_v24  ;;  %v3154_v24 = vpop.permute.xlu0 %1727 }
 0x929   :  { %v197_v27 = vsub.f32 %v196_v28, %v175_v43  ;;  %v1671_v28 = vsub.f32 %v2909_v3, %v2971_v38 }
 0x92a   :  { %v981_v48 = vpop.permute.xlu1 %980  ;;  %212 = vadd.xlane.f32.xlu1 %v211_v29  ;;  %v859_v29 = vmul.f32 1.442695, %v856_v51 }
 0x92b   :  { %v986_v57 = vadd.f32 %v2293_v56, %v981_v48  ;;  %v198_v58 = vmul.f32 %v197_v27, %v115_v15  ;;  %v3160_v46 = vpop.permute.xlu0 %1830  ;;  %v959_v15 = vsub.f32 %v2761_v30, %v2846_v53  ;;  %v1673_v17 = vmul.f32 1.442695, %v1671_v28 }
 0x92c   :  { %v1672_v28 = vsub.f32 %v2914_v32, %v2976_v44 }
 0x92d   :  { %v200_v63 = vsel %vm199_vm5, %v198_v58, 0.0  ;;  %2296 = vlog2.f32 %v986_v57  ;;  %v962_v56 = vmul.f32 1.442695, %v959_v15  ;;  %v1942_v57 = vsel %vm794_vm6, 1.0, %v2356_v4 }
 0x92e   :  { %v3152_v39 = vpop.permute.xlu1 %790  ;;  %201 = vadd.xlane.f32.xlu0 %v200_v63  ;;  %2298 = vpow2.f32 %v859_v29  ;;  %vm808_vm7 = vcmp.eq.f32.partialorder %v1942_v57, %v803_v11  ;;  %v886_v58 = vmul.f32 0.6931472, %v2295_v16 }
 0x92f   :  { %v817_v48 = vpop.permute.xlu0 %816  ;;  %2300 = vpow2.f32 %v962_v56  ;;  %v1944_v3 = vsel %vm808_vm7, 1.0, %v2356_v4  ;;  %vm795_vm10 = vcmp.gt.f32.partialorder %v2775_v35, %v3152_v39 }
 0x930   :  { %2302 = vpow2.f32 %v1673_v17  ;;  %v889_v26 = vadd.f32 %v886_v58, %v2817_v31  ;;  %v822_v55 = vmul.f32 %v1944_v3, %v817_v48  ;;  %v1675_v31 = vmul.f32 1.442695, %v1672_v28 }
 0x932   :  { %v3156_v2 = vpop.permute.xlu1 %1606  ;;  %v917_v11 = vsub.f32 %v889_v26, %v912_v36  ;;  %2304 = vpow2.f32 %v1675_v31 }
 0x933   :  { %v920_v51 = vpop.permute.xlu0 %919  ;;  %vm1611_vm12 = vcmp.gt.f32.partialorder %v2950_v25, %v3156_v2 }
 0x934   :  { %v925_v29 = vmul.f32 %v920_v51, %v917_v11 }
 0x936   :  { %v3162_v43 = vpop.permute.xlu1 %804 }
 0x937   :  { %v1633_v56 = vpop.permute.xlu0 %1632 }
 0x93a   :  { %v3169_v19 = vpop.permute.xlu1 %913  ;;  %v2297_v27 = vpop.eup %2296 }
 0x93b   :  { %v989_v63 = vmul.f32 0.6931472, %v2297_v27  ;;  %v2299_v48 = vpop.eup %2298  ;;  %v1694_v17 = vpop.permute.xlu0 %1693 }
 0x93c   :  { %v2301_v62 = vpop.eup %2300 }
 0x93d   :  { %v992_v15 = vadd.f32 %v989_v63, %v2839_v49  ;;  %v1950_v49 = vsel %vm1610_vm8, 1.0, %v2356_v4  ;;  %v987_v57 = vadd.f32 %v2301_v62, %v3136_v40 }
 0x93e   :  { %v3172_v30 = vpop.permute.xlu1 %1016  ;;  %vm1624_vm9 = vcmp.eq.f32.partialorder %v1950_v49, %v1619_v59  ;;  %v1943_v49 = vsel %vm795_vm10, 1.0, %v2356_v4 }
 0x93f   :  { %v1020_v16 = vsub.f32 %v992_v15, %v3144_v12  ;;  %v2303_v12 = vpop.eup %2302  ;;  %v1952_v58 = vsel %vm1624_vm9, 1.0, %v2356_v4  ;;  %v1696_v15 = vpop.permute.xlu0 %1695  ;;  %vm809_vm11 = vcmp.eq.f32.partialorder %v1943_v49, %v3162_v43 }
 0x940   :  { %v1638_v63 = vmul.f32 %v1952_v58, %v1633_v56  ;;  %v1699_v3 = vadd.f32 %v2303_v12, %v1694_v17  ;;  %v2305_v40 = vpop.eup %2304  ;;  %v726_v17 = vsub.f32 %v2768_v33, %v2956_v7  ;;  %v1945_v39 = vsel %vm809_vm11, 1.0, %v2356_v4 }
 0x941   :  { %v1022_v36 = vmul.f32 %v1020_v16, %v920_v51  ;;  %v1700_v11 = vadd.f32 %v2305_v40, %v1696_v15  ;;  %v1951_v40 = vsel %vm1611_vm12, 1.0, %v2356_v4 }
 0x942   :  { %v3177_v52 = vpop.permute.xlu1 %1620  ;;  %v728_v43 = vmul.f32 1.442695, %v726_v17 }
 0x943   :  { %vm1625_vm13 = vcmp.eq.f32.partialorder %v1951_v40, %v3177_v52 }
 0x944   :  { %826 = vrot.lane.b32.xlu0 %v822_v55, %s2359_s8  ;;  %v884_v55 = vadd.f32 %v2299_v48, %v3130_v34  ;;  %v1774_v34 = vsub.f32 %v2925_v9, %v3013_v5 }
 0x946   :  { %v3185_v27 = vpop.permute.xlu1 %1729  ;;  %2306 = vlog2.f32 %v884_v55  ;;  %v1776_v28 = vmul.f32 1.442695, %v1774_v34 }
 0x947   :  { %2308 = vlog2.f32 %v987_v57 }
 0x948   :  { %929 = vrot.lane.b32.xlu0 %v925_v29, %s2358_s0  ;;  %2310 = vlog2.f32 %v1699_v3  ;;  %v1775_v29 = vsub.f32 %v2935_v60, %v3033_v8  ;;  %v727_v60 = vsub.f32 %v2775_v35, %v2964_v0 }
 0x94a   :  { %v819_v32 = vpop.permute.xlu1 %818  ;;  %v1778_v56 = vmul.f32 1.442695, %v1775_v29  ;;  %v730_v3 = vmul.f32 1.442695, %v727_v60 }
 0x94b   :  { %v823_v58 = vmul.f32 %v1945_v39, %v819_v32 }
 0x94c   :  { %1026 = vrot.lane.b32.xlu0 %v1022_v36, %s2358_s0 }
 0x94e   :  { %v1554_v26 = vpop.permute.xlu1 %1553 }
 0x94f   :  { %v1558_v59 = vsub.f32 %v2950_v25, %v1554_v26 }
 0x950   :  { %1642 = vrot.lane.b32.xlu0 %v1638_v63, %s2359_s8 }
 0x951   :  { %v1561_v51 = vmul.f32 1.442695, %v1558_v59 }
 0x952   :  { %v922_v55 = vpop.permute.xlu1 %921 }
 0x953   :  { %2312 = vpow2.f32 %v1561_v51  ;;  %v2307_v16 = vpop.eup %2306 }
 0x954   :  { %2314 = vpow2.f32 %v1776_v28  ;;  %v2309_v31 = vpop.eup %2308  ;;  %v888_v9 = vmul.f32 0.6931472, %v2307_v16 }
 0x955   :  { %2316 = vlog2.f32 %v1700_v11  ;;  %v2311_v48 = vpop.eup %2310  ;;  %v991_v57 = vmul.f32 0.6931472, %v2309_v31 }
 0x956   :  { %2318 = vpow2.f32 %v1778_v56  ;;  %v1702_v62 = vmul.f32 0.6931472, %v2311_v48  ;;  %v890_v12 = vadd.f32 %v888_v9, %v2822_v37  ;;  %v1635_v26 = vpop.permute.xlu1 %1634 }
 0x957   :  { %v993_v59 = vadd.f32 %v991_v57, %v2846_v53  ;;  %2320 = vpow2.f32 %v728_v43 }
 0x958   :  { %v918_v63 = vsub.f32 %v890_v12, %v3169_v19  ;;  %v1705_v34 = vadd.f32 %v1702_v62, %v2971_v38  ;;  %2322 = vpow2.f32 %v730_v3 }
 0x959   :  { %v1021_v37 = vsub.f32 %v993_v59, %v3172_v30  ;;  %v1953_v30 = vsel %vm1625_vm13, 1.0, %v2356_v4 }
 0x95a   :  { %v926_v51 = vmul.f32 %v922_v55, %v918_v63  ;;  %v1733_v53 = vsub.f32 %v1705_v34, %v3154_v24  ;;  %v1833_v11 = vpop.permute.xlu1 %1832  ;;  %v1639_v56 = vmul.f32 %v1953_v30, %v1635_v26 }
 0x95b   :  { %v1023_v2 = vmul.f32 %v1021_v37, %v922_v55  ;;  %v767_v37 = vmul.f32 %v2900_v18, %v2775_v35  ;;  %v1543_v18 = vsub.f32 %v2928_v20, %v3027_v61 }
 0x960   :  { %v2313_v36 = vpop.eup %2312 }
 0x961   :  { %1567 = vrot.lane.b32.xlu1 %v2313_v36, %s2359_s8  ;;  %v2315_v15 = vpop.eup %2314 }
 0x962   :  { %v2317_v19 = vpop.eup %2316 }
 0x963   :  { %v1704_v29 = vmul.f32 0.6931472, %v2317_v19  ;;  %v2319_v31 = vpop.eup %2318 }
 0x964   :  { %v2321_v55 = vpop.eup %2320 }
 0x965   :  { %828 = vrot.lane.b32.xlu1 %v823_v58, %s2359_s8  ;;  %v1706_v48 = vadd.f32 %v1704_v29, %v2976_v44  ;;  %v2323_v60 = vpop.eup %2322 }
 0x967   :  { %v1734_v24 = vsub.f32 %v1706_v48, %v3185_v27 }
 0x968   :  { %v1797_v28 = vpop.permute.xlu0 %1796 }
 0x969   :  { %v1802_v32 = vadd.f32 %v2315_v15, %v1797_v28  ;;  %931 = vrot.lane.b32.xlu1 %v926_v51, %s2358_s0 }
 0x96b   :  { %2324 = vlog2.f32 %v1802_v32 }
 0x96c   :  { %v1736_v38 = vpop.permute.xlu0 %1735 }
 0x96d   :  { %v1741_v16 = vmul.f32 %v1736_v38, %v1733_v53  ;;  %1028 = vrot.lane.b32.xlu1 %v1023_v2, %s2358_s0 }
 0x96f   :  { %1745 = vrot.lane.b32.xlu0 %v1741_v16, %s2358_s0 }
 0x970   :  { %v1799_v49 = vpop.permute.xlu1 %1798  ;;  %v749_v17 = vpop.permute.xlu0 %748 }
 0x971   :  { %v1803_v52 = vadd.f32 %v2319_v31, %v1799_v49  ;;  %1644 = vrot.lane.b32.xlu1 %v1639_v56, %s2359_s8  ;;  %v754_v12 = vadd.f32 %v2321_v55, %v749_v17 }
 0x973   :  { %2326 = vlog2.f32 %v1803_v52  ;;  %v1544_v52 = vsub.f32 %v2950_v25, %v3106_v47 }
 0x974   :  { %v1738_v9 = vpop.permute.xlu1 %1737 }
 0x975   :  { %v1742_v36 = vmul.f32 %v1738_v9, %v1734_v24  ;;  %v1547_v55 = vmul.f32 1.442695, %v1544_v52 }
 0x977   :  { %1747 = vrot.lane.b32.xlu1 %v1742_v36, %s2358_s0 }
 0x978   :  { %v2325_v4 = vpop.eup %2324  ;;  %v751_v39 = vpop.permute.xlu1 %750 }
 0x979   :  { %v1805_v62 = vmul.f32 0.6931472, %v2325_v4  ;;  %v755_v57 = vadd.f32 %v2323_v60, %v751_v39 }
 0x97b   :  { %v1808_v44 = vadd.f32 %v1805_v62, %v3013_v5  ;;  %2328 = vlog2.f32 %v755_v57  ;;  %v763_v5 = vmul.f32 %v2870_v14, %v2897_v42 }
 0x97c   :  { %2330 = vlog2.f32 %v754_v12 }
 0x97d   :  { %v1836_v58 = vsub.f32 %v1808_v44, %v3160_v46  ;;  %v762_v46 = vmul.f32 %v2868_v13, %v2883_v21  ;;  %v769_v40 = vadd.f32 %v767_v37, %v763_v5 }
 0x97f   :  { %v1838_v27 = vmul.f32 %v1836_v58, %v1736_v38 }
 0x980   :  { %v2327_v43 = vpop.eup %2326 }
 0x981   :  { %v1807_v63 = vmul.f32 0.6931472, %v2327_v43  ;;  %1842 = vrot.lane.b32.xlu0 %v1838_v27, %s2358_s0 }
 0x983   :  { %v1809_v3 = vadd.f32 %v1807_v63, %v3033_v8  ;;  %v766_v8 = vmul.f32 %v2888_v1, %v2768_v33  ;;  %v1566_v33 = vpop.permute.xlu0 %1565  ;;  %v1049_v63 = vsel %vm199_vm5, %v3056_v23, 0.0 }
 0x985   :  { %v1837_v26 = vsub.f32 %v1809_v3, %v1833_v11  ;;  %v768_v2 = vadd.f32 %v766_v8, %v762_v46  ;;  %v1050_v3 = vsel %vm199_vm5, %v3100_v10, 0.0 }
 0x987   :  { %v1839_v59 = vmul.f32 %v1837_v26, %v1738_v9 }
 0x988   :  { %v2329_v51 = vpop.eup %2328 }
 0x989   :  { %1844 = vrot.lane.b32.xlu1 %v1839_v59, %s2358_s0  ;;  %v2331_v34 = vpop.eup %2330  ;;  %v759_v15 = vmul.f32 0.6931472, %v2329_v51 }
 0x98a   :  { %v757_v28 = vmul.f32 0.6931472, %v2331_v34 }
 0x98b   :  { %v761_v32 = vadd.f32 %v759_v15, %v2964_v0  ;;  %v1545_v0 = vmul.f32 1.442695, %v1543_v18  ;;  %v1051_v15 = vadd.f32 %v1050_v3, %v1049_v63 }
 0x98c   :  { %v760_v19 = vadd.f32 %v757_v28, %v2956_v7 }
 0x98d   :  { %v771_v53 = vsub.f32 %v761_v32, %v769_v40  ;;  %2332 = vpow2.f32 %v1545_v0  ;;  %v1579_v32 = vmul.f32 %v3017_v54, %v3010_v50  ;;  %v1584_v50 = vmul.f32 %v3044_v22, %v2950_v25 }
 0x98e   :  { %v770_v11 = vsub.f32 %v760_v19, %v768_v2  ;;  %2334 = vpow2.f32 %v1547_v55 }
 0x98f   :  { %v773_v14 = vmul.f32 %v771_v53, %v3100_v10 }
 0x990   :  { %v772_v42 = vmul.f32 %v770_v11, %v3056_v23  ;;  %v1583_v23 = vmul.f32 %v3020_v41, %v2928_v20 }
 0x991   :  { %v776_v13 = vsel %vm199_vm5, %v773_v14, 0.0  ;;  %v1580_v14 = vmul.f32 %v3051_v6, %v3039_v45  ;;  %v3305_v6 = vld [vmem:[#allocation7_spill] sm:$0xff] }
 0x992   :  { %v775_v21 = vsel %vm199_vm5, %v772_v42, 0.0  ;;  %v1585_v11 = vadd.f32 %v1583_v23, %v1579_v32 }
 0x993   :  { %v777_v35 = vadd.f32 %v776_v13, %v775_v21 }
 0x99a   :  { %v2333_v60 = vpop.eup %2332 }
 0x99b   :  { %v1571_v4 = vadd.f32 %v2333_v60, %v1566_v33  ;;  %v2335_v62 = vpop.eup %2334 }
 0x99d   :  { %2336 = vlog2.f32 %v1571_v4 }
 0x9a0   :  { %778 = vadd.xlane.f32.xlu0 %v777_v35  ;;  %v1586_v35 = vadd.f32 %v1584_v50, %v1580_v14 }
 0x9aa   :  { %v2337_v26 = vpop.eup %2336 }
 0x9ab   :  { %v1574_v5 = vmul.f32 0.6931472, %v2337_v26 }
 0x9ad   :  { %v1577_v10 = vadd.f32 %v1574_v5, %v3027_v61 }
 0x9af   :  { %v1587_v13 = vsub.f32 %v1577_v10, %v1585_v11 }
 0x9b3   :  { %v213_v1 = vpop.xlane.xlu1 %212 }
 0x9b4   :  { %v214_v7 = vrot.slane %v213_v1, 4 }
 0x9b6   :  { %v215_v38 = vadd.f32 %v214_v7, %v213_v1  ;;  %v3304_v1 = vld [vmem:[#allocation6_spill] sm:$0xff] }
 0x9b7   :  { %v202_v29 = vpop.xlane.xlu0 %201  ;;  %v1589_v45 = vmul.f32 %v1587_v13, %v3304_v1 }
 0x9b8   :  { %v216_v16 = vrot.slane %v215_v38, 2  ;;  %v203_v30 = vrot.slane %v202_v29, 4 }
 0x9b9   :  { %v1591_v25 = vsel %vm199_vm5, %v1589_v45, 0.0 }
 0x9ba   :  { %v204_v31 = vadd.f32 %v203_v30, %v202_v29  ;;  %v217_v56 = vadd.f32 %v216_v16, %v215_v38 }
 0x9bb   :  { %v827_v39 = vpop.permute.xlu0 %826 }
 0x9bc   :  { %v205_v49 = vrot.slane %v204_v31, 2  ;;  %v218_v48 = vrot.slane %v217_v56, 1  ;;  %v832_v27 = vsel %vm199_vm5, %v827_v39, 0.0 }
 0x9be   :  { %v206_v24 = vadd.f32 %v205_v49, %v204_v31  ;;  %v219_v36 = vadd.f32 %v218_v48, %v217_v56  ;;  %v1866_v31 = vsel %vm199_vm5, %v3305_v6, 0.0 }
 0x9bf   :  { %v930_v44 = vpop.permute.xlu0 %929 }
 0x9c0   :  { %v207_v9 = vrot.slane %v206_v24, 1  ;;  %v935_v28 = vsel %vm199_vm5, %v930_v44, 0.0 }
 0x9c2   :  { %v208_v17 = vadd.f32 %v207_v9, %v206_v24 }
 0x9c3   :  { %v1027_v51 = vpop.permute.xlu0 %1026 }
 0x9c4   :  { %2183 = vpush %v208_v17  ;;  %v1032_v19 = vsel %vm199_vm5, %v1027_v51, 0.0 }
 0x9c5   :  { %2185 = vpush %v219_v36 }
 0x9c7   :  { %v1643_v2 = vpop.permute.xlu0 %1642 }
 0x9c8   :  { %v1648_v20 = vsel %vm199_vm5, %v1643_v2, 0.0 }
 0x9d3   :  { %v1568_v12 = vpop.permute.xlu1 %1567 }
 0x9d4   :  { %v1572_v57 = vadd.f32 %v2335_v62, %v1568_v12 }
 0x9d6   :  { %2338 = vlog2.f32 %v1572_v57 }
 0x9d7   :  { %v829_v58 = vpop.permute.xlu1 %828 }
 0x9d8   :  { %v833_v43 = vsel %vm199_vm5, %v829_v58, 0.0 }
 0x9d9   :  { %v834_v59 = vadd.f32 %v833_v43, %v832_v27 }
 0x9db   :  { %v932_v34 = vpop.permute.xlu1 %931  ;;  %835 = vadd.xlane.f32.xlu1 %v834_v59 }
 0x9dc   :  { %v936_v46 = vsel %vm199_vm5, %v932_v34, 0.0 }
 0x9dd   :  { %v937_v37 = vadd.f32 %v936_v46, %v935_v28 }
 0x9df   :  { %v1029_v8 = vpop.permute.xlu1 %1028  ;;  %938 = vadd.xlane.f32.xlu0 %v937_v37  ;;  %1052 = vadd.xlane.f32.xlu1 %v1051_v15 }
 0x9e0   :  { %v1033_v40 = vsel %vm199_vm5, %v1029_v8, 0.0 }
 0x9e1   :  { %v1034_v53 = vadd.f32 %v1033_v40, %v1032_v19  ;;  %v1746_v38 = vpop.permute.xlu0 %1745 }
 0x9e2   :  { %v1751_v30 = vsel %vm199_vm5, %v1746_v38, 0.0 }
 0x9e3   :  { %v2339_v42 = vpop.eup %2338  ;;  %v1645_v54 = vpop.permute.xlu1 %1644  ;;  %1035 = vadd.xlane.f32.xlu0 %v1034_v53 }
 0x9e4   :  { %v1576_v41 = vmul.f32 0.6931472, %v2339_v42  ;;  %v1649_v61 = vsel %vm199_vm5, %v1645_v54, 0.0 }
 0x9e5   :  { %v1650_v21 = vadd.f32 %v1649_v61, %v1648_v20 }
 0x9e6   :  { %v1578_v18 = vadd.f32 %v1576_v41, %v3106_v47  ;;  %v1865_v47 = vsel %vm199_vm5, %v3304_v1, 0.0 }
 0x9e7   :  { %1651 = vadd.xlane.f32.xlu1 %v1650_v21  ;;  %v1867_v49 = vadd.f32 %v1866_v31, %v1865_v47 }
 0x9e8   :  { %v1588_v33 = vsub.f32 %v1578_v18, %v1586_v35 }
 0x9e9   :  { %v1748_v0 = vpop.permute.xlu1 %1747 }
 0x9ea   :  { %v1590_v7 = vmul.f32 %v1588_v33, %v3305_v6  ;;  %v1752_v16 = vsel %vm199_vm5, %v1748_v0, 0.0 }
 0x9eb   :  { %v1753_v56 = vadd.f32 %v1752_v16, %v1751_v30 }
 0x9ec   :  { %v1592_v22 = vsel %vm199_vm5, %v1590_v7, 0.0 }
 0x9ed   :  { %v1593_v29 = vadd.f32 %v1592_v22, %v1591_v25 }
 0x9ef   :  { %1594 = vadd.xlane.f32.xlu0 %v1593_v29 }
 0x9f3   :  { %1754 = vadd.xlane.f32.xlu0 %v1753_v56  ;;  %v1843_v24 = vpop.permute.xlu0 %1842 }
 0x9f4   :  { %v1848_v36 = vsel %vm199_vm5, %v1843_v24, 0.0 }
 0x9f5   :  { %s2184_s4 = spop %2183 }
 0x9f6   :  { %s2186_s7 = spop %2185  ;;  %v210_v4 = vstv %s2184_s4 }
 0x9f7   :  { %v221_v48 = vstv %s2186_s7  ;;  %1868 = vadd.xlane.f32.xlu0 %v1867_v49 }
 0x9f8   :  { %v222_v52 = vmax.f32 %v221_v48, 1.0 }
 0x9fa   :  { %2340 = vrcp.f32 %v222_v52 }
 0x9fb   :  { %v1845_v9 = vpop.permute.xlu1 %1844 }
 0x9fc   :  { %v1849_v55 = vsel %vm199_vm5, %v1845_v9, 0.0 }
 0x9fd   :  { %v1850_v17 = vadd.f32 %v1849_v55, %v1848_v36 }
 0x9ff   :  { %1851 = vadd.xlane.f32.xlu1 %v1850_v17 }
 0xa07   :  { %v2341_v60 = vpop.eup %2340 }
 0xa08   :  { %v224_v39 = vmul.f32 %v2341_v60, %v210_v4 }
 0xa0a   :  { %2187 = vpush %v224_v39 }
 0xa29   :  { %v779_v62 = vpop.xlane.xlu0 %778 }
 0xa2a   :  { %v780_v12 = vrot.slane %v779_v62, 4 }
 0xa2c   :  { %v781_v57 = vadd.f32 %v780_v12, %v779_v62 }
 0xa2e   :  { %v782_v44 = vrot.slane %v781_v57, 2 }
 0xa30   :  { %v783_v58 = vadd.f32 %v782_v44, %v781_v57 }
 0xa32   :  { %v784_v27 = vrot.slane %v783_v58, 1 }
 0xa34   :  { %v785_v43 = vadd.f32 %v784_v27, %v783_v58 }
 0xa36   :  { %2189 = vpush %v785_v43 }
 0xa3b   :  { %s2188_s15 = spop %2187 }
 0xa3c   :  { %1921 = sst [smem:[#allocation3 + $0x5]] %s2188_s15 }
 0xa64   :  { %v836_v63 = vpop.xlane.xlu1 %835 }
 0xa65   :  { %v837_v3 = vrot.slane %v836_v63, 4 }
 0xa67   :  { %v838_v26 = vadd.f32 %v837_v3, %v836_v63  ;;  %s2190_s1 = spop %2189 }
 0xa68   :  { %v939_v59 = vpop.xlane.xlu0 %938  ;;  %v1053_v51 = vpop.xlane.xlu1 %1052  ;;  %v787_v43 = vstv %s2190_s1 }
 0xa69   :  { %v839_v34 = vrot.slane %v838_v26, 2  ;;  %v940_v15 = vrot.slane %v939_v59, 4  ;;  %v1054_v5 = vrot.slane %v1053_v51, 4 }
 0xa6b   :  { %v941_v28 = vadd.f32 %v940_v15, %v939_v59  ;;  %v1055_v46 = vadd.f32 %v1054_v5, %v1053_v51  ;;  %v840_v37 = vadd.f32 %v839_v34, %v838_v26 }
 0xa6c   :  { %v1036_v32 = vpop.xlane.xlu0 %1035 }
 0xa6d   :  { %v942_v8 = vrot.slane %v941_v28, 2  ;;  %v1056_v23 = vrot.slane %v1055_v46, 2  ;;  %v1037_v10 = vrot.slane %v1036_v32, 4  ;;  %v841_v19 = vrot.slane %v840_v37, 1 }
 0xa6f   :  { %v1038_v40 = vadd.f32 %v1037_v10, %v1036_v32  ;;  %v842_v2 = vadd.f32 %v841_v19, %v840_v37  ;;  %v943_v53 = vadd.f32 %v942_v8, %v941_v28  ;;  %v1057_v11 = vadd.f32 %v1056_v23, %v1055_v46 }
 0xa70   :  { %v1652_v14 = vpop.xlane.xlu1 %1651 }
 0xa71   :  { %v1039_v42 = vrot.slane %v1038_v40, 2  ;;  %v1653_v50 = vrot.slane %v1652_v14, 4  ;;  %2191 = vpush %v842_v2  ;;  %v944_v54 = vrot.slane %v943_v53, 1  ;;  %v1058_v13 = vrot.slane %v1057_v11, 1 }
 0xa73   :  { %v945_v20 = vadd.f32 %v944_v54, %v943_v53  ;;  %v1040_v41 = vadd.f32 %v1039_v42, %v1038_v40  ;;  %v1654_v61 = vadd.f32 %v1653_v50, %v1652_v14  ;;  %v1059_v35 = vadd.f32 %v1058_v13, %v1057_v11 }
 0xa75   :  { %2193 = vpush %v945_v20  ;;  %v1041_v21 = vrot.slane %v1040_v41, 1  ;;  %v1655_v33 = vrot.slane %v1654_v61, 2 }
 0xa77   :  { %v1042_v18 = vadd.f32 %v1041_v21, %v1040_v41  ;;  %v1656_v0 = vadd.f32 %v1655_v33, %v1654_v61 }
 0xa78   :  { %v1595_v1 = vpop.xlane.xlu0 %1594 }
 0xa79   :  { %v1596_v45 = vrot.slane %v1595_v1, 4  ;;  %2195 = vpush %v1042_v18  ;;  %v1657_v30 = vrot.slane %v1656_v0, 1 }
 0xa7a   :  { %2197 = vpush %v1059_v35 }
 0xa7b   :  { %v1597_v6 = vadd.f32 %v1596_v45, %v1595_v1  ;;  %v1658_v24 = vadd.f32 %v1657_v30, %v1656_v0 }
 0xa7c   :  { %v1755_v7 = vpop.xlane.xlu0 %1754 }
 0xa7d   :  { %v1598_v25 = vrot.slane %v1597_v6, 2  ;;  %v1756_v22 = vrot.slane %v1755_v7, 4 }
 0xa7f   :  { %v1757_v38 = vadd.f32 %v1756_v22, %v1755_v7  ;;  %v1599_v29 = vadd.f32 %v1598_v25, %v1597_v6 }
 0xa80   :  { %v1869_v16 = vpop.xlane.xlu0 %1868 }
 0xa81   :  { %v1758_v47 = vrot.slane %v1757_v38, 2  ;;  %v1870_v31 = vrot.slane %v1869_v16, 4  ;;  %v1600_v56 = vrot.slane %v1599_v29, 1 }
 0xa83   :  { %v1601_v49 = vadd.f32 %v1600_v56, %v1599_v29  ;;  %v1759_v48 = vadd.f32 %v1758_v47, %v1757_v38  ;;  %v1871_v52 = vadd.f32 %v1870_v31, %v1869_v16 }
 0xa85   :  { %2199 = vpush %v1601_v49  ;;  %v1760_v9 = vrot.slane %v1759_v48, 1  ;;  %v1872_v55 = vrot.slane %v1871_v52, 2 }
 0xa86   :  { %2201 = vpush %v1658_v24 }
 0xa87   :  { %v1761_v36 = vadd.f32 %v1760_v9, %v1759_v48  ;;  %v1873_v39 = vadd.f32 %v1872_v55, %v1871_v52 }
 0xa88   :  { %v1852_v17 = vpop.xlane.xlu1 %1851 }
 0xa89   :  { %v1853_v60 = vrot.slane %v1852_v17, 4  ;;  %2203 = vpush %v1761_v36  ;;  %v1874_v57 = vrot.slane %v1873_v39, 1 }
 0xa8b   :  { %v1854_v4 = vadd.f32 %v1853_v60, %v1852_v17  ;;  %v1875_v27 = vadd.f32 %v1874_v57, %v1873_v39 }
 0xa8d   :  { %v1855_v62 = vrot.slane %v1854_v4, 2 }
 0xa8f   :  { %v1856_v12 = vadd.f32 %v1855_v62, %v1854_v4 }
 0xa91   :  { %v1857_v44 = vrot.slane %v1856_v12, 1 }
 0xa93   :  { %v1858_v58 = vadd.f32 %v1857_v44, %v1856_v12 }
 0xa95   :  { %2205 = vpush %v1858_v58 }
 0xa96   :  { %2207 = vpush %v1875_v27 }
 0xaa2   :  { %s2192_s16 = spop %2191 }
 0xaa3   :  { %v844_v28 = vstv %s2192_s16 }
 0xaa6   :  { %s2194_s0 = spop %2193 }
 0xaa7   :  { %v947_v26 = vstv %s2194_s0 }
 0xaaa   :  { %s2196_s8 = spop %2195 }
 0xaab   :  { %s2198_s17 = spop %2197  ;;  %v1044_v15 = vstv %s2196_s8 }
 0xaac   :  { %v1061_v46 = vstv %s2198_s17 }
 0xab6   :  { %s2200_s18 = spop %2199 }
 0xab7   :  { %v1603_v63 = vstv %s2200_s18  ;;  %s2202_s5 = spop %2201 }
 0xab8   :  { %v1861_v3 = vadd.f32 %v1603_v63, %v787_v43  ;;  %v1660_v34 = vstv %s2202_s5 }
 0xab9   :  { %v1864_v8 = vadd.f32 %v1660_v34, %v844_v28 }
 0xaba   :  { %s2204_s19 = spop %2203  ;;  %2209 = vpush %v1861_v3 }
 0xabb   :  { %v1763_v59 = vstv %s2204_s19 }
 0xabc   :  { %v1862_v51 = vadd.f32 %v1763_v59, %v947_v26 }
 0xabe   :  { %2211 = vpush %v1862_v51 }
 0xac6   :  { %s2206_s20 = spop %2205 }
 0xac7   :  { %v1860_v5 = vstv %s2206_s20  ;;  %s2208_s21 = spop %2207 }
 0xac8   :  { %v1877_v37 = vstv %s2208_s21  ;;  %v1863_v32 = vadd.f32 %v1860_v5, %v1044_v15 }
 0xac9   :  { %v1878_v23 = vadd.f32 %v1877_v37, %v1061_v46 }
 0xaca   :  { %2213 = vpush %v1863_v32 }
 0xacb   :  { %2215 = vpush %v1864_v8 }
 0xacc   :  { %2217 = vpush %v1878_v23 }
 0xaeb   :  { %s2210_s22 = spop %2209 }
 0xaec   :  { %1906 = sst [smem:[#allocation3]] %s2210_s22 }
 0xaef   :  { %s2212_s23 = spop %2211 }
 0xaf0   :  { %1909 = sst [smem:[#allocation3 + $0x1]] %s2212_s23 }
 0xafb   :  { %s2214_s27 = spop %2213 }
 0xafc   :  { %1912 = sst [smem:[#allocation3 + $0x2]] %s2214_s27  ;;  %s2216_s28 = spop %2215 }
 0xafd   :  { %1915 = sst [smem:[#allocation3 + $0x3]] %s2216_s28  ;;  %s2218_s2 = spop %2217 }
 0xafe   :  { %1918 = sst [smem:[#allocation3 + $0x4]] %s2218_s2 }
 0xaff   :  { %2353 = shalt.err (!%p2350_p4)
}
 0xb00   :  { %s2364_s6 = smov [#allocation3]  }
 0xb01   :  { %1931 = dma.smem_to_vmem %s2364_s6, 16, %s1929_s26, [#allocation4]  }
 0xb02   :  { %2354 = dma.done.wait [#allocation4], 16  }
 0xb03   :  { %2355 = vsyncadd [#allocation4], 4294967280 }
 0xb04   :  { %1935 = sfence }
 0xb05   :  { %1936 = vsyncpa [#allocation4], 1 }

</bundles_post_ra>
